<compile_context>
chip_gen: v7x
topology: tpu7x:2x2x1
jax: 0.10.0
libtpu: 0.0.40
codegen_flags: <defaults>
</compile_context>

<pallas_src>
import functools
import math

import jax
import jax.numpy as jnp
from jax.experimental import pallas as pl
from jax.experimental.pallas import tpu as pltpu


def _round_up(a, b):
    return (a + b - 1) // b * b


# ------------------------- Pallas kernel: PointConv MLP + running masked max -------------------------

def pointconv_kernel(feat_ref, w1_ref, b1_ref, w2_ref, b2_ref, w3_ref, b3_ref,
                     out_ref, *, mask_col):
    tm, tk, cin = feat_ref.shape                 # (centroid block, neighbor chunk, Cin_pad)
    kidx = pl.program_id(1)

    @pl.when(kidx == 0)
    def _():
        out_ref[...] = jnp.zeros_like(out_ref)   # MLP outputs are >= 0 (ReLU), so 0 is -inf here

    f = feat_ref[...].reshape(tm * tk, cin)      # (R, Cin_pad) bf16, tile-aligned reshape
    h = jnp.dot(f, w1_ref[...], preferred_element_type=jnp.float32) + b1_ref[...]
    h = jnp.maximum(h, 0.0)
    h = jnp.dot(h.astype(w2_ref.dtype), w2_ref[...], preferred_element_type=jnp.float32) + b2_ref[...]
    h = jnp.maximum(h, 0.0)
    h = jnp.dot(h.astype(w3_ref.dtype), w3_ref[...], preferred_element_type=jnp.float32) + b3_ref[...]
    h = jnp.maximum(h, 0.0)                      # (R, Cout_pad) f32, all >= 0

    # Validity mask (0/1) lives in a padding column of the edge features; the corresponding
    # w1 row is zero so it never affects the MLP.  Multiply-before-max is exact (see header).
    m = f[:, mask_col:mask_col + 1].astype(jnp.float32)       # (R, 1)
    h = h * m

    h = h.reshape(tm, tk, h.shape[-1])                          # (tm, tk, Cout_pad)
    out_ref[...] = jnp.maximum(out_ref[...], jnp.max(h, axis=1))


def pointconv_max(feat, params, *, tm, tk, mask_col):
    """feat: [M_pad, K, Cin_pad] bf16 (mask packed in column mask_col) -> [M_pad, Cout_pad] f32."""
    M_pad, K, Cin_pad = feat.shape
    assert M_pad % tm == 0 and K % tk == 0
    (w1, b1), (w2, b2), (w3, b3) = params
    H1, H2, Cout_pad = w1.shape[1], w2.shape[1], w3.shape[1]

    cost = pl.CostEstimate(
        flops=2 * M_pad * K * (Cin_pad * H1 + H1 * H2 + H2 * Cout_pad),
        transcendentals=0,
        bytes_accessed=int(feat.size * feat.dtype.itemsize + M_pad * Cout_pad * 4),
    )

    kernel = functools.partial(pointconv_kernel, mask_col=mask_col)
    out = pl.pallas_call(
        kernel,
        out_shape=jax.ShapeDtypeStruct((M_pad, Cout_pad), jnp.float32),
        grid_spec=pltpu.PrefetchScalarGridSpec(
            num_scalar_prefetch=0,
            grid=(M_pad // tm, K // tk),               # (parallel centroid blocks, neighbor reduction)
            in_specs=[
                pl.BlockSpec((tm, tk, Cin_pad), lambda m, k: (m, k, 0)),
                pl.BlockSpec((Cin_pad, H1), lambda m, k: (0, 0)),
                pl.BlockSpec((1, H1), lambda m, k: (0, 0)),
                pl.BlockSpec((H1, H2), lambda m, k: (0, 0)),
                pl.BlockSpec((1, H2), lambda m, k: (0, 0)),
                pl.BlockSpec((H2, Cout_pad), lambda m, k: (0, 0)),
                pl.BlockSpec((1, Cout_pad), lambda m, k: (0, 0)),
            ],
            # Same block index across k -> output stays resident in VMEM as the max accumulator.
            out_specs=pl.BlockSpec((tm, Cout_pad), lambda m, k: (m, 0)),
        ),
        compiler_params=pltpu.CompilerParams(
            dimension_semantics=("parallel", "arbitrary"),
            vmem_limit_bytes=32 * 1024 * 1024,
        ),
        cost_estimate=cost,
    )(feat, w1, b1, w2, b2, w3, b3)
    return out


# ------------------------- JAX glue: fps, radius, gather -------------------------

def fps_per_cloud(pos_b, n_samples):
    """Deterministic farthest point sampling (start at index 0) for one cloud."""
    N = pos_b.shape[0]

    def body(i, state):
        sel, dmin = state
        last = pos_b[sel[i - 1]]
        d = jnp.sum((pos_b - last[None, :]) ** 2, axis=-1)
        dmin = jnp.minimum(dmin, d)
        sel = sel.at[i].set(jnp.argmax(dmin).astype(jnp.int32))
        return sel, dmin

    sel0 = jnp.zeros((n_samples,), jnp.int32)
    dmin0 = jnp.full((N,), jnp.inf, jnp.float32)
    sel, _ = jax.lax.fori_loop(1, n_samples, body, (sel0, dmin0))
    return sel


def radius_neighbors_cloud(pos_b, pos_cb, r, K):
    """For one cloud: up to K source indices within radius r per centroid (first K by index)."""
    N = pos_b.shape[0]
    d2 = jnp.sum((pos_cb[:, None, :] - pos_b[None, :, :]) ** 2, axis=-1)     # (S, N)
    valid = d2 <= r * r
    key = jnp.where(valid, jnp.arange(N, dtype=jnp.int32)[None, :], N)
    neg_top, _ = jax.lax.top_k(-key, K)                                      # K smallest keys
    nbr = -neg_top                                                           # ascending indices
    mask = (nbr < N).astype(jnp.float32)
    nbr = jnp.where(nbr < N, nbr, 0)
    return nbr, mask


def _choose_tiles(M, K, rows_cap=4096):
    """Pick (tm, tk): neighbor chunk tk divides K (sublane-aligned); tm keeps per-step
    intermediates (~tm*tk rows) bounded and leaves >= 2 centroid blocks for megacore."""
    if K % 32 == 0:
        tk = 32
    elif K % 16 == 0:
        tk = 16
    elif K % 8 == 0:
        tk = 8
    else:
        tk = K
    tm = max(8, min(256, (rows_cap // tk) // 8 * 8))
    half = max(8, (((M + 1) // 2) + 7) // 8 * 8)
    tm = min(tm, half)
    return tm, tk


def set_abstraction(x, pos, batch, *, ratio, r, params, num_clouds, points_per_cloud,
                    max_neighbors=64):
    B, N = num_clouds, points_per_cloud
    S = int(math.ceil(ratio * N))
    M = B * S
    C = x.shape[-1]

    # --- fps (vmapped over clouds) ---
    pos_bn = pos.reshape(B, N, 3)
    sel = jax.vmap(lambda p: fps_per_cloud(p, S))(pos_bn)                    # (B, S)
    idx = (sel + (jnp.arange(B, dtype=jnp.int32) * N)[:, None]).reshape(-1)  # (M,)
    pos_c = pos[idx]
    batch_c = batch[idx]

    # --- radius neighbor search (vmapped over clouds, top_k instead of full sort) ---
    K = min(max_neighbors, N)
    nbr_loc, mask = jax.vmap(lambda pb, pcb: radius_neighbors_cloud(pb, pcb, r, K))(
        pos_bn, pos_c.reshape(B, S, 3))
    nbr = (nbr_loc + (jnp.arange(B, dtype=jnp.int32) * N)[:, None, None]).reshape(M, K)
    mask = mask.reshape(M, K)

    # --- single gather of [x | pos] per edge, then subtract centroid position ---
    xp = jnp.concatenate([x, pos], axis=-1)              # (B*N, C+3)
    e = xp[nbr]                                          # (M, K, C+3)
    feat = jnp.concatenate([e[..., :C], e[..., C:] - pos_c[:, None, :]], axis=-1)

    # --- pack mask into a spare padding column; pad Cin -> mult of 8, M -> mult of tm ---
    Cin = C + 3
    Cin_pad = _round_up(Cin + 1, 8)          # always reserve >= 1 column for the mask
    mask_col = Cin
    parts = [feat, mask[..., None]]
    pad_cols = Cin_pad - Cin - 1
    if pad_cols:
        parts.append(jnp.zeros((M, K, pad_cols), feat.dtype))
    feat = jnp.concatenate(parts, axis=-1)               # (M, K, Cin_pad)

    tm, tk = _choose_tiles(M, K)
    M_pad = _round_up(M, tm)
    if M_pad != M:
        feat = jnp.pad(feat, ((0, M_pad - M), (0, 0), (0, 0)))   # padded rows: mask col = 0
    feat = feat.astype(jnp.bfloat16)

    # --- weights: Cin -> Cin_pad (zero rows, incl. mask column), Cout -> mult of 128 ---
    (w1, b1), (w2, b2), (w3, b3) = params
    Cout = w3.shape[1]
    Cout_pad = _round_up(Cout, 128)
    w1p = jnp.pad(w1, ((0, Cin_pad - Cin), (0, 0))).astype(jnp.bfloat16)
    w2p = w2.astype(jnp.bfloat16)
    w3p = jnp.pad(w3, ((0, 0), (0, Cout_pad - Cout))).astype(jnp.bfloat16)
    b3p = jnp.pad(b3, ((0, 0), (0, Cout_pad - Cout))).astype(jnp.float32)
    params_p = ((w1p, b1.astype(jnp.float32)),
                (w2p, b2.astype(jnp.float32)),
                (w3p, b3p))

    out = pointconv_max(feat, params_p, tm=tm, tk=tk, mask_col=mask_col)     # (M_pad, Cout_pad)
    x_out = out[:M, :Cout]
    return x_out, pos_c, batch_c


def init_mlp(key, dims):
    """Deterministic Linear+ReLU MLP params (the `nn` passed to PointConv)."""
    params = []
    for din, dout in zip(dims[:-1], dims[1:]):
        key, k1, k2 = jax.random.split(key, 3)
        bound = 1.0 / math.sqrt(din)
        w = jax.random.uniform(k1, (din, dout), jnp.float32, -bound, bound)
        b = jax.random.uniform(k2, (1, dout), jnp.float32, -bound, bound)
        params.append((w, b))
    return params


# ------------------------- main -------------------------

if __name__ == "__main__":
    key = jax.random.PRNGKey(0)
    B, N, C = 2, 64, 4          # 2 clouds, 64 points each, 4 input features
    ratio, r = 0.5, 0.4

    kx, kp, kw = jax.random.split(key, 3)
    pos = jax.random.uniform(kp, (B * N, 3), jnp.float32)
    x = jax.random.normal(kx, (B * N, C), jnp.float32)
    batch = jnp.repeat(jnp.arange(B, dtype=jnp.int32), N)

    params = init_mlp(kw, [C + 3, 32, 32, 64])          # MLP([Cin+3, 32, 32, 64])

    x_out, pos_out, batch_out = set_abstraction(
        x, pos, batch, ratio=ratio, r=r, params=params,
        num_clouds=B, points_per_cloud=N, max_neighbors=64)

    jax.block_until_ready((x_out, pos_out, batch_out))
    S = int(math.ceil(ratio * N))
    assert x_out.shape == (B * S, 64)
    assert pos_out.shape == (B * S, 3)
    assert batch_out.shape == (B * S,)
    print("KERNEL_OK")
</pallas_src>

<mosaic_0001>
module attributes {stable_mosaic.version = 11 : i64} {
  func.func @pointconv_kernel(%arg0: i32, %arg1: i32, %arg2: memref<32x32x8xbf16, #tpu.memory_space<vmem>>, %arg3: memref<8x32xbf16, #tpu.memory_space<vmem>>, %arg4: memref<1x32xf32, #tpu.memory_space<vmem>>, %arg5: memref<32x32xbf16, #tpu.memory_space<vmem>>, %arg6: memref<1x32xf32, #tpu.memory_space<vmem>>, %arg7: memref<32x128xbf16, #tpu.memory_space<vmem>>, %arg8: memref<1x128xf32, #tpu.memory_space<vmem>>, %arg9: memref<32x128xf32, #tpu.memory_space<vmem>>) attributes {dimension_semantics = [#tpu.dimension_semantics<parallel>, #tpu.dimension_semantics<arbitrary>], iteration_bounds = array<i64: 2, 2>, scalar_prefetch = 0 : i64, scratch_operands = 0 : i64, tpu.core_type = #tpu.core_type<tc>, window_params = [{transform_indices = @transform_0, window_bounds = array<i64: 32, 32, 8>}, {pipeline_mode = #tpu.pipeline_mode<synchronous>, transform_indices = @transform_1, window_bounds = array<i64: 8, 32>}, {pipeline_mode = #tpu.pipeline_mode<synchronous>, transform_indices = @transform_2, window_bounds = array<i64: 1, 32>}, {pipeline_mode = #tpu.pipeline_mode<synchronous>, transform_indices = @transform_3, window_bounds = array<i64: 32, 32>}, {pipeline_mode = #tpu.pipeline_mode<synchronous>, transform_indices = @transform_4, window_bounds = array<i64: 1, 32>}, {pipeline_mode = #tpu.pipeline_mode<synchronous>, transform_indices = @transform_5, window_bounds = array<i64: 32, 128>}, {pipeline_mode = #tpu.pipeline_mode<synchronous>, transform_indices = @transform_6, window_bounds = array<i64: 1, 128>}, {transform_indices = @transform_7, window_bounds = array<i64: 32, 128>}]} {
    %c0_i32 = arith.constant 0 : i32
    %0 = arith.cmpi eq, %arg1, %c0_i32 : i32
    %1 = arith.extui %0 : i1 to i32
    %c0_i32_0 = arith.constant 0 : i32
    %2 = arith.cmpi ne, %1, %c0_i32_0 : i32
    scf.if %2 {
      %cst_25 = arith.constant 0.000000e+00 : f32
      %37 = vector.broadcast %cst_25 : f32 to vector<32x128xf32>
      %c0_26 = arith.constant 0 : index
      %c0_27 = arith.constant 0 : index
      %38 = vector.load %arg9[%c0_26, %c0_27] : memref<32x128xf32, #tpu.memory_space<vmem>>, vector<32x128xf32>
      tpu.vector_store %arg9[%c0_26, %c0_27], %37 {strides = array<i32>} : memref<32x128xf32, #tpu.memory_space<vmem>>, vector<32x128xf32>,
    } else {
    }
    %c0 = arith.constant 0 : index
    %c0_1 = arith.constant 0 : index
    %c0_2 = arith.constant 0 : index
    %3 = vector.load %arg2[%c0, %c0_1, %c0_2] : memref<32x32x8xbf16, #tpu.memory_space<vmem>>, vector<32x32x8xbf16>
    %4 = vector.shape_cast %3 : vector<32x32x8xbf16> to vector<1024x8xbf16>
    %c0_3 = arith.constant 0 : index
    %c0_4 = arith.constant 0 : index
    %5 = vector.load %arg3[%c0_3, %c0_4] : memref<8x32xbf16, #tpu.memory_space<vmem>>, vector<8x32xbf16>
    %cst = arith.constant dense<0.000000e+00> : vector<1024x32xf32>
    %6 = tpu.matmul %4, %5, %cst {dimension_numbers = #tpu.dot_dimension_numbers<[1], [0], [0], [1], [0, 0, 1, 1], [], []>} : vector<1024x8xbf16>, vector<8x32xbf16>, vector<1024x32xf32> -> vector<1024x32xf32>
    %c0_5 = arith.constant 0 : index
    %c0_6 = arith.constant 0 : index
    %7 = vector.load %arg4[%c0_5, %c0_6] : memref<1x32xf32, #tpu.memory_space<vmem>>, vector<1x32xf32>
    %8 = vector.broadcast %7 : vector<1x32xf32> to vector<1024x32xf32>
    %9 = arith.addf %6, %8 : vector<1024x32xf32>
    %cst_7 = arith.constant 0.000000e+00 : f32
    %10 = vector.broadcast %cst_7 : f32 to vector<1024x32xf32>
    %11 = arith.maximumf %9, %10 : vector<1024x32xf32>
    %12 = arith.truncf %11 : vector<1024x32xf32> to vector<1024x32xbf16>
    %c0_8 = arith.constant 0 : index
    %c0_9 = arith.constant 0 : index
    %13 = vector.load %arg5[%c0_8, %c0_9] : memref<32x32xbf16, #tpu.memory_space<vmem>>, vector<32x32xbf16>
    %cst_10 = arith.constant dense<0.000000e+00> : vector<1024x32xf32>
    %14 = tpu.matmul %12, %13, %cst_10 {dimension_numbers = #tpu.dot_dimension_numbers<[1], [0], [0], [1], [0, 0, 1, 1], [], []>} : vector<1024x32xbf16>, vector<32x32xbf16>, vector<1024x32xf32> -> vector<1024x32xf32>
    %c0_11 = arith.constant 0 : index
    %c0_12 = arith.constant 0 : index
    %15 = vector.load %arg6[%c0_11, %c0_12] : memref<1x32xf32, #tpu.memory_space<vmem>>, vector<1x32xf32>
    %16 = vector.broadcast %15 : vector<1x32xf32> to vector<1024x32xf32>
    %17 = arith.addf %14, %16 : vector<1024x32xf32>
    %cst_13 = arith.constant 0.000000e+00 : f32
    %18 = vector.broadcast %cst_13 : f32 to vector<1024x32xf32>
    %19 = arith.maximumf %17, %18 : vector<1024x32xf32>
    %20 = arith.truncf %19 : vector<1024x32xf32> to vector<1024x32xbf16>
    %c0_14 = arith.constant 0 : index
    %c0_15 = arith.constant 0 : index
    %21 = vector.load %arg7[%c0_14, %c0_15] : memref<32x128xbf16, #tpu.memory_space<vmem>>, vector<32x128xbf16>
    %cst_16 = arith.constant dense<0.000000e+00> : vector<1024x128xf32>
    %22 = tpu.matmul %20, %21, %cst_16 {dimension_numbers = #tpu.dot_dimension_numbers<[1], [0], [0], [1], [0, 0, 1, 1], [], []>} : vector<1024x32xbf16>, vector<32x128xbf16>, vector<1024x128xf32> -> vector<1024x128xf32>
    %c0_17 = arith.constant 0 : index
    %c0_18 = arith.constant 0 : index
    %23 = vector.load %arg8[%c0_17, %c0_18] : memref<1x128xf32, #tpu.memory_space<vmem>>, vector<1x128xf32>
    %24 = vector.broadcast %23 : vector<1x128xf32> to vector<1024x128xf32>
    %25 = arith.addf %22, %24 : vector<1024x128xf32>
    %cst_19 = arith.constant 0.000000e+00 : f32
    %26 = vector.broadcast %cst_19 : f32 to vector<1024x128xf32>
    %27 = arith.maximumf %25, %26 : vector<1024x128xf32>
    %28 = vector.extract_strided_slice %4 {offsets = [0, 7], sizes = [1024, 1], strides = [1, 1]} : vector<1024x8xbf16> to vector<1024x1xbf16>
    %29 = arith.extf %28 : vector<1024x1xbf16> to vector<1024x1xf32>
    %30 = vector.broadcast %29 : vector<1024x1xf32> to vector<1024x128xf32>
    %31 = arith.mulf %27, %30 : vector<1024x128xf32>
    %32 = vector.shape_cast %31 : vector<1024x128xf32> to vector<32x32x128xf32>
    %c0_20 = arith.constant 0 : index
    %c0_21 = arith.constant 0 : index
    %33 = vector.load %arg9[%c0_20, %c0_21] : memref<32x128xf32, #tpu.memory_space<vmem>>, vector<32x128xf32>
    %cst_22 = arith.constant dense<0xFF800000> : vector<32x128xf32>
    %34 = vector.multi_reduction <maximumf>, %32, %cst_22 [1] : vector<32x32x128xf32> to vector<32x128xf32>
    %35 = arith.maximumf %33, %34 : vector<32x128xf32>
    %c0_23 = arith.constant 0 : index
    %c0_24 = arith.constant 0 : index
    %36 = vector.load %arg9[%c0_23, %c0_24] : memref<32x128xf32, #tpu.memory_space<vmem>>, vector<32x128xf32>
    tpu.vector_store %arg9[%c0_23, %c0_24], %35 {strides = array<i32>} : memref<32x128xf32, #tpu.memory_space<vmem>>, vector<32x128xf32>,
    return
  }
  func.func @transform_0(%arg0: i32, %arg1: i32) -> (i32, i32, i32) {
    %c0_i32 = arith.constant 0 : i32
    %c0_i32_0 = arith.constant 0 : i32
    return %arg0, %arg1, %c0_i32 : i32, i32, i32
  }
  func.func @transform_1(%arg0: i32, %arg1: i32) -> (i32, i32) {
    %c0_i32 = arith.constant 0 : i32
    %c0_i32_0 = arith.constant 0 : i32
    %c0_i32_1 = arith.constant 0 : i32
    return %c0_i32, %c0_i32_0 : i32, i32
  }
  func.func @transform_2(%arg0: i32, %arg1: i32) -> (i32, i32) {
    %c0_i32 = arith.constant 0 : i32
    %c0_i32_0 = arith.constant 0 : i32
    %c0_i32_1 = arith.constant 0 : i32
    return %c0_i32, %c0_i32_0 : i32, i32
  }
  func.func @transform_3(%arg0: i32, %arg1: i32) -> (i32, i32) {
    %c0_i32 = arith.constant 0 : i32
    %c0_i32_0 = arith.constant 0 : i32
    %c0_i32_1 = arith.constant 0 : i32
    return %c0_i32, %c0_i32_0 : i32, i32
  }
  func.func @transform_4(%arg0: i32, %arg1: i32) -> (i32, i32) {
    %c0_i32 = arith.constant 0 : i32
    %c0_i32_0 = arith.constant 0 : i32
    %c0_i32_1 = arith.constant 0 : i32
    return %c0_i32, %c0_i32_0 : i32, i32
  }
  func.func @transform_5(%arg0: i32, %arg1: i32) -> (i32, i32) {
    %c0_i32 = arith.constant 0 : i32
    %c0_i32_0 = arith.constant 0 : i32
    %c0_i32_1 = arith.constant 0 : i32
    return %c0_i32, %c0_i32_0 : i32, i32
  }
  func.func @transform_6(%arg0: i32, %arg1: i32) -> (i32, i32) {
    %c0_i32 = arith.constant 0 : i32
    %c0_i32_0 = arith.constant 0 : i32
    %c0_i32_1 = arith.constant 0 : i32
    return %c0_i32, %c0_i32_0 : i32, i32
  }
  func.func @transform_7(%arg0: i32, %arg1: i32) -> (i32, i32) {
    %c0_i32 = arith.constant 0 : i32
    %c0_i32_0 = arith.constant 0 : i32
    return %arg0, %c0_i32 : i32, i32
  }
}

</mosaic_0001>

<bundles_post_ra>
// kernel: tpu_custom_call.1
= control target key start
LH: loop header
LB: loop body
LE: loop exit
PB: predicated region body
PF: predicated region fallthrough
CT: control target
= control target key end

     0   :  { %12 = vsyncpa [#allocation4], 0  ;;  %s8357_s0 = inlined_call_operand.vmem [shape: bf16[64,64,8], index: 0, kind: input, shape index: {}]   ;;  %s8358_s1 = inlined_call_operand.vmem [shape: bf16[8,32], index: 1, kind: input, shape index: {}]   ;;  %s8359_s2 = inlined_call_operand.vmem [shape: f32[1,32], index: 2, kind: input, shape index: {}]   ;;  %s8360_s3 = inlined_call_operand.vmem [shape: bf16[32,32], index: 3, kind: input, shape index: {}]   ;;  %s8361_s4 = inlined_call_operand.vmem [shape: f32[1,32], index: 4, kind: input, shape index: {}]   ;;  %s8362_s5 = inlined_call_operand.vmem [shape: bf16[32,128], index: 5, kind: input, shape index: {}]   ;;  %s8363_s6 = inlined_call_operand.vmem [shape: f32[1,128], index: 6, kind: input, shape index: {}]   ;;  %s8364_s7 = inlined_call_operand.hbm [shape: f32[64,128], index: 7, kind: output, shape index: {}]  }
   0x1   :  { %14 = vsyncpa [#allocation4 + $0x1], 0  ;;  %s7097_s24 = smov 0   ;;  %s7099_s25 = smov 0  }
   0x2   :  { %s7101_s26 = smov 0   ;;  %s7103_s27 = smov 0  }
   0x3   :  { %s7105_s28 = smov 0   ;;  %s7107_s29 = smov 0  }
   0x4   :  { %s7109_s30 = smov 0   ;;  %s7111_s8 = smov 0  }
   0x5   :  { %s7113_s9 = smov 0   ;;  %s7115_s10 = smov 0  }
   0x6 LB: > { %s5450_s11 = sadd.s32 4294967295, %s7050_s10   ;;  %s5451_s12 = sadd.s32 4294967294, %s7050_s10   ;;  %s7050_s10 = sphi %s7115_s10, %s20_s10   ;;  %s7046_s9 = sphi %s7113_s9, %s8385_s9   ;;  %s7042_s8 = sphi %s7111_s8, %s8384_s8   ;;  %s7038_s30 = sphi %s7109_s30, %s8383_s30   ;;  %s7034_s29 = sphi %s7107_s29, %s8382_s29   ;;  %s7030_s28 = sphi %s7105_s28, %s8381_s28   ;;  %s7026_s27 = sphi %s7103_s27, %s8380_s27   ;;  %s7022_s26 = sphi %s7101_s26, %s8379_s26   ;;  %s7018_s25 = sphi %s7099_s25, %s8378_s25   ;;  %s7014_s24 = sphi %s7097_s24, %s8377_s24  }
   0x7   : > { %s29_s13 = sadd.s32 1, %s7042_s8  ;;  %s32_s14 = sadd.s32 1, %s7046_s9 }
   0x8   : > { %p30_p0 = scmp.ge.s32.totalorder %s29_s13, 2  ;;  %s41_s15 = sadd.s32 1, %s7030_s28 }
   0x9   : > { %p48_p1 = scmp.ne.s32.totalorder %s7030_s28, %s7026_s27  ;;  %p49_p2 = scmp.eq.s32.totalorder %s7050_s10, 0 }
   0xa   : > { %s8387_s13 = smov (%p30_p0, %s29_s13), 0  ;;  %s8389_s14 = smov (!%p30_p0, %s32_s14), %s7046_s9 }
   0xb   : > { %8368 = sst [smem:[#allocation6_spill]] %s8387_s13  ;;  %s37_s16 = ssub.s32 %s7042_s8, %s8387_s13 }
   0xc   : > { %p7160_p3 = por %p49_p2, %p48_p1  ;;  %p34_p4 = scmp.ge.s32.totalorder %s8389_s14, 2 }
   0xd   : > { %s193_s18 = sadd.s32 1, %s7022_s26  ;;  %p203_p5 = scmp.ne.s32.totalorder %s7022_s26, %s7018_s25 }
   0xe   : > { %p204_p6 = scmp.eq.s32.totalorder %s5450_s11, 3  ;;  %s8391_s14 = smov (%p34_p4, %s8389_s14), 0 }
   0xf   : > { %8370 = sst [smem:[#allocation7_spill]] %s8391_s14  ;;  %p209_p8 = scmp.ne.s32.totalorder %s7018_s25, %s7014_s24 }
  0x10   : > { %p7169_p7 = por %p204_p6, %p203_p5  ;;  %s36_s20 = ssub.s32 %s7046_s9, %s8391_s14 }
  0x11   : > { %p210_p9 = scmp.eq.s32.totalorder %s5451_s12, 3  ;;  %s38_s21 = sor.u32 %s37_s16, %s36_s20 }
  0x12   : > { %p191_p10 = scmp.eq.s32.totalorder %s36_s20, 0  ;;  %p39_p11 = scmp.eq.s32.totalorder %s38_s21, 0 }
  0x13   : > { %p7177_p12 = por %p210_p9, %p209_p8  ;;  %p5453_p13 = scmp.ge.s32.totalorder %s7050_s10, 4 }
  0x14   : > { %s7182_s23 = scalar_select %p191_p10, %s7022_s26, %s193_s18  }
  0x15   : > { %s8372_s22 = scalar_select %p7177_p12, 1, 0 }
  0x16   : > { %s7185_s11 = scalar_select %p39_p11, %s7030_s28, %s41_s15  }
  0x17   : > { %8373 = sst [smem:[#allocation8_spill]] %s8372_s22  ;;  %244 = sbr.rel (%p5453_p13) target bundleno = 69 (0x45), region = 40 }
  0x1e   : > { %247 = sbr.rel (!%p7160_p3) target bundleno = 69 (0x45), region = 44  ;;  %s249_s12 = sand.u32 (%p7160_p3), 1, %s7030_s28  }
  0x1f   : > { %s5456_s16 = sshll.u32 (%p7160_p3), %s7042_s8, 2  ;;  %s5454_s20 = sshll.u32 (%p7160_p3), %s249_s12, 9 }
  0x20   : > { %s5731_s21 = sshll.u32 (%p7160_p3), %s7046_s9, 8  ;;  %s7201_s17 = scalar_lea.vmem (%p7160_p3), [#allocation2], %s5454_s20 }
  0x21   : > { %s255_s14 = sadd.s32 (%p7160_p3), %s5731_s21, %s5456_s16 }
  0x22   : > { %s5458_s13 = sshll.u32 (%p7160_p3), %s255_s14, 2 }
  0x23   : > { %s7196_s15 = scalar_lea.vmem (%p7160_p3), %s8357_s0, %s5458_s13 }
  0x24   : > { %v273_v0 = vld [vmem:[%s7196_s15] sm:$0xff] (%p7160_p3)   ;;  %v277_v1 = vld [vmem:[%s7196_s15 + $0x8] sm:$0xff] (%p7160_p3)  }
  0x25   : > { %v281_v2 = vld [vmem:[%s7196_s15 + $0x20] sm:$0xff]   ;;  %274 = vst [vmem:[%s7201_s17] sm:$0xff] %v273_v0   ;;  %278 = vst [vmem:[%s7201_s17 + $0x8] sm:$0xff] %v277_v1   ;;  %v285_v3 = vld [vmem:[%s7196_s15 + $0x28] sm:$0xff]  }
  0x26   : > { %282 = vst [vmem:[%s7201_s17 + $0x10] sm:$0xff] %v281_v2   ;;  %v289_v4 = vld [vmem:[%s7196_s15 + $0x40] sm:$0xff]   ;;  %v293_v5 = vld [vmem:[%s7196_s15 + $0x48] sm:$0xff]   ;;  %286 = vst [vmem:[%s7201_s17 + $0x18] sm:$0xff] %v285_v3  }
  0x27   : > { %290 = vst [vmem:[%s7201_s17 + $0x20] sm:$0xff] %v289_v4   ;;  %294 = vst [vmem:[%s7201_s17 + $0x28] sm:$0xff] %v293_v5   ;;  %v297_v6 = vld [vmem:[%s7196_s15 + $0x60] sm:$0xff]   ;;  %v301_v7 = vld [vmem:[%s7196_s15 + $0x68] sm:$0xff]  }
  0x28   : > { %v305_v8 = vld [vmem:[%s7196_s15 + $0x80] sm:$0xff]   ;;  %298 = vst [vmem:[%s7201_s17 + $0x30] sm:$0xff] %v297_v6   ;;  %302 = vst [vmem:[%s7201_s17 + $0x38] sm:$0xff] %v301_v7   ;;  %v309_v9 = vld [vmem:[%s7196_s15 + $0x88] sm:$0xff]  }
  0x29   : > { %306 = vst [vmem:[%s7201_s17 + $0x40] sm:$0xff] %v305_v8   ;;  %v313_v10 = vld [vmem:[%s7196_s15 + $0xa0] sm:$0xff]   ;;  %v317_v11 = vld [vmem:[%s7196_s15 + $0xa8] sm:$0xff]   ;;  %310 = vst [vmem:[%s7201_s17 + $0x48] sm:$0xff] %v309_v9  }
  0x2a   : > { %314 = vst [vmem:[%s7201_s17 + $0x50] sm:$0xff] %v313_v10   ;;  %318 = vst [vmem:[%s7201_s17 + $0x58] sm:$0xff] %v317_v11   ;;  %v321_v12 = vld [vmem:[%s7196_s15 + $0xc0] sm:$0xff]   ;;  %v325_v13 = vld [vmem:[%s7196_s15 + $0xc8] sm:$0xff]  }
  0x2b   : > { %v329_v14 = vld [vmem:[%s7196_s15 + $0xe0] sm:$0xff]   ;;  %322 = vst [vmem:[%s7201_s17 + $0x60] sm:$0xff] %v321_v12   ;;  %326 = vst [vmem:[%s7201_s17 + $0x68] sm:$0xff] %v325_v13   ;;  %v333_v15 = vld [vmem:[%s7196_s15 + $0xe8] sm:$0xff]  }
  0x2c   : > { %330 = vst [vmem:[%s7201_s17 + $0x70] sm:$0xff] %v329_v14   ;;  %v337_v16 = vld [vmem:[%s7196_s15 + $0x100] sm:$0xff]   ;;  %v341_v17 = vld [vmem:[%s7196_s15 + $0x108] sm:$0xff]   ;;  %334 = vst [vmem:[%s7201_s17 + $0x78] sm:$0xff] %v333_v15  }
  0x2d   : > { %338 = vst [vmem:[%s7201_s17 + $0x80] sm:$0xff] %v337_v16   ;;  %342 = vst [vmem:[%s7201_s17 + $0x88] sm:$0xff] %v341_v17   ;;  %v345_v18 = vld [vmem:[%s7196_s15 + $0x120] sm:$0xff]   ;;  %v349_v19 = vld [vmem:[%s7196_s15 + $0x128] sm:$0xff]  }
  0x2e   : > { %v353_v20 = vld [vmem:[%s7196_s15 + $0x140] sm:$0xff]   ;;  %346 = vst [vmem:[%s7201_s17 + $0x90] sm:$0xff] %v345_v18   ;;  %350 = vst [vmem:[%s7201_s17 + $0x98] sm:$0xff] %v349_v19   ;;  %v357_v21 = vld [vmem:[%s7196_s15 + $0x148] sm:$0xff]  }
  0x2f   : > { %354 = vst [vmem:[%s7201_s17 + $0xa0] sm:$0xff] %v353_v20   ;;  %v361_v22 = vld [vmem:[%s7196_s15 + $0x160] sm:$0xff]   ;;  %v365_v23 = vld [vmem:[%s7196_s15 + $0x168] sm:$0xff]   ;;  %358 = vst [vmem:[%s7201_s17 + $0xa8] sm:$0xff] %v357_v21  }
  0x30   : > { %362 = vst [vmem:[%s7201_s17 + $0xb0] sm:$0xff] %v361_v22   ;;  %366 = vst [vmem:[%s7201_s17 + $0xb8] sm:$0xff] %v365_v23   ;;  %v369_v24 = vld [vmem:[%s7196_s15 + $0x180] sm:$0xff]   ;;  %v373_v25 = vld [vmem:[%s7196_s15 + $0x188] sm:$0xff]  }
  0x31   : > { %v377_v26 = vld [vmem:[%s7196_s15 + $0x1a0] sm:$0xff]   ;;  %370 = vst [vmem:[%s7201_s17 + $0xc0] sm:$0xff] %v369_v24   ;;  %374 = vst [vmem:[%s7201_s17 + $0xc8] sm:$0xff] %v373_v25   ;;  %v381_v27 = vld [vmem:[%s7196_s15 + $0x1a8] sm:$0xff]  }
  0x32   : > { %378 = vst [vmem:[%s7201_s17 + $0xd0] sm:$0xff] %v377_v26   ;;  %v385_v28 = vld [vmem:[%s7196_s15 + $0x1c0] sm:$0xff]   ;;  %v389_v29 = vld [vmem:[%s7196_s15 + $0x1c8] sm:$0xff]   ;;  %382 = vst [vmem:[%s7201_s17 + $0xd8] sm:$0xff] %v381_v27  }
  0x33   : > { %386 = vst [vmem:[%s7201_s17 + $0xe0] sm:$0xff] %v385_v28   ;;  %390 = vst [vmem:[%s7201_s17 + $0xe8] sm:$0xff] %v389_v29   ;;  %v393_v30 = vld [vmem:[%s7196_s15 + $0x1e0] sm:$0xff]   ;;  %v397_v31 = vld [vmem:[%s7196_s15 + $0x1e8] sm:$0xff]  }
  0x34   : > { %v401_v32 = vld [vmem:[%s7196_s15 + $0x200] sm:$0xff]   ;;  %394 = vst [vmem:[%s7201_s17 + $0xf0] sm:$0xff] %v393_v30   ;;  %398 = vst [vmem:[%s7201_s17 + $0xf8] sm:$0xff] %v397_v31   ;;  %v405_v33 = vld [vmem:[%s7196_s15 + $0x208] sm:$0xff]  }
  0x35   : > { %402 = vst [vmem:[%s7201_s17 + $0x100] sm:$0xff] %v401_v32   ;;  %v409_v34 = vld [vmem:[%s7196_s15 + $0x220] sm:$0xff]   ;;  %v413_v35 = vld [vmem:[%s7196_s15 + $0x228] sm:$0xff]   ;;  %406 = vst [vmem:[%s7201_s17 + $0x108] sm:$0xff] %v405_v33  }
  0x36   : > { %410 = vst [vmem:[%s7201_s17 + $0x110] sm:$0xff] %v409_v34   ;;  %414 = vst [vmem:[%s7201_s17 + $0x118] sm:$0xff] %v413_v35   ;;  %v417_v36 = vld [vmem:[%s7196_s15 + $0x240] sm:$0xff]   ;;  %v421_v37 = vld [vmem:[%s7196_s15 + $0x248] sm:$0xff]  }
  0x37   : > { %v425_v38 = vld [vmem:[%s7196_s15 + $0x260] sm:$0xff]   ;;  %418 = vst [vmem:[%s7201_s17 + $0x120] sm:$0xff] %v417_v36   ;;  %422 = vst [vmem:[%s7201_s17 + $0x128] sm:$0xff] %v421_v37   ;;  %v429_v39 = vld [vmem:[%s7196_s15 + $0x268] sm:$0xff]  }
  0x38   : > { %426 = vst [vmem:[%s7201_s17 + $0x130] sm:$0xff] %v425_v38   ;;  %v433_v40 = vld [vmem:[%s7196_s15 + $0x280] sm:$0xff]   ;;  %v437_v41 = vld [vmem:[%s7196_s15 + $0x288] sm:$0xff]   ;;  %430 = vst [vmem:[%s7201_s17 + $0x138] sm:$0xff] %v429_v39  }
  0x39   : > { %434 = vst [vmem:[%s7201_s17 + $0x140] sm:$0xff] %v433_v40   ;;  %438 = vst [vmem:[%s7201_s17 + $0x148] sm:$0xff] %v437_v41   ;;  %v441_v42 = vld [vmem:[%s7196_s15 + $0x2a0] sm:$0xff]   ;;  %v445_v43 = vld [vmem:[%s7196_s15 + $0x2a8] sm:$0xff]  }
  0x3a   : > { %v449_v44 = vld [vmem:[%s7196_s15 + $0x2c0] sm:$0xff]   ;;  %442 = vst [vmem:[%s7201_s17 + $0x150] sm:$0xff] %v441_v42   ;;  %446 = vst [vmem:[%s7201_s17 + $0x158] sm:$0xff] %v445_v43   ;;  %v453_v45 = vld [vmem:[%s7196_s15 + $0x2c8] sm:$0xff]  }
  0x3b   : > { %450 = vst [vmem:[%s7201_s17 + $0x160] sm:$0xff] %v449_v44   ;;  %v457_v46 = vld [vmem:[%s7196_s15 + $0x2e0] sm:$0xff]   ;;  %v461_v47 = vld [vmem:[%s7196_s15 + $0x2e8] sm:$0xff]   ;;  %454 = vst [vmem:[%s7201_s17 + $0x168] sm:$0xff] %v453_v45  }
  0x3c   : > { %458 = vst [vmem:[%s7201_s17 + $0x170] sm:$0xff] %v457_v46   ;;  %462 = vst [vmem:[%s7201_s17 + $0x178] sm:$0xff] %v461_v47   ;;  %v465_v48 = vld [vmem:[%s7196_s15 + $0x300] sm:$0xff]   ;;  %v469_v49 = vld [vmem:[%s7196_s15 + $0x308] sm:$0xff]  }
  0x3d   : > { %v473_v50 = vld [vmem:[%s7196_s15 + $0x320] sm:$0xff]   ;;  %466 = vst [vmem:[%s7201_s17 + $0x180] sm:$0xff] %v465_v48   ;;  %470 = vst [vmem:[%s7201_s17 + $0x188] sm:$0xff] %v469_v49   ;;  %v477_v51 = vld [vmem:[%s7196_s15 + $0x328] sm:$0xff]  }
  0x3e   : > { %474 = vst [vmem:[%s7201_s17 + $0x190] sm:$0xff] %v473_v50   ;;  %v481_v52 = vld [vmem:[%s7196_s15 + $0x340] sm:$0xff]   ;;  %v485_v53 = vld [vmem:[%s7196_s15 + $0x348] sm:$0xff]   ;;  %478 = vst [vmem:[%s7201_s17 + $0x198] sm:$0xff] %v477_v51  }
  0x3f   : > { %482 = vst [vmem:[%s7201_s17 + $0x1a0] sm:$0xff] %v481_v52   ;;  %486 = vst [vmem:[%s7201_s17 + $0x1a8] sm:$0xff] %v485_v53   ;;  %v489_v54 = vld [vmem:[%s7196_s15 + $0x360] sm:$0xff]   ;;  %v493_v55 = vld [vmem:[%s7196_s15 + $0x368] sm:$0xff]  }
  0x40   : > { %v497_v56 = vld [vmem:[%s7196_s15 + $0x380] sm:$0xff]   ;;  %490 = vst [vmem:[%s7201_s17 + $0x1b0] sm:$0xff] %v489_v54   ;;  %494 = vst [vmem:[%s7201_s17 + $0x1b8] sm:$0xff] %v493_v55   ;;  %v501_v57 = vld [vmem:[%s7196_s15 + $0x388] sm:$0xff]  }
  0x41   : > { %498 = vst [vmem:[%s7201_s17 + $0x1c0] sm:$0xff] %v497_v56   ;;  %v505_v58 = vld [vmem:[%s7196_s15 + $0x3a0] sm:$0xff]   ;;  %v509_v59 = vld [vmem:[%s7196_s15 + $0x3a8] sm:$0xff]   ;;  %502 = vst [vmem:[%s7201_s17 + $0x1c8] sm:$0xff] %v501_v57  }
  0x42   : > { %506 = vst [vmem:[%s7201_s17 + $0x1d0] sm:$0xff] %v505_v58   ;;  %510 = vst [vmem:[%s7201_s17 + $0x1d8] sm:$0xff] %v509_v59   ;;  %v513_v60 = vld [vmem:[%s7196_s15 + $0x3c0] sm:$0xff]   ;;  %v517_v61 = vld [vmem:[%s7196_s15 + $0x3c8] sm:$0xff]  }
  0x43   : > { %v521_v62 = vld [vmem:[%s7196_s15 + $0x3e0] sm:$0xff]   ;;  %514 = vst [vmem:[%s7201_s17 + $0x1e0] sm:$0xff] %v513_v60   ;;  %518 = vst [vmem:[%s7201_s17 + $0x1e8] sm:$0xff] %v517_v61   ;;  %v525_v63 = vld [vmem:[%s7196_s15 + $0x3e8] sm:$0xff]  }
  0x44   : > { %522 = vst [vmem:[%s7201_s17 + $0x1f0] sm:$0xff] %v521_v62   ;;  %526 = vst [vmem:[%s7201_s17 + $0x1f8] sm:$0xff] %v525_v63  }
  0x45 PF: > { %p5459_p0 = scmp.ge.s32.totalorder %s7050_s10, 1  ;;  %p806_p1 = scmp.lt.s32.totalorder %s7050_s10, 5 }
  0x47   : > { %p807_p2 = pnand %p5459_p0, %p806_p1 }
  0x48   : > { %s813_s13 = sand.u32 (!%p807_p2), 1, %s7026_s27   ;;  %s841_s14 = sand.u32 (!%p807_p2), 1, %s7018_s25  }
  0x49   : > { %810 = sbr.rel (%p807_p2) target bundleno = 1042 (0x412), region = 85  ;;  %s5460_s22 = sshll.u32 (!%p807_p2), %s813_s13, 9 }
  0x4a   : > { %s5461_s12 = sshll.u32 (!%p807_p2), %s841_s14, 5  ;;  %s7334_s16 = scalar_lea.vmem (!%p807_p2), [#allocation2], %s5460_s22 }
  0x4b   : > { %s7336_s20 = scalar_lea.vmem (!%p807_p2), [#allocation3], %s5461_s12  ;;  %p5462_p3 = scmp.ne.s32.totalorder (!%p807_p2), %s7034_s29, 0 }
  0x50   : > { %851 = sbr.rel (%p5462_p3) target bundleno = 87 (0x57), region = 93  ;;  %v7052_v0 = vmov (!%p5462_p3), 0.0  }
  0x51   : > { %852 = vst [vmem:[%s7336_s20] sm:$0xff] (!%p5462_p3), %v7052_v0  ;;  %853 = vst [vmem:[%s7336_s20 + $0x8] sm:$0xff] (!%p5462_p3), %v7052_v0 }
  0x52   : > { %854 = vst [vmem:[%s7336_s20 + $0x10] sm:$0xff] (!%p5462_p3), %v7052_v0  ;;  %855 = vst [vmem:[%s7336_s20 + $0x18] sm:$0xff] (!%p5462_p3), %v7052_v0 }
  0x57 PF: > { %v984_v1 = vld [vmem:[%s8358_s1] sm:$0xf]  ;;  %vm1505_vm0 = vcmask 1043456   ;;  %vm1312_vm1 = vcmask 64512   ;;  %v858_v3 = vld [vmem:[%s7334_s16 + $0x8] sm:$0xff]   ;;  %v860_v5 = vld [vmem:[%s7334_s16 + $0x10] sm:$0xff]  }
  0x58   : > { %v856_v2 = vld [vmem:[%s7334_s16] sm:$0xff]   ;;  %6326 = vmatprep.subr.msk.bf16.mxu0 %vm1505_vm0, %v984_v1  ;;  %v1507_v4 = vsel %vm1505_vm0, %v984_v1, 0  ;;  %6327 = vmatprep.subr.msk.bf16.mxu1 %vm1505_vm0, %v984_v1  ;;  %v862_v6 = vld [vmem:[%s7334_s16 + $0x18] sm:$0xff]   ;;  %v922_v9 = vld [vmem:[%s7334_s16 + $0x108] sm:$0xff]   ;;  %vm2269_vm2 = vcmask 261120   ;;  %vm5307_vm3 = vcmask 1041409  }
  0x59   : > { %5931 = vmatpush3.bf16.msra.mxu0 %v1507_v4  ;;  %6325 = vmatpush3.bf16.msra.mxu1 %v1507_v4  ;;  %v864_v7 = vld [vmem:[%s7334_s16 + $0x20] sm:$0xff]   ;;  %v924_v11 = vld [vmem:[%s7334_s16 + $0x110] sm:$0xff]   ;;  %v926_v12 = vld [vmem:[%s7334_s16 + $0x118] sm:$0xff]   ;;  %vm5309_vm4 = vcmask 1042434   ;;  %vm5311_vm5 = vcmask 1043459   ;;  %vm5313_vm6 = vcmask 1044484  }
  0x5a   : > { %5932 = vmatprep.mubr.msk.bf16.mxu0 %vm1312_vm1, %v856_v2  ;;  %v920_v8 = vld [vmem:[%s7334_s16 + $0x100] sm:$0xff]   ;;  %v866_v13 = vld [vmem:[%s7334_s16 + $0x28] sm:$0xff]   ;;  %v868_v15 = vld [vmem:[%s7334_s16 + $0x30] sm:$0xff]   ;;  %vm5315_vm7 = vcmask 1045509   ;;  %vm5317_vm8 = vcmask 1046534   ;;  %vm5319_vm9 = vcmask 1047559  }
  0x5b   : > { %v6767_v10 = vld [vmem:[%s8360_s3] sm:$0xff]   ;;  %5996 = vmatprep.mubr.msk.bf16.mxu1 %vm1312_vm1, %v920_v8  ;;  %v6792_v16 = vld [vmem:[%s8360_s3 + $0x8] sm:$0xff]   ;;  %v870_v18 = vld [vmem:[%s7334_s16 + $0x38] sm:$0xff]   ;;  %s5732_s18 = sshll.u32 %s7038_s30, 9  ;;  %s5368_s15 = sshll.u32 %s7336_s20, 4  ;;  %s8294_s15 = int_to_ptr.vmem [resolvable:$true] %s5368_s15 }
  0x5c   : > { %5933 = vmatmul.mubr.msk.bf16.vlgmr.msra.gmra.mrb[0].mxu0 %vm1312_vm1, %v858_v3  ;;  %6060 = vmatprep.subr.bf16.mxu1 %v6767_v10  ;;  %v928_v14 = vld [vmem:[%s7334_s16 + $0x120] sm:$0xff]   ;;  %v930_v17 = vld [vmem:[%s7334_s16 + $0x128] sm:$0xff]   ;;  %v932_v19 = vld [vmem:[%s7334_s16 + $0x130] sm:$0xff]   ;;  %s8292_s13 = scalar_lea.hbm %s8364_s7, %s5732_s18  ;;  %s8299_s22 = scalar_lea.sflag [#allocation4], %s841_s14 }
  0x5d   : > { %5936 = vmatprep.mubr.msk.bf16.mxu0 %vm1312_vm1, %v860_v5  ;;  %5997 = vmatmul.mubr.msk.bf16.vlgmr.msra.gmra.mrb[0].mxu1 %vm1312_vm1, %v922_v9  ;;  %v872_v20 = vld [vmem:[%s7334_s16 + $0x40] sm:$0xff]   ;;  %v934_v21 = vld [vmem:[%s7334_s16 + $0x138] sm:$0xff]   ;;  %v874_v22 = vld [vmem:[%s7334_s16 + $0x48] sm:$0xff]   ;;  %s6940_s30 = scalar_lea.vmem %s8294_s15, 512  ;;  %s7054_s12 = smov [#allocation3]  }
  0x5e   : > { %6061 = vmatpush3.bf16.msra.mxu1 %v6767_v10  ;;  %6000 = vmatprep.mubr.msk.bf16.mxu1 %vm1312_vm1, %v924_v11  ;;  %v936_v23 = vld [vmem:[%s7334_s16 + $0x140] sm:$0xff]   ;;  %v876_v24 = vld [vmem:[%s7334_s16 + $0x50] sm:$0xff]   ;;  %v938_v25 = vld [vmem:[%s7334_s16 + $0x148] sm:$0xff]   ;;  %p6941_p4 = scmp.ne.s32.totalorder %s8294_s15, %s6940_s30  ;;  %s6944_s27 = sshll.u32 %s7054_s12, 4  ;;  %s6945_s27 = int_to_ptr.vmem [resolvable:$false] %s6944_s27 }
  0x5f   : > { %6062 = vmatprep.subr.bf16.mxu1 %v6792_v16  ;;  %v878_v26 = vld [vmem:[%s7334_s16 + $0x58] sm:$0xff]   ;;  %v940_v27 = vld [vmem:[%s7334_s16 + $0x150] sm:$0xff]   ;;  %v880_v28 = vld [vmem:[%s7334_s16 + $0x60] sm:$0xff]   ;;  %s6946_s21 = scalar_lea.vmem %s6945_s27, 1024  ;;  %p6947_p8 = scmp.lt.s32.totalorder %s8294_s15, %s6945_s27 }
  0x60   : > { %v942_v29 = vld [vmem:[%s7334_s16 + $0x158] sm:$0xff]   ;;  %v882_v30 = vld [vmem:[%s7334_s16 + $0x68] sm:$0xff]   ;;  %v944_v31 = vld [vmem:[%s7334_s16 + $0x160] sm:$0xff]   ;;  %p6942_p5 = pnand %p6941_p4, %p7169_p7  ;;  %p6948_p9 = scmp.lt.s32.totalorder %s6946_s21, %s6940_s30 }
  0x61   : > { %v884_v32 = vld [vmem:[%s7334_s16 + $0x70] sm:$0xff]   ;;  %v946_v33 = vld [vmem:[%s7334_s16 + $0x168] sm:$0xff]   ;;  %v886_v34 = vld [vmem:[%s7334_s16 + $0x78] sm:$0xff]  }
  0x62   : > { %6063 = vmatpush3.bf16.msra.mxu1 %v6792_v16  ;;  %v948_v35 = vld [vmem:[%s7334_s16 + $0x170] sm:$0xff]   ;;  %v888_v36 = vld [vmem:[%s7334_s16 + $0x80] sm:$0xff]   ;;  %v950_v37 = vld [vmem:[%s7334_s16 + $0x178] sm:$0xff]   ;;  %p6943_p6 = pneg %p6942_p5  ;;  %p6949_p10 = por %p6948_p9, %p6947_p8 }
  0x63   : > { %v890_v38 = vld [vmem:[%s7334_s16 + $0x88] sm:$0xff]   ;;  %v952_v39 = vld [vmem:[%s7334_s16 + $0x180] sm:$0xff]   ;;  %v892_v40 = vld [vmem:[%s7334_s16 + $0x90] sm:$0xff]  }
  0x64   : > { %5937 = vmatmul.mubr.msk.bf16.gmra.mrb[4].mxu0 %vm1312_vm1, %v862_v6  ;;  %v954_v41 = vld [vmem:[%s7334_s16 + $0x188] sm:$0xff]   ;;  %v894_v42 = vld [vmem:[%s7334_s16 + $0x98] sm:$0xff]   ;;  %v956_v43 = vld [vmem:[%s7334_s16 + $0x190] sm:$0xff]   ;;  %p6950_p11 = pnand %p6949_p10, %p6943_p6 }
  0x65   : > { %5940 = vmatprep.mubr.msk.bf16.mxu0 %vm1312_vm1, %v864_v7  ;;  %6001 = vmatmul.mubr.msk.bf16.gmra.mrb[4].mxu1 %vm1312_vm1, %v926_v12  ;;  %v896_v44 = vld [vmem:[%s7334_s16 + $0xa0] sm:$0xff]   ;;  %v958_v45 = vld [vmem:[%s7334_s16 + $0x198] sm:$0xff]   ;;  %v898_v46 = vld [vmem:[%s7334_s16 + $0xa8] sm:$0xff]  }
  0x66   : > { %6004 = vmatprep.mubr.msk.bf16.mxu1 %vm1312_vm1, %v928_v14  ;;  %v960_v47 = vld [vmem:[%s7334_s16 + $0x1a0] sm:$0xff]   ;;  %v900_v48 = vld [vmem:[%s7334_s16 + $0xb0] sm:$0xff]   ;;  %v962_v49 = vld [vmem:[%s7334_s16 + $0x1a8] sm:$0xff]  }
  0x67   : > { %v902_v50 = vld [vmem:[%s7334_s16 + $0xb8] sm:$0xff]   ;;  %v964_v51 = vld [vmem:[%s7334_s16 + $0x1b0] sm:$0xff]   ;;  %v904_v52 = vld [vmem:[%s7334_s16 + $0xc0] sm:$0xff]  }
  0x68   : > { %v966_v53 = vld [vmem:[%s7334_s16 + $0x1b8] sm:$0xff]   ;;  %v906_v54 = vld [vmem:[%s7334_s16 + $0xc8] sm:$0xff]   ;;  %v968_v55 = vld [vmem:[%s7334_s16 + $0x1c0] sm:$0xff]  }
  0x69   : > { %v908_v56 = vld [vmem:[%s7334_s16 + $0xd0] sm:$0xff]   ;;  %v970_v57 = vld [vmem:[%s7334_s16 + $0x1c8] sm:$0xff]   ;;  %v910_v58 = vld [vmem:[%s7334_s16 + $0xd8] sm:$0xff]  }
  0x6a   : > { %v972_v59 = vld [vmem:[%s7334_s16 + $0x1d0] sm:$0xff]   ;;  %v912_v60 = vld [vmem:[%s7334_s16 + $0xe0] sm:$0xff]   ;;  %v974_v61 = vld [vmem:[%s7334_s16 + $0x1d8] sm:$0xff]  }
  0x6b   : > { %v914_v62 = vld [vmem:[%s7334_s16 + $0xe8] sm:$0xff]   ;;  %v976_v63 = vld [vmem:[%s7334_s16 + $0x1e0] sm:$0xff]   ;;  %v916_v0 = vld [vmem:[%s7334_s16 + $0xf0] sm:$0xff]  }
  0x6c   : > { %5941 = vmatmul.mubr.msk.bf16.gmra.mrb[8].mxu0 %vm1312_vm1, %v866_v13  ;;  %v978_v1 = vld [vmem:[%s7334_s16 + $0x1e8] sm:$0xff]   ;;  %v918_v2 = vld [vmem:[%s7334_s16 + $0xf8] sm:$0xff]   ;;  %v980_v3 = vld [vmem:[%s7334_s16 + $0x1f0] sm:$0xff]  }
  0x6d   : > { %5944 = vmatprep.mubr.msk.bf16.mxu0 %vm1312_vm1, %v868_v15  ;;  %6005 = vmatmul.mubr.msk.bf16.gmra.mrb[8].mxu1 %vm1312_vm1, %v930_v17  ;;  %v982_v4 = vld [vmem:[%s7334_s16 + $0x1f8] sm:$0xff]   ;;  %v6807_v5 = vld [vmem:[%s8362_s5] sm:$0xff]  }
  0x6e   : > { %6008 = vmatprep.mubr.msk.bf16.mxu1 %vm1312_vm1, %v932_v19  ;;  %6192 = vmatprep.subr.bf16.mxu0 %v6807_v5  ;;  %v7486_v6 = vld [vmem:[%s8359_s2] ss:$0 sm:$0xff] }
  0x6f   : > { %6193 = vmatpush3.bf16.msra.mxu0 %v6807_v5 }
  0x74   : > { %5945 = vmatmul.mubr.msk.bf16.gmra.mrb[12].mxu0 %vm1312_vm1, %v870_v18 }
  0x75   : > { %5948 = vmatprep.mubr.msk.bf16.mxu0 %vm1312_vm1, %v872_v20  ;;  %6009 = vmatmul.mubr.msk.bf16.gmra.mrb[12].mxu1 %vm1312_vm1, %v934_v21 }
  0x76   : > { %6012 = vmatprep.mubr.msk.bf16.mxu1 %vm1312_vm1, %v936_v23 }
  0x7c   : > { %5949 = vmatmul.mubr.msk.bf16.gmra.mrb[16].mxu0 %vm1312_vm1, %v874_v22 }
  0x7d   : > { %5952 = vmatprep.mubr.msk.bf16.mxu0 %vm1312_vm1, %v876_v24  ;;  %6013 = vmatmul.mubr.msk.bf16.gmra.mrb[16].mxu1 %vm1312_vm1, %v938_v25 }
  0x7e   : > { %6016 = vmatprep.mubr.msk.bf16.mxu1 %vm1312_vm1, %v940_v27 }
  0x84   : > { %5953 = vmatmul.mubr.msk.bf16.gmra.mrb[20].mxu0 %vm1312_vm1, %v878_v26 }
  0x85   : > { %5956 = vmatprep.mubr.msk.bf16.mxu0 %vm1312_vm1, %v880_v28  ;;  %6017 = vmatmul.mubr.msk.bf16.gmra.mrb[20].mxu1 %vm1312_vm1, %v942_v29 }
  0x86   : > { %6020 = vmatprep.mubr.msk.bf16.mxu1 %vm1312_vm1, %v944_v31 }
  0x8c   : > { %5957 = vmatmul.mubr.msk.bf16.gmra.mrb[24].mxu0 %vm1312_vm1, %v882_v30 }
  0x8d   : > { %5960 = vmatprep.mubr.msk.bf16.mxu0 %vm1312_vm1, %v884_v32  ;;  %6021 = vmatmul.mubr.msk.bf16.gmra.mrb[24].mxu1 %vm1312_vm1, %v946_v33 }
  0x8e   : > { %6024 = vmatprep.mubr.msk.bf16.mxu1 %vm1312_vm1, %v948_v35 }
  0x94   : > { %5961 = vmatmul.mubr.msk.bf16.gmra.mrb[28].mxu0 %vm1312_vm1, %v886_v34 }
  0x95   : > { %5964 = vmatprep.mubr.msk.bf16.mxu0 %vm1312_vm1, %v888_v36  ;;  %6025 = vmatmul.mubr.msk.bf16.gmra.mrb[28].mxu1 %vm1312_vm1, %v950_v37 }
  0x96   : > { %6028 = vmatprep.mubr.msk.bf16.mxu1 %vm1312_vm1, %v952_v39 }
  0x9c   : > { %5965 = vmatmul.mubr.msk.bf16.gmra.mrb[32].mxu0 %vm1312_vm1, %v890_v38 }
  0x9d   : > { %5968 = vmatprep.mubr.msk.bf16.mxu0 %vm1312_vm1, %v892_v40  ;;  %6029 = vmatmul.mubr.msk.bf16.gmra.mrb[32].mxu1 %vm1312_vm1, %v954_v41 }
  0x9e   : > { %6032 = vmatprep.mubr.msk.bf16.mxu1 %vm1312_vm1, %v956_v43 }
  0xa4   : > { %5969 = vmatmul.mubr.msk.bf16.gmra.mrb[36].mxu0 %vm1312_vm1, %v894_v42 }
  0xa5   : > { %5972 = vmatprep.mubr.msk.bf16.mxu0 %vm1312_vm1, %v896_v44  ;;  %6033 = vmatmul.mubr.msk.bf16.gmra.mrb[36].mxu1 %vm1312_vm1, %v958_v45 }
  0xa6   : > { %6036 = vmatprep.mubr.msk.bf16.mxu1 %vm1312_vm1, %v960_v47 }
  0xac   : > { %5973 = vmatmul.mubr.msk.bf16.gmra.mrb[40].mxu0 %vm1312_vm1, %v898_v46 }
  0xad   : > { %5976 = vmatprep.mubr.msk.bf16.mxu0 %vm1312_vm1, %v900_v48  ;;  %6037 = vmatmul.mubr.msk.bf16.gmra.mrb[40].mxu1 %vm1312_vm1, %v962_v49 }
  0xae   : > { %6040 = vmatprep.mubr.msk.bf16.mxu1 %vm1312_vm1, %v964_v51 }
  0xb4   : > { %5977 = vmatmul.mubr.msk.bf16.gmra.mrb[44].mxu0 %vm1312_vm1, %v902_v50 }
  0xb5   : > { %5980 = vmatprep.mubr.msk.bf16.mxu0 %vm1312_vm1, %v904_v52  ;;  %6041 = vmatmul.mubr.msk.bf16.gmra.mrb[44].mxu1 %vm1312_vm1, %v966_v53 }
  0xb6   : > { %6044 = vmatprep.mubr.msk.bf16.mxu1 %vm1312_vm1, %v968_v55 }
  0xbc   : > { %5981 = vmatmul.mubr.msk.bf16.gmra.mrb[48].mxu0 %vm1312_vm1, %v906_v54 }
  0xbd   : > { %5984 = vmatprep.mubr.msk.bf16.mxu0 %vm1312_vm1, %v908_v56  ;;  %6045 = vmatmul.mubr.msk.bf16.gmra.mrb[48].mxu1 %vm1312_vm1, %v970_v57 }
  0xbe   : > { %6048 = vmatprep.mubr.msk.bf16.mxu1 %vm1312_vm1, %v972_v59 }
  0xc4   : > { %5985 = vmatmul.mubr.msk.bf16.gmra.mrb[52].mxu0 %vm1312_vm1, %v910_v58 }
  0xc5   : > { %5988 = vmatprep.mubr.msk.bf16.mxu0 %vm1312_vm1, %v912_v60  ;;  %6049 = vmatmul.mubr.msk.bf16.gmra.mrb[52].mxu1 %vm1312_vm1, %v974_v61 }
  0xc6   : > { %6052 = vmatprep.mubr.msk.bf16.mxu1 %vm1312_vm1, %v976_v63 }
  0xcc   : > { %5989 = vmatmul.mubr.msk.bf16.gmra.mrb[56].mxu0 %vm1312_vm1, %v914_v62 }
  0xcd   : > { %5992 = vmatprep.mubr.msk.bf16.mxu0 %vm1312_vm1, %v916_v0  ;;  %6053 = vmatmul.mubr.msk.bf16.gmra.mrb[56].mxu1 %vm1312_vm1, %v978_v1 }
  0xce   : > { %6056 = vmatprep.mubr.msk.bf16.mxu1 %vm1312_vm1, %v980_v3 }
  0xd4   : > { %5993 = vmatmul.mubr.msk.bf16.gmra.mrb[60].mxu0 %vm1312_vm1, %v918_v2 }
  0xd5   : > { %6057 = vmatmul.mubr.msk.bf16.gmra.mrb[60].mxu1 %vm1312_vm1, %v982_v4 }
 0x12f   : > { %v5934_v7 = vpop.f32.mrb[0].mxu0 }
 0x130   : > { %v1552_v8 = vadd.f32 %v5934_v7, %v7486_v6  ;;  %v1543_v9 = vpop.f32.mrb[1].mxu0  ;;  %v5998_v20 = vpop.f32.mrb[0].mxu1 }
 0x131   : > { %v1544_v10 = vadd.f32 %v7486_v6, %v1543_v9  ;;  %v5935_v11 = vpop.f32.mrb[2].mxu0  ;;  %v1808_v23 = vadd.f32 %v5998_v20, %v7486_v6  ;;  %v1799_v24 = vpop.f32.mrb[1].mxu1 }
 0x132   : > { %v1555_v12 = vadd.f32 %v5935_v11, %v7486_v6  ;;  %v1546_v13 = vpop.f32.mrb[3].mxu0  ;;  %v2056_v15 = vmax.f32 %v1552_v8, 0.0  ;;  %v1800_v27 = vadd.f32 %v7486_v6, %v1799_v24  ;;  %v5999_v28 = vpop.f32.mrb[2].mxu1 }
 0x133   : > { %v1547_v14 = vadd.f32 %v7486_v6, %v1546_v13  ;;  %v2054_v17 = vmax.f32 %v1544_v10, 0.0  ;;  %v2120_v31 = vmax.f32 %v1808_v23, 0.0  ;;  %v1811_v32 = vadd.f32 %v5999_v28, %v7486_v6  ;;  %v1802_v33 = vpop.f32.mrb[3].mxu1 }
 0x134   : > { %v2057_v16 = vmax.f32 %v1555_v12, 0.0  ;;  %v2118_v36 = vmax.f32 %v1800_v27, 0.0  ;;  %v1803_v37 = vadd.f32 %v7486_v6, %v1802_v33 }
 0x135   : > { %v2055_v18 = vmax.f32 %v1547_v14, 0.0  ;;  %v2121_v39 = vmax.f32 %v1811_v32, 0.0 }
 0x136   : > { %v2183_v19 = vpack.c.bf16 %v2057_v16, %v2056_v15  ;;  %v2119_v42 = vmax.f32 %v1803_v37, 0.0 }
 0x137   : > { %v2182_v21 = vpack.c.bf16 %v2055_v18, %v2054_v17  ;;  %v5938_v22 = vpop.f32.mrb[4].mxu0  ;;  %v7502_v45 = vpack.c.bf16 %v2121_v39, %v2120_v31 }
 0x138   : > { %v1568_v25 = vadd.f32 %v5938_v22, %v7486_v6  ;;  %v1559_v26 = vpop.f32.mrb[5].mxu0  ;;  %v7504_v47 = vpack.c.bf16 %v2119_v42, %v2118_v36  ;;  %v6002_v48 = vpop.f32.mrb[4].mxu1 }
 0x139   : > { %v1560_v29 = vadd.f32 %v7486_v6, %v1559_v26  ;;  %v5939_v30 = vpop.f32.mrb[6].mxu0  ;;  %6064 = vmatprep.mubr.msk.bf16.mxu1 %vm2269_vm2, %v2182_v21  ;;  %v1824_v51 = vadd.f32 %v6002_v48, %v7486_v6  ;;  %v1815_v52 = vpop.f32.mrb[5].mxu1 }
 0x13a   : > { %v1571_v34 = vadd.f32 %v5939_v30, %v7486_v6  ;;  %v1562_v35 = vpop.f32.mrb[7].mxu0  ;;  %6065 = vmatmul.mubr.msk.bf16.vlgmr.msra.gmra.mrb[64].mxu1 %vm2269_vm2, %v2183_v19  ;;  %v2060_v40 = vmax.f32 %v1568_v25, 0.0  ;;  %v1816_v55 = vadd.f32 %v7486_v6, %v1815_v52  ;;  %v6003_v56 = vpop.f32.mrb[6].mxu1 }
 0x13b   : > { %v1563_v38 = vadd.f32 %v7486_v6, %v1562_v35  ;;  %v2058_v43 = vmax.f32 %v1560_v29, 0.0  ;;  %v2124_v59 = vmax.f32 %v1824_v51, 0.0  ;;  %v1827_v60 = vadd.f32 %v6003_v56, %v7486_v6  ;;  %v1818_v61 = vpop.f32.mrb[7].mxu1 }
 0x13c   : > { %v2061_v41 = vmax.f32 %v1571_v34, 0.0  ;;  %v2122_v0 = vmax.f32 %v1816_v55, 0.0  ;;  %v1819_v1 = vadd.f32 %v7486_v6, %v1818_v61 }
 0x13d   : > { %v2059_v44 = vmax.f32 %v1563_v38, 0.0  ;;  %v2125_v3 = vmax.f32 %v1827_v60, 0.0 }
 0x13e   : > { %v2185_v46 = vpack.c.bf16 %v2061_v41, %v2060_v40  ;;  %v2123_v7 = vmax.f32 %v1819_v1, 0.0 }
 0x13f   : > { %v2184_v49 = vpack.c.bf16 %v2059_v44, %v2058_v43  ;;  %v5942_v50 = vpop.f32.mrb[8].mxu0  ;;  %v7516_v10 = vpack.c.bf16 %v2125_v3, %v2124_v59 }
 0x140   : > { %v1584_v53 = vadd.f32 %v5942_v50, %v7486_v6  ;;  %v1575_v54 = vpop.f32.mrb[9].mxu0  ;;  %v7518_v12 = vpack.c.bf16 %v2123_v7, %v2122_v0  ;;  %v6006_v13 = vpop.f32.mrb[8].mxu1 }
 0x141   : > { %v1576_v57 = vadd.f32 %v7486_v6, %v1575_v54  ;;  %v5943_v58 = vpop.f32.mrb[10].mxu0  ;;  %6068 = vmatprep.mubr.msk.bf16.mxu1 %vm2269_vm2, %v2184_v49  ;;  %v1840_v16 = vadd.f32 %v6006_v13, %v7486_v6  ;;  %v1831_v17 = vpop.f32.mrb[9].mxu1 }
 0x142   : > { %v1587_v62 = vadd.f32 %v5943_v58, %v7486_v6  ;;  %v1578_v63 = vpop.f32.mrb[11].mxu0  ;;  %6069 = vmatmul.mubr.msk.bf16.gmra.mrb[68].mxu1 %vm2269_vm2, %v2185_v46  ;;  %v2064_v4 = vmax.f32 %v1584_v53, 0.0  ;;  %v1832_v20 = vadd.f32 %v7486_v6, %v1831_v17  ;;  %v6007_v21 = vpop.f32.mrb[10].mxu1 }
 0x143   : > { %v1579_v2 = vadd.f32 %v7486_v6, %v1578_v63  ;;  %v2062_v8 = vmax.f32 %v1576_v57, 0.0  ;;  %v2128_v24 = vmax.f32 %v1840_v16, 0.0  ;;  %v1843_v25 = vadd.f32 %v6007_v21, %v7486_v6  ;;  %v1834_v26 = vpop.f32.mrb[11].mxu1  ;;  %v6808_v63 = vld [vmem:[%s8362_s5 + $0x8] sm:$0xff]  }
 0x144   : > { %v2065_v5 = vmax.f32 %v1587_v62, 0.0  ;;  %v2126_v29 = vmax.f32 %v1832_v20, 0.0  ;;  %v1835_v30 = vadd.f32 %v7486_v6, %v1834_v26  ;;  %6194 = vmatprep.subr.bf16.mxu0 %v6808_v63 }
 0x145   : > { %v2063_v9 = vmax.f32 %v1579_v2, 0.0  ;;  %v2129_v32 = vmax.f32 %v1843_v25, 0.0  ;;  %6195 = vmatpush3.bf16.msra.mxu0 %v6808_v63 }
 0x146   : > { %v2187_v11 = vpack.c.bf16 %v2065_v5, %v2064_v4  ;;  %v2127_v35 = vmax.f32 %v1835_v30, 0.0 }
 0x147   : > { %v2186_v14 = vpack.c.bf16 %v2063_v9, %v2062_v8  ;;  %v5946_v15 = vpop.f32.mrb[12].mxu0  ;;  %v7530_v38 = vpack.c.bf16 %v2129_v32, %v2128_v24 }
 0x148   : > { %v1600_v18 = vadd.f32 %v5946_v15, %v7486_v6  ;;  %v1591_v19 = vpop.f32.mrb[13].mxu0  ;;  %v7532_v40 = vpack.c.bf16 %v2127_v35, %v2126_v29  ;;  %v6010_v41 = vpop.f32.mrb[12].mxu1 }
 0x149   : > { %v1592_v22 = vadd.f32 %v7486_v6, %v1591_v19  ;;  %v5947_v23 = vpop.f32.mrb[14].mxu0  ;;  %6072 = vmatprep.mubr.msk.bf16.mxu1 %vm2269_vm2, %v2186_v14  ;;  %v1856_v44 = vadd.f32 %v6010_v41, %v7486_v6  ;;  %v1847_v46 = vpop.f32.mrb[13].mxu1 }
 0x14a   : > { %v1603_v27 = vadd.f32 %v5947_v23, %v7486_v6  ;;  %v1594_v28 = vpop.f32.mrb[15].mxu0  ;;  %6073 = vmatmul.mubr.msk.bf16.gmra.mrb[72].mxu1 %vm2269_vm2, %v2187_v11  ;;  %v2068_v33 = vmax.f32 %v1600_v18, 0.0  ;;  %v1848_v50 = vadd.f32 %v7486_v6, %v1847_v46  ;;  %v6011_v51 = vpop.f32.mrb[14].mxu1 }
 0x14b   : > { %v1595_v31 = vadd.f32 %v7486_v6, %v1594_v28  ;;  %v2066_v36 = vmax.f32 %v1592_v22, 0.0  ;;  %v2132_v54 = vmax.f32 %v1856_v44, 0.0  ;;  %v1859_v55 = vadd.f32 %v6011_v51, %v7486_v6  ;;  %v1850_v56 = vpop.f32.mrb[15].mxu1 }
 0x14c   : > { %v2069_v34 = vmax.f32 %v1603_v27, 0.0  ;;  %v2130_v59 = vmax.f32 %v1848_v50, 0.0  ;;  %v1851_v60 = vadd.f32 %v7486_v6, %v1850_v56 }
 0x14d   : > { %v2067_v37 = vmax.f32 %v1595_v31, 0.0  ;;  %v2133_v62 = vmax.f32 %v1859_v55, 0.0 }
 0x14e   : > { %v2189_v39 = vpack.c.bf16 %v2069_v34, %v2068_v33  ;;  %v2131_v2 = vmax.f32 %v1851_v60, 0.0 }
 0x14f   : > { %v2188_v42 = vpack.c.bf16 %v2067_v37, %v2066_v36  ;;  %v5950_v43 = vpop.f32.mrb[16].mxu0  ;;  %v7547_v5 = vpack.c.bf16 %v2133_v62, %v2132_v54 }
 0x150   : > { %v1616_v48 = vadd.f32 %v5950_v43, %v7486_v6  ;;  %v1607_v49 = vpop.f32.mrb[17].mxu0  ;;  %v7549_v8 = vpack.c.bf16 %v2131_v2, %v2130_v59  ;;  %v6014_v9 = vpop.f32.mrb[16].mxu1 }
 0x151   : > { %v1608_v52 = vadd.f32 %v7486_v6, %v1607_v49  ;;  %v5951_v53 = vpop.f32.mrb[18].mxu0  ;;  %6076 = vmatprep.mubr.msk.bf16.mxu1 %vm2269_vm2, %v2188_v42  ;;  %v1872_v14 = vadd.f32 %v6014_v9, %v7486_v6  ;;  %v1863_v15 = vpop.f32.mrb[17].mxu1 }
 0x152   : > { %v1619_v57 = vadd.f32 %v5951_v53, %v7486_v6  ;;  %v1610_v58 = vpop.f32.mrb[19].mxu0  ;;  %6077 = vmatmul.mubr.msk.bf16.gmra.mrb[76].mxu1 %vm2269_vm2, %v2189_v39  ;;  %v2072_v0 = vmax.f32 %v1616_v48, 0.0  ;;  %v1864_v18 = vadd.f32 %v7486_v6, %v1863_v15  ;;  %v6015_v19 = vpop.f32.mrb[18].mxu1 }
 0x153   : > { %v1611_v61 = vadd.f32 %v7486_v6, %v1610_v58  ;;  %v2070_v3 = vmax.f32 %v1608_v52, 0.0  ;;  %v2136_v22 = vmax.f32 %v1872_v14, 0.0  ;;  %v1875_v23 = vadd.f32 %v6015_v19, %v7486_v6  ;;  %v1866_v24 = vpop.f32.mrb[19].mxu1 }
 0x154   : > { %v2073_v1 = vmax.f32 %v1619_v57, 0.0  ;;  %v2134_v27 = vmax.f32 %v1864_v18, 0.0  ;;  %v1867_v28 = vadd.f32 %v7486_v6, %v1866_v24 }
 0x155   : > { %v2071_v4 = vmax.f32 %v1611_v61, 0.0  ;;  %v2137_v30 = vmax.f32 %v1875_v23, 0.0 }
 0x156   : > { %v2191_v7 = vpack.c.bf16 %v2073_v1, %v2072_v0  ;;  %v2135_v33 = vmax.f32 %v1867_v28, 0.0 }
 0x157   : > { %v2190_v11 = vpack.c.bf16 %v2071_v4, %v2070_v3  ;;  %v5954_v13 = vpop.f32.mrb[20].mxu0  ;;  %v7561_v36 = vpack.c.bf16 %v2137_v30, %v2136_v22 }
 0x158   : > { %v1632_v16 = vadd.f32 %v5954_v13, %v7486_v6  ;;  %v1623_v17 = vpop.f32.mrb[21].mxu0  ;;  %v7563_v39 = vpack.c.bf16 %v2135_v33, %v2134_v27  ;;  %v6018_v41 = vpop.f32.mrb[20].mxu1 }
 0x159   : > { %v1624_v20 = vadd.f32 %v7486_v6, %v1623_v17  ;;  %v5955_v21 = vpop.f32.mrb[22].mxu0  ;;  %6080 = vmatprep.mubr.msk.bf16.mxu1 %vm2269_vm2, %v2190_v11  ;;  %v1888_v44 = vadd.f32 %v6018_v41, %v7486_v6  ;;  %v1879_v46 = vpop.f32.mrb[21].mxu1 }
 0x15a   : > { %v1635_v25 = vadd.f32 %v5955_v21, %v7486_v6  ;;  %v1626_v26 = vpop.f32.mrb[23].mxu0  ;;  %6081 = vmatmul.mubr.msk.bf16.gmra.mrb[80].mxu1 %vm2269_vm2, %v2191_v7  ;;  %v2076_v31 = vmax.f32 %v1632_v16, 0.0  ;;  %v1880_v50 = vadd.f32 %v7486_v6, %v1879_v46  ;;  %v6019_v51 = vpop.f32.mrb[22].mxu1 }
 0x15b   : > { %v1627_v29 = vadd.f32 %v7486_v6, %v1626_v26  ;;  %v2074_v34 = vmax.f32 %v1624_v20, 0.0  ;;  %v2140_v54 = vmax.f32 %v1888_v44, 0.0  ;;  %v1891_v55 = vadd.f32 %v6019_v51, %v7486_v6  ;;  %v1882_v56 = vpop.f32.mrb[23].mxu1 }
 0x15c   : > { %v2077_v32 = vmax.f32 %v1635_v25, 0.0  ;;  %v2138_v59 = vmax.f32 %v1880_v50, 0.0  ;;  %v1883_v60 = vadd.f32 %v7486_v6, %v1882_v56 }
 0x15d   : > { %v2075_v35 = vmax.f32 %v1627_v29, 0.0  ;;  %v2141_v62 = vmax.f32 %v1891_v55, 0.0 }
 0x15e   : > { %v2193_v37 = vpack.c.bf16 %v2077_v32, %v2076_v31  ;;  %v2139_v1 = vmax.f32 %v1883_v60, 0.0 }
 0x15f   : > { %v2192_v42 = vpack.c.bf16 %v2075_v35, %v2074_v34  ;;  %v5958_v43 = vpop.f32.mrb[24].mxu0  ;;  %v7575_v4 = vpack.c.bf16 %v2141_v62, %v2140_v54 }
 0x160   : > { %v1648_v48 = vadd.f32 %v5958_v43, %v7486_v6  ;;  %v1639_v49 = vpop.f32.mrb[25].mxu0  ;;  %v7577_v9 = vpack.c.bf16 %v2139_v1, %v2138_v59  ;;  %v6022_v11 = vpop.f32.mrb[24].mxu1 }
 0x161   : > { %v1640_v52 = vadd.f32 %v7486_v6, %v1639_v49  ;;  %v5959_v53 = vpop.f32.mrb[26].mxu0  ;;  %6084 = vmatprep.mubr.msk.bf16.mxu1 %vm2269_vm2, %v2192_v42  ;;  %v1904_v15 = vadd.f32 %v6022_v11, %v7486_v6  ;;  %v1895_v16 = vpop.f32.mrb[25].mxu1 }
 0x162   : > { %v1651_v57 = vadd.f32 %v5959_v53, %v7486_v6  ;;  %v1642_v58 = vpop.f32.mrb[27].mxu0  ;;  %6085 = vmatmul.mubr.msk.bf16.gmra.mrb[84].mxu1 %vm2269_vm2, %v2193_v37  ;;  %v2080_v63 = vmax.f32 %v1648_v48, 0.0  ;;  %v1896_v19 = vadd.f32 %v7486_v6, %v1895_v16  ;;  %v6023_v20 = vpop.f32.mrb[26].mxu1 }
 0x163   : > { %v1643_v61 = vadd.f32 %v7486_v6, %v1642_v58  ;;  %v2078_v2 = vmax.f32 %v1640_v52, 0.0  ;;  %v2144_v23 = vmax.f32 %v1904_v15, 0.0  ;;  %v1907_v24 = vadd.f32 %v6023_v20, %v7486_v6  ;;  %v1898_v25 = vpop.f32.mrb[27].mxu1 }
 0x164   : > { %v2081_v0 = vmax.f32 %v1651_v57, 0.0  ;;  %v2142_v28 = vmax.f32 %v1896_v19, 0.0  ;;  %v1899_v29 = vadd.f32 %v7486_v6, %v1898_v25 }
 0x165   : > { %v2079_v3 = vmax.f32 %v1643_v61, 0.0  ;;  %v2145_v31 = vmax.f32 %v1907_v24, 0.0 }
 0x166   : > { %v2195_v7 = vpack.c.bf16 %v2081_v0, %v2080_v63  ;;  %v2143_v34 = vmax.f32 %v1899_v29, 0.0 }
 0x167   : > { %v2194_v13 = vpack.c.bf16 %v2079_v3, %v2078_v2  ;;  %v5962_v14 = vpop.f32.mrb[28].mxu0  ;;  %v7589_v41 = vpack.c.bf16 %v2145_v31, %v2144_v23 }
 0x168   : > { %v1664_v17 = vadd.f32 %v5962_v14, %v7486_v6  ;;  %v1655_v18 = vpop.f32.mrb[29].mxu0  ;;  %v7591_v43 = vpack.c.bf16 %v2143_v34, %v2142_v28  ;;  %v6026_v44 = vpop.f32.mrb[28].mxu1 }
 0x169   : > { %v1656_v21 = vadd.f32 %v7486_v6, %v1655_v18  ;;  %v5963_v22 = vpop.f32.mrb[30].mxu0  ;;  %6088 = vmatprep.mubr.msk.bf16.mxu1 %vm2269_vm2, %v2194_v13  ;;  %v1920_v49 = vadd.f32 %v6026_v44, %v7486_v6  ;;  %v1911_v50 = vpop.f32.mrb[29].mxu1 }
 0x16a   : > { %v1667_v26 = vadd.f32 %v5963_v22, %v7486_v6  ;;  %v1658_v27 = vpop.f32.mrb[31].mxu0  ;;  %6089 = vmatmul.mubr.msk.bf16.gmra.mrb[88].mxu1 %vm2269_vm2, %v2195_v7  ;;  %v2084_v32 = vmax.f32 %v1664_v17, 0.0  ;;  %v1912_v53 = vadd.f32 %v7486_v6, %v1911_v50  ;;  %v6027_v54 = vpop.f32.mrb[30].mxu1 }
 0x16b   : > { %v1659_v30 = vadd.f32 %v7486_v6, %v1658_v27  ;;  %v2082_v35 = vmax.f32 %v1656_v21, 0.0  ;;  %v2148_v57 = vmax.f32 %v1920_v49, 0.0  ;;  %v1923_v58 = vadd.f32 %v6027_v54, %v7486_v6  ;;  %v1914_v59 = vpop.f32.mrb[31].mxu1 }
 0x16c   : > { %v2085_v33 = vmax.f32 %v1667_v26, 0.0  ;;  %v2146_v62 = vmax.f32 %v1912_v53, 0.0  ;;  %v1915_v63 = vadd.f32 %v7486_v6, %v1914_v59 }
 0x16d   : > { %v2083_v37 = vmax.f32 %v1659_v30, 0.0  ;;  %v2149_v1 = vmax.f32 %v1923_v58, 0.0 }
 0x16e   : > { %v2197_v42 = vpack.c.bf16 %v2085_v33, %v2084_v32  ;;  %v2147_v7 = vmax.f32 %v1915_v63, 0.0 }
 0x16f   : > { %v2196_v46 = vpack.c.bf16 %v2083_v37, %v2082_v35  ;;  %v5966_v48 = vpop.f32.mrb[32].mxu0  ;;  %v7603_v14 = vpack.c.bf16 %v2149_v1, %v2148_v57 }
 0x170   : > { %v1680_v51 = vadd.f32 %v5966_v48, %v7486_v6  ;;  %v1671_v52 = vpop.f32.mrb[33].mxu0  ;;  %v7605_v16 = vpack.c.bf16 %v2147_v7, %v2146_v62  ;;  %v6030_v17 = vpop.f32.mrb[32].mxu1 }
 0x171   : > { %v1672_v55 = vadd.f32 %v7486_v6, %v1671_v52  ;;  %v5967_v56 = vpop.f32.mrb[34].mxu0  ;;  %6092 = vmatprep.mubr.msk.bf16.mxu1 %vm2269_vm2, %v2196_v46  ;;  %v1936_v20 = vadd.f32 %v6030_v17, %v7486_v6  ;;  %v1927_v21 = vpop.f32.mrb[33].mxu1 }
 0x172   : > { %v1683_v60 = vadd.f32 %v5967_v56, %v7486_v6  ;;  %v1674_v61 = vpop.f32.mrb[35].mxu0  ;;  %6093 = vmatmul.mubr.msk.bf16.gmra.mrb[92].mxu1 %vm2269_vm2, %v2197_v42  ;;  %v2088_v2 = vmax.f32 %v1680_v51, 0.0  ;;  %v1928_v24 = vadd.f32 %v7486_v6, %v1927_v21  ;;  %v6031_v25 = vpop.f32.mrb[34].mxu1 }
 0x173   : > { %v1675_v0 = vadd.f32 %v7486_v6, %v1674_v61  ;;  %v2086_v11 = vmax.f32 %v1672_v55, 0.0  ;;  %v2152_v28 = vmax.f32 %v1936_v20, 0.0  ;;  %v1939_v29 = vadd.f32 %v6031_v25, %v7486_v6  ;;  %v1930_v30 = vpop.f32.mrb[35].mxu1 }
 0x174   : > { %v2089_v3 = vmax.f32 %v1683_v60, 0.0  ;;  %v2150_v33 = vmax.f32 %v1928_v24, 0.0  ;;  %v1931_v34 = vadd.f32 %v7486_v6, %v1930_v30 }
 0x175   : > { %v2087_v13 = vmax.f32 %v1675_v0, 0.0  ;;  %v2153_v37 = vmax.f32 %v1939_v29, 0.0 }
 0x176   : > { %v2199_v15 = vpack.c.bf16 %v2089_v3, %v2088_v2  ;;  %v2151_v46 = vmax.f32 %v1931_v34, 0.0 }
 0x177   : > { %v2198_v18 = vpack.c.bf16 %v2087_v13, %v2086_v11  ;;  %v5970_v19 = vpop.f32.mrb[36].mxu0  ;;  %v7617_v50 = vpack.c.bf16 %v2153_v37, %v2152_v28 }
 0x178   : > { %v1696_v22 = vadd.f32 %v5970_v19, %v7486_v6  ;;  %v1687_v23 = vpop.f32.mrb[37].mxu0  ;;  %v7619_v52 = vpack.c.bf16 %v2151_v46, %v2150_v33  ;;  %v6034_v53 = vpop.f32.mrb[36].mxu1 }
 0x179   : > { %v1688_v26 = vadd.f32 %v7486_v6, %v1687_v23  ;;  %v5971_v27 = vpop.f32.mrb[38].mxu0  ;;  %6096 = vmatprep.mubr.msk.bf16.mxu1 %vm2269_vm2, %v2198_v18  ;;  %v1952_v56 = vadd.f32 %v6034_v53, %v7486_v6  ;;  %v1943_v57 = vpop.f32.mrb[37].mxu1 }
 0x17a   : > { %v1699_v31 = vadd.f32 %v5971_v27, %v7486_v6  ;;  %v1690_v32 = vpop.f32.mrb[39].mxu0  ;;  %6097 = vmatmul.mubr.msk.bf16.gmra.mrb[96].mxu1 %vm2269_vm2, %v2199_v15  ;;  %v2092_v42 = vmax.f32 %v1696_v22, 0.0  ;;  %v1944_v60 = vadd.f32 %v7486_v6, %v1943_v57  ;;  %v6035_v61 = vpop.f32.mrb[38].mxu1 }
 0x17b   : > { %v1691_v35 = vadd.f32 %v7486_v6, %v1690_v32  ;;  %v2090_v48 = vmax.f32 %v1688_v26, 0.0  ;;  %v2156_v0 = vmax.f32 %v1952_v56, 0.0  ;;  %v1955_v1 = vadd.f32 %v6035_v61, %v7486_v6  ;;  %v1946_v2 = vpop.f32.mrb[39].mxu1 }
 0x17c   : > { %v2093_v44 = vmax.f32 %v1699_v31, 0.0  ;;  %v2154_v11 = vmax.f32 %v1944_v60, 0.0  ;;  %v1947_v13 = vadd.f32 %v7486_v6, %v1946_v2 }
 0x17d   : > { %v2091_v49 = vmax.f32 %v1691_v35, 0.0  ;;  %v2157_v17 = vmax.f32 %v1955_v1, 0.0 }
 0x17e   : > { %v2201_v51 = vpack.c.bf16 %v2093_v44, %v2092_v42  ;;  %v2155_v20 = vmax.f32 %v1947_v13, 0.0 }
 0x17f   : > { %v2200_v54 = vpack.c.bf16 %v2091_v49, %v2090_v48  ;;  %v5974_v55 = vpop.f32.mrb[40].mxu0  ;;  %v7631_v23 = vpack.c.bf16 %v2157_v17, %v2156_v0 }
 0x180   : > { %v1712_v58 = vadd.f32 %v5974_v55, %v7486_v6  ;;  %v1703_v59 = vpop.f32.mrb[41].mxu0  ;;  %v7633_v25 = vpack.c.bf16 %v2155_v20, %v2154_v11  ;;  %v6038_v26 = vpop.f32.mrb[40].mxu1 }
 0x181   : > { %v1704_v62 = vadd.f32 %v7486_v6, %v1703_v59  ;;  %v5975_v63 = vpop.f32.mrb[42].mxu0  ;;  %6100 = vmatprep.mubr.msk.bf16.mxu1 %vm2269_vm2, %v2200_v54  ;;  %v1968_v29 = vadd.f32 %v6038_v26, %v7486_v6  ;;  %v1959_v30 = vpop.f32.mrb[41].mxu1 }
 0x182   : > { %v1715_v3 = vadd.f32 %v5975_v63, %v7486_v6  ;;  %v1706_v7 = vpop.f32.mrb[43].mxu0  ;;  %6101 = vmatmul.mubr.msk.bf16.gmra.mrb[100].mxu1 %vm2269_vm2, %v2201_v51  ;;  %v2096_v18 = vmax.f32 %v1712_v58, 0.0  ;;  %v1960_v33 = vadd.f32 %v7486_v6, %v1959_v30  ;;  %v6039_v34 = vpop.f32.mrb[42].mxu1 }
 0x183   : > { %v1707_v15 = vadd.f32 %v7486_v6, %v1706_v7  ;;  %v2094_v21 = vmax.f32 %v1704_v62, 0.0  ;;  %v2160_v42 = vmax.f32 %v1968_v29, 0.0  ;;  %v1971_v44 = vadd.f32 %v6039_v34, %v7486_v6  ;;  %v1962_v46 = vpop.f32.mrb[43].mxu1 }
 0x184   : > { %v2097_v19 = vmax.f32 %v1715_v3, 0.0  ;;  %v2158_v51 = vmax.f32 %v1960_v33, 0.0  ;;  %v1963_v53 = vadd.f32 %v7486_v6, %v1962_v46 }
 0x185   : > { %v2095_v22 = vmax.f32 %v1707_v15, 0.0  ;;  %v2161_v55 = vmax.f32 %v1971_v44, 0.0 }
 0x186   : > { %v2203_v24 = vpack.c.bf16 %v2097_v19, %v2096_v18  ;;  %v2159_v58 = vmax.f32 %v1963_v53, 0.0 }
 0x187   : > { %v2202_v27 = vpack.c.bf16 %v2095_v22, %v2094_v21  ;;  %v5978_v28 = vpop.f32.mrb[44].mxu0  ;;  %v7645_v61 = vpack.c.bf16 %v2161_v55, %v2160_v42 }
 0x188   : > { %v1728_v31 = vadd.f32 %v5978_v28, %v7486_v6  ;;  %v1719_v32 = vpop.f32.mrb[45].mxu0  ;;  %v7647_v63 = vpack.c.bf16 %v2159_v58, %v2158_v51  ;;  %v6042_v0 = vpop.f32.mrb[44].mxu1 }
 0x189   : > { %v1720_v35 = vadd.f32 %v7486_v6, %v1719_v32  ;;  %v5979_v37 = vpop.f32.mrb[46].mxu0  ;;  %6104 = vmatprep.mubr.msk.bf16.mxu1 %vm2269_vm2, %v2202_v27  ;;  %v1984_v3 = vadd.f32 %v6042_v0, %v7486_v6  ;;  %v1975_v7 = vpop.f32.mrb[45].mxu1 }
 0x18a   : > { %v1731_v48 = vadd.f32 %v5979_v37, %v7486_v6  ;;  %v1722_v49 = vpop.f32.mrb[47].mxu0  ;;  %6105 = vmatmul.mubr.msk.bf16.gmra.mrb[104].mxu1 %vm2269_vm2, %v2203_v24  ;;  %v2100_v56 = vmax.f32 %v1728_v31, 0.0  ;;  %v1976_v15 = vadd.f32 %v7486_v6, %v1975_v7  ;;  %v6043_v17 = vpop.f32.mrb[46].mxu1 }
 0x18b   : > { %v1723_v54 = vadd.f32 %v7486_v6, %v1722_v49  ;;  %v2098_v59 = vmax.f32 %v1720_v35, 0.0  ;;  %v2164_v20 = vmax.f32 %v1984_v3, 0.0  ;;  %v1987_v21 = vadd.f32 %v6043_v17, %v7486_v6  ;;  %v1978_v22 = vpop.f32.mrb[47].mxu1 }
 0x18c   : > { %v2101_v57 = vmax.f32 %v1731_v48, 0.0  ;;  %v2162_v27 = vmax.f32 %v1976_v15, 0.0  ;;  %v1979_v28 = vadd.f32 %v7486_v6, %v1978_v22 }
 0x18d   : > { %v2099_v60 = vmax.f32 %v1723_v54, 0.0  ;;  %v2165_v30 = vmax.f32 %v1987_v21, 0.0 }
 0x18e   : > { %v2205_v62 = vpack.c.bf16 %v2101_v57, %v2100_v56  ;;  %v2163_v33 = vmax.f32 %v1979_v28, 0.0 }
 0x18f   : > { %v2204_v1 = vpack.c.bf16 %v2099_v60, %v2098_v59  ;;  %v5982_v2 = vpop.f32.mrb[48].mxu0  ;;  %v7659_v37 = vpack.c.bf16 %v2165_v30, %v2164_v20 }
 0x190   : > { %v1744_v11 = vadd.f32 %v5982_v2, %v7486_v6  ;;  %v1735_v13 = vpop.f32.mrb[49].mxu0  ;;  %v7661_v44 = vpack.c.bf16 %v2163_v33, %v2162_v27  ;;  %v6046_v46 = vpop.f32.mrb[48].mxu1 }
 0x191   : > { %v1736_v18 = vadd.f32 %v7486_v6, %v1735_v13  ;;  %v5983_v19 = vpop.f32.mrb[50].mxu0  ;;  %6108 = vmatprep.mubr.msk.bf16.mxu1 %vm2269_vm2, %v2204_v1  ;;  %v2000_v51 = vadd.f32 %v6046_v46, %v7486_v6  ;;  %v1991_v53 = vpop.f32.mrb[49].mxu1 }
 0x192   : > { %v1747_v24 = vadd.f32 %v5983_v19, %v7486_v6  ;;  %v1738_v26 = vpop.f32.mrb[51].mxu0  ;;  %6109 = vmatmul.mubr.msk.bf16.gmra.mrb[108].mxu1 %vm2269_vm2, %v2205_v62  ;;  %v2104_v31 = vmax.f32 %v1744_v11, 0.0  ;;  %v1992_v56 = vadd.f32 %v7486_v6, %v1991_v53  ;;  %v6047_v57 = vpop.f32.mrb[50].mxu1 }
 0x193   : > { %v1739_v29 = vadd.f32 %v7486_v6, %v1738_v26  ;;  %v2102_v34 = vmax.f32 %v1736_v18, 0.0  ;;  %v2168_v60 = vmax.f32 %v2000_v51, 0.0  ;;  %v2003_v62 = vadd.f32 %v6047_v57, %v7486_v6  ;;  %v1994_v0 = vpop.f32.mrb[51].mxu1 }
 0x194   : > { %v2105_v32 = vmax.f32 %v1747_v24, 0.0  ;;  %v2166_v3 = vmax.f32 %v1992_v56, 0.0  ;;  %v1995_v7 = vadd.f32 %v7486_v6, %v1994_v0 }
 0x195   : > { %v2103_v35 = vmax.f32 %v1739_v29, 0.0  ;;  %v2169_v13 = vmax.f32 %v2003_v62, 0.0 }
 0x196   : > { %v2207_v42 = vpack.c.bf16 %v2105_v32, %v2104_v31  ;;  %v2167_v18 = vmax.f32 %v1995_v7, 0.0 }
 0x197   : > { %v2206_v48 = vpack.c.bf16 %v2103_v35, %v2102_v34  ;;  %v5986_v49 = vpop.f32.mrb[52].mxu0  ;;  %v7673_v21 = vpack.c.bf16 %v2169_v13, %v2168_v60 }
 0x198   : > { %v1760_v54 = vadd.f32 %v5986_v49, %v7486_v6  ;;  %v1751_v55 = vpop.f32.mrb[53].mxu0  ;;  %v7675_v24 = vpack.c.bf16 %v2167_v18, %v2166_v3  ;;  %v6050_v26 = vpop.f32.mrb[52].mxu1 }
 0x199   : > { %v1752_v58 = vadd.f32 %v7486_v6, %v1751_v55  ;;  %v5987_v59 = vpop.f32.mrb[54].mxu0  ;;  %6112 = vmatprep.mubr.msk.bf16.mxu1 %vm2269_vm2, %v2206_v48  ;;  %v2016_v29 = vadd.f32 %v6050_v26, %v7486_v6  ;;  %v2007_v30 = vpop.f32.mrb[53].mxu1 }
 0x19a   : > { %v1763_v1 = vadd.f32 %v5987_v59, %v7486_v6  ;;  %v1754_v2 = vpop.f32.mrb[55].mxu0  ;;  %6113 = vmatmul.mubr.msk.bf16.gmra.mrb[112].mxu1 %vm2269_vm2, %v2207_v42  ;;  %v2108_v15 = vmax.f32 %v1760_v54, 0.0  ;;  %v2008_v33 = vadd.f32 %v7486_v6, %v2007_v30  ;;  %v6051_v34 = vpop.f32.mrb[54].mxu1 }
 0x19b   : > { %v1755_v11 = vadd.f32 %v7486_v6, %v1754_v2  ;;  %v2106_v19 = vmax.f32 %v1752_v58, 0.0  ;;  %v2172_v46 = vmax.f32 %v2016_v29, 0.0  ;;  %v2019_v48 = vadd.f32 %v6051_v34, %v7486_v6  ;;  %v2010_v49 = vpop.f32.mrb[55].mxu1 }
 0x19c   : > { %v2109_v17 = vmax.f32 %v1763_v1, 0.0  ;;  %v2170_v54 = vmax.f32 %v2008_v33, 0.0  ;;  %v2011_v55 = vadd.f32 %v7486_v6, %v2010_v49 }
 0x19d   : > { %v2107_v20 = vmax.f32 %v1755_v11, 0.0  ;;  %v2173_v57 = vmax.f32 %v2019_v48, 0.0 }
 0x19e   : > { %v2209_v22 = vpack.c.bf16 %v2109_v17, %v2108_v15  ;;  %v2171_v60 = vmax.f32 %v2011_v55, 0.0 }
 0x19f   : > { %v2208_v27 = vpack.c.bf16 %v2107_v20, %v2106_v19  ;;  %v5990_v28 = vpop.f32.mrb[56].mxu0  ;;  %v7687_v1 = vpack.c.bf16 %v2173_v57, %v2172_v46 }
 0x1a0   : > { %v1776_v31 = vadd.f32 %v5990_v28, %v7486_v6  ;;  %v1767_v32 = vpop.f32.mrb[57].mxu0  ;;  %v7689_v3 = vpack.c.bf16 %v2171_v60, %v2170_v54  ;;  %v6054_v7 = vpop.f32.mrb[56].mxu1 }
 0x1a1   : > { %v1768_v35 = vadd.f32 %v7486_v6, %v1767_v32  ;;  %v5991_v42 = vpop.f32.mrb[58].mxu0  ;;  %6116 = vmatprep.mubr.msk.bf16.mxu1 %vm2269_vm2, %v2208_v27  ;;  %v2032_v15 = vadd.f32 %v6054_v7, %v7486_v6  ;;  %v2023_v17 = vpop.f32.mrb[57].mxu1 }
 0x1a2   : > { %v1779_v51 = vadd.f32 %v5991_v42, %v7486_v6  ;;  %v1770_v53 = vpop.f32.mrb[59].mxu0  ;;  %6117 = vmatmul.mubr.msk.bf16.gmra.mrb[116].mxu1 %vm2269_vm2, %v2209_v22  ;;  %v2112_v58 = vmax.f32 %v1776_v31, 0.0  ;;  %v2024_v20 = vadd.f32 %v7486_v6, %v2023_v17  ;;  %v6055_v22 = vpop.f32.mrb[58].mxu1 }
 0x1a3   : > { %v1771_v56 = vadd.f32 %v7486_v6, %v1770_v53  ;;  %v2110_v62 = vmax.f32 %v1768_v35, 0.0  ;;  %v2176_v28 = vmax.f32 %v2032_v15, 0.0  ;;  %v2035_v29 = vadd.f32 %v6055_v22, %v7486_v6  ;;  %v2026_v30 = vpop.f32.mrb[59].mxu1 }
 0x1a4   : > { %v2113_v59 = vmax.f32 %v1779_v51, 0.0  ;;  %v2174_v33 = vmax.f32 %v2024_v20, 0.0  ;;  %v2027_v34 = vadd.f32 %v7486_v6, %v2026_v30 }
 0x1a5   : > { %v2111_v0 = vmax.f32 %v1771_v56, 0.0  ;;  %v2177_v42 = vmax.f32 %v2035_v29, 0.0  ;;  %v6878_v29 = vld [vmem:[%s7334_s16 + $0x28] sm:$0xff]  }
 0x1a6   : > { %v2211_v2 = vpack.c.bf16 %v2113_v59, %v2112_v58  ;;  %v2175_v49 = vmax.f32 %v2027_v34, 0.0  ;;  %v4097_v30 = vunpack.c.l.bf16 %v6878_v29 }
 0x1a7   : > { %v2210_v11 = vpack.c.bf16 %v2111_v0, %v2110_v62  ;;  %v5994_v13 = vpop.f32.mrb[60].mxu0  ;;  %v7701_v54 = vpack.c.bf16 %v2177_v42, %v2176_v28 }
 0x1a8   : > { %v1792_v18 = vadd.f32 %v5994_v13, %v7486_v6  ;;  %v1783_v19 = vpop.f32.mrb[61].mxu0  ;;  %v7703_v56 = vpack.c.bf16 %v2175_v49, %v2174_v33  ;;  %v6058_v57 = vpop.f32.mrb[60].mxu1 }
 0x1a9   : > { %v1784_v26 = vadd.f32 %v7486_v6, %v1783_v19  ;;  %v5995_v27 = vpop.f32.mrb[62].mxu0  ;;  %6120 = vmatprep.mubr.msk.bf16.mxu1 %vm2269_vm2, %v2210_v11  ;;  %v2048_v59 = vadd.f32 %v6058_v57, %v7486_v6  ;;  %v2039_v60 = vpop.f32.mrb[61].mxu1 }
 0x1aa   : > { %v1795_v31 = vadd.f32 %v5995_v27, %v7486_v6  ;;  %v1786_v32 = vpop.f32.mrb[63].mxu0  ;;  %6121 = vmatmul.mubr.msk.bf16.gmra.mrb[120].mxu1 %vm2269_vm2, %v2211_v2  ;;  %v2116_v46 = vmax.f32 %v1792_v18, 0.0  ;;  %v2040_v62 = vadd.f32 %v7486_v6, %v2039_v60  ;;  %v6059_v0 = vpop.f32.mrb[62].mxu1  ;;  %v6883_v60 = vld [vmem:[%s7334_s16 + $0x50] sm:$0xff]  }
 0x1ab   : > { %v1787_v35 = vadd.f32 %v7486_v6, %v1786_v32  ;;  %v2114_v51 = vmax.f32 %v1784_v26, 0.0  ;;  %v2180_v2 = vmax.f32 %v2048_v59, 0.0  ;;  %v2051_v7 = vadd.f32 %v6059_v0, %v7486_v6  ;;  %v2042_v11 = vpop.f32.mrb[63].mxu1 }
 0x1ac   : > { %v2117_v48 = vmax.f32 %v1795_v31, 0.0  ;;  %v2178_v13 = vmax.f32 %v2040_v62, 0.0  ;;  %v2043_v15 = vadd.f32 %v7486_v6, %v2042_v11  ;;  %v6873_v6 = vld [vmem:[%s7334_s16] sm:$0xff]   ;;  %v4098_v31 = vunpack.c.h.bf16 %v6878_v29 }
 0x1ad   : > { %v2115_v53 = vmax.f32 %v1787_v35, 0.0  ;;  %v2181_v17 = vmax.f32 %v2051_v7, 0.0  ;;  %v6880_v35 = vld [vmem:[%s7334_s16 + $0x38] sm:$0xff]   ;;  %v4107_v62 = vunpack.c.l.bf16 %v6883_v60  ;;  %v4108_v0 = vunpack.c.h.bf16 %v6883_v60 }
 0x1ae   : > { %v2213_v55 = vpack.c.bf16 %v2117_v48, %v2116_v46  ;;  %v2179_v18 = vmax.f32 %v2043_v15, 0.0  ;;  %v4101_v42 = vunpack.c.l.bf16 %v6880_v35  ;;  %v4102_v46 = vunpack.c.h.bf16 %v6880_v35 }
 0x1af   : > { %v2212_v58 = vpack.c.bf16 %v2115_v53, %v2114_v51  ;;  %v7713_v19 = vpack.c.bf16 %v2181_v17, %v2180_v2  ;;  %v6881_v51 = vld [vmem:[%s7334_s16 + $0x40] sm:$0xff]   ;;  %v6884_v2 = vld [vmem:[%s7334_s16 + $0x58] sm:$0xff]  }
 0x1b0   : > { %v7715_v20 = vpack.c.bf16 %v2179_v18, %v2178_v13  ;;  %v6456_v49 = vpack.i.bf16 %v4102_v46, %v4101_v42  ;;  %v4104_v53 = vunpack.c.h.bf16 %v6881_v51  ;;  %v4109_v7 = vunpack.c.l.bf16 %v6884_v2  ;;  %v6885_v17 = vld [vmem:[%s7334_s16 + $0x60] sm:$0xff]  }
 0x1b1   : > { %6124 = vmatprep.mubr.msk.bf16.mxu1 %vm2269_vm2, %v2212_v58  ;;  %v4110_v11 = vunpack.c.h.bf16 %v6884_v2  ;;  %v6471_v13 = vpack.i.bf16 %v4108_v0, %v4107_v62  ;;  %v4111_v18 = vunpack.c.l.bf16 %v6885_v17  ;;  %v6893_v2 = vld [vmem:[%s7334_s16 + $0xa0] sm:$0xff]  }
 0x1b2   : > { %6125 = vmatmul.mubr.msk.bf16.gmra.mrb[124].mxu1 %vm2269_vm2, %v2213_v55  ;;  %v6882_v55 = vld [vmem:[%s7334_s16 + $0x48] sm:$0xff]  }
 0x1b3   : > { %6128 = vmatprep.mubr.msk.bf16.mxu1 %vm2269_vm2, %v7504_v47  ;;  %v4088_v47 = vunpack.c.h.bf16 %v6873_v6  ;;  %v4106_v57 = vunpack.c.h.bf16 %v6882_v55  ;;  %v6476_v15 = vpack.i.bf16 %v4110_v11, %v4109_v7  ;;  %v4127_v7 = vunpack.c.l.bf16 %v6893_v2 }
 0x1b4   : > { %v4128_v11 = vunpack.c.h.bf16 %v6893_v2  ;;  %v6901_v2 = vld [vmem:[%s7334_s16 + $0xe0] sm:$0xff]  }
 0x1ba   : > { %6129 = vmatmul.mubr.msk.bf16.gmra.mrb[128].mxu1 %vm2269_vm2, %v7502_v45  ;;  %v4087_v45 = vunpack.c.l.bf16 %v6873_v6  ;;  %v6886_v6 = vld [vmem:[%s7334_s16 + $0x68] sm:$0xff]  }
 0x1bb   : > { %6132 = vmatprep.mubr.msk.bf16.mxu1 %vm2269_vm2, %v7518_v12  ;;  %v7053_v12 = vmov 7  }
 0x1bc   : > { %6419 = vset.pattern.permute.xlu0 %v7053_v12  ;;  %6430 = vset.pattern.permute.xlu1 %v7053_v12  ;;  %v7778_v12 = vld [vmem:[%s8361_s4] ss:$0 sm:$0xff] }
 0x1c2   : > { %6133 = vmatmul.mubr.msk.bf16.gmra.mrb[132].mxu1 %vm2269_vm2, %v7516_v10  ;;  %v6420_v10 = vpack.i.bf16 %v4088_v47, %v4087_v45  ;;  %v4114_v45 = vunpack.c.h.bf16 %v6886_v6 }
 0x1c3   : > { %6136 = vmatprep.mubr.msk.bf16.mxu1 %vm2269_vm2, %v7532_v40 }
 0x1c4   : > { %6421 = vperm.xlu0 %6419, %v6420_v10  }
 0x1ca   : > { %6137 = vmatmul.mubr.msk.bf16.gmra.mrb[136].mxu1 %vm2269_vm2, %v7530_v38  ;;  %v6874_v38 = vld [vmem:[%s7334_s16 + $0x8] sm:$0xff]  }
 0x1cb   : > { %6140 = vmatprep.mubr.msk.bf16.mxu1 %vm2269_vm2, %v7549_v8  ;;  %v4089_v40 = vunpack.c.l.bf16 %v6874_v38 }
 0x1d2   : > { %6141 = vmatmul.mubr.msk.bf16.gmra.mrb[140].mxu1 %vm2269_vm2, %v7547_v5  ;;  %v4090_v5 = vunpack.c.h.bf16 %v6874_v38  ;;  %v6887_v38 = vld [vmem:[%s7334_s16 + $0x70] sm:$0xff]  }
 0x1d3   : > { %6144 = vmatprep.mubr.msk.bf16.mxu1 %vm2269_vm2, %v7563_v39 }
 0x1d4   : > { %v6425_v8 = vpack.i.bf16 %v4090_v5, %v4089_v40  ;;  %v4115_v40 = vunpack.c.l.bf16 %v6887_v38  ;;  %v4116_v5 = vunpack.c.h.bf16 %v6887_v38 }
 0x1d6   : > { %6426 = vperm.xlu0 %6419, %v6425_v8   ;;  %v6888_v8 = vld [vmem:[%s7334_s16 + $0x78] sm:$0xff]  }
 0x1da   : > { %6145 = vmatmul.mubr.msk.bf16.gmra.mrb[144].mxu1 %vm2269_vm2, %v7561_v36  ;;  %v6875_v36 = vld [vmem:[%s7334_s16 + $0x10] sm:$0xff]  }
 0x1db   : > { %6148 = vmatprep.mubr.msk.bf16.mxu1 %vm2269_vm2, %v7577_v9  ;;  %v4091_v39 = vunpack.c.l.bf16 %v6875_v36 }
 0x1e2   : > { %6149 = vmatmul.mubr.msk.bf16.gmra.mrb[148].mxu1 %vm2269_vm2, %v7575_v4  ;;  %v4092_v4 = vunpack.c.h.bf16 %v6875_v36  ;;  %v4117_v36 = vunpack.c.l.bf16 %v6888_v8 }
 0x1e3   : > { %6152 = vmatprep.mubr.msk.bf16.mxu1 %vm2269_vm2, %v7591_v43 }
 0x1e4   : > { %v6431_v9 = vpack.i.bf16 %v4092_v4, %v4091_v39  ;;  %v4118_v39 = vunpack.c.h.bf16 %v6888_v8  ;;  %v6491_v4 = vpack.i.bf16 %v4116_v5, %v4115_v40  ;;  %v6895_v5 = vld [vmem:[%s7334_s16 + $0xb0] sm:$0xff]  }
 0x1e5   : > { %v4131_v8 = vunpack.c.l.bf16 %v6895_v5 }
 0x1e6   : > { %6432 = vperm.xlu1 %6430, %v6431_v9  }
 0x1ea   : > { %6153 = vmatmul.mubr.msk.bf16.gmra.mrb[152].mxu1 %vm2269_vm2, %v7589_v41  ;;  %v6876_v41 = vld [vmem:[%s7334_s16 + $0x18] sm:$0xff]  }
 0x1eb   : > { %6156 = vmatprep.mubr.msk.bf16.mxu1 %vm2269_vm2, %v7605_v16  ;;  %v4093_v43 = vunpack.c.l.bf16 %v6876_v41  ;;  %v4094_v22 = vunpack.c.h.bf16 %v6876_v41  ;;  %v6877_v16 = vld [vmem:[%s7334_s16 + $0x20] sm:$0xff]   ;;  %v6496_v41 = vpack.i.bf16 %v4118_v39, %v4117_v36  ;;  %v4132_v36 = vunpack.c.h.bf16 %v6895_v5  ;;  %v6903_v5 = vld [vmem:[%s7334_s16 + $0xf0] sm:$0xff]  }
 0x1ec   : > { %v4095_v27 = vunpack.c.l.bf16 %v6877_v16  ;;  %v4096_v28 = vunpack.c.h.bf16 %v6877_v16 }
 0x1ed   : > { %v6436_v26 = vpack.i.bf16 %v4094_v22, %v4093_v43 }
 0x1ee   : > { %v6441_v32 = vpack.i.bf16 %v4096_v28, %v4095_v27 }
 0x1ef   : > { %6437 = vperm.xlu1 %6430, %v6436_v26   ;;  %v6889_v26 = vld [vmem:[%s7334_s16 + $0x80] sm:$0xff]  }
 0x1f0   : > { %6442 = vperm.xlu0 %6419, %v6441_v32   ;;  %v4119_v16 = vunpack.c.l.bf16 %v6889_v26  ;;  %v4120_v27 = vunpack.c.h.bf16 %v6889_v26 }
 0x1f2   : > { %6157 = vmatmul.mubr.msk.bf16.gmra.mrb[156].mxu1 %vm2269_vm2, %v7603_v14  ;;  %v6446_v14 = vpack.i.bf16 %v4098_v31, %v4097_v30  ;;  %v6890_v30 = vld [vmem:[%s7334_s16 + $0x88] sm:$0xff]  }
 0x1f3   : > { %6160 = vmatprep.mubr.msk.bf16.mxu1 %vm2269_vm2, %v7619_v52  ;;  %v6879_v52 = vld [vmem:[%s7334_s16 + $0x30] sm:$0xff]   ;;  %v4121_v31 = vunpack.c.l.bf16 %v6890_v30  ;;  %v4122_v32 = vunpack.c.h.bf16 %v6890_v30 }
 0x1f4   : > { %v4099_v33 = vunpack.c.l.bf16 %v6879_v52  ;;  %v4100_v34 = vunpack.c.h.bf16 %v6879_v52  ;;  %6447 = vperm.xlu1 %6430, %v6446_v14   ;;  %v6501_v52 = vpack.i.bf16 %v4120_v27, %v4119_v16  ;;  %v6897_v27 = vld [vmem:[%s7334_s16 + $0xc0] sm:$0xff]  }
 0x1f5   : > { %v6506_v35 = vpack.i.bf16 %v4122_v32, %v4121_v31  ;;  %v6898_v32 = vld [vmem:[%s7334_s16 + $0xc8] sm:$0xff]  }
 0x1f6   : > { %v6451_v48 = vpack.i.bf16 %v4100_v34, %v4099_v33 }
 0x1f8   : > { %6452 = vperm.xlu0 %6419, %v6451_v48   ;;  %6457 = vperm.xlu1 %6430, %v6456_v49   ;;  %v6891_v48 = vld [vmem:[%s7334_s16 + $0x90] sm:$0xff]  }
 0x1f9   : > { %v4123_v49 = vunpack.c.l.bf16 %v6891_v48 }
 0x1fa   : > { %6161 = vmatmul.mubr.msk.bf16.gmra.mrb[160].mxu1 %vm2269_vm2, %v7617_v50  ;;  %v4103_v50 = vunpack.c.l.bf16 %v6881_v51  ;;  %v4124_v51 = vunpack.c.h.bf16 %v6891_v48 }
 0x1fb   : > { %6164 = vmatprep.mubr.msk.bf16.mxu1 %vm2269_vm2, %v7633_v25  ;;  %v4105_v25 = vunpack.c.l.bf16 %v6882_v55 }
 0x1fc   : > { %v6461_v58 = vpack.i.bf16 %v4104_v53, %v4103_v50  ;;  %v6892_v53 = vld [vmem:[%s7334_s16 + $0x98] sm:$0xff]  }
 0x1fd   : > { %v6466_v59 = vpack.i.bf16 %v4106_v57, %v4105_v25  ;;  %v4125_v55 = vunpack.c.l.bf16 %v6892_v53  ;;  %v4126_v25 = vunpack.c.h.bf16 %v6892_v53 }
 0x1fe   : > { %6462 = vperm.xlu0 %6419, %v6461_v58  }
 0x1ff   : > { %6467 = vperm.xlu1 %6430, %v6466_v59   ;;  %v6516_v62 = vpack.i.bf16 %v4126_v25, %v4125_v55  ;;  %v6900_v25 = vld [vmem:[%s7334_s16 + $0xd8] sm:$0xff]  }
 0x202   : > { %6165 = vmatmul.mubr.msk.bf16.gmra.mrb[164].mxu1 %vm2269_vm2, %v7631_v23  ;;  %6472 = vperm.xlu0 %6419, %v6471_v13   ;;  %v4112_v23 = vunpack.c.h.bf16 %v6885_v17  ;;  %v6894_v17 = vld [vmem:[%s7334_s16 + $0xa8] sm:$0xff]  }
 0x203   : > { %6168 = vmatprep.mubr.msk.bf16.mxu1 %vm2269_vm2, %v7647_v63  ;;  %6477 = vperm.xlu1 %6430, %v6476_v15   ;;  %v4113_v63 = vunpack.c.l.bf16 %v6886_v6 }
 0x204   : > { %v6481_v47 = vpack.i.bf16 %v4112_v23, %v4111_v18  ;;  %v4129_v18 = vunpack.c.l.bf16 %v6894_v17  ;;  %v4130_v23 = vunpack.c.h.bf16 %v6894_v17  ;;  %v6902_v17 = vld [vmem:[%s7334_s16 + $0xe8] sm:$0xff]  }
 0x205   : > { %v6486_v10 = vpack.i.bf16 %v4114_v45, %v4113_v63  ;;  %v6521_v63 = vpack.i.bf16 %v4128_v11, %v4127_v7  ;;  %v4143_v7 = vunpack.c.l.bf16 %v6901_v2  ;;  %v4144_v11 = vunpack.c.h.bf16 %v6901_v2 }
 0x206   : > { %6482 = vperm.xlu0 %6419, %v6481_v47  }
 0x207   : > { %6487 = vperm.xlu1 %6430, %v6486_v10   ;;  %v6526_v10 = vpack.i.bf16 %v4130_v23, %v4129_v18  ;;  %v4145_v18 = vunpack.c.l.bf16 %v6902_v17  ;;  %v4146_v23 = vunpack.c.h.bf16 %v6902_v17 }
 0x20a   : > { %6169 = vmatmul.mubr.msk.bf16.gmra.mrb[168].mxu1 %vm2269_vm2, %v7645_v61  ;;  %6492 = vperm.xlu0 %6419, %v6491_v4  }
 0x20b   : > { %6172 = vmatprep.mubr.msk.bf16.mxu1 %vm2269_vm2, %v7661_v44  ;;  %6497 = vperm.xlu1 %6430, %v6496_v41  }
 0x20d   : > { %v6066_v61 = vpop.f32.mrb[64].mxu1 }
 0x20e   : > { %v2505_v9 = vadd.f32 %v6066_v61, %v7778_v12  ;;  %v2496_v44 = vpop.f32.mrb[65].mxu1  ;;  %6502 = vperm.xlu0 %6419, %v6501_v52   ;;  %v6896_v61 = vld [vmem:[%s7334_s16 + $0xb8] sm:$0xff]   ;;  %v4138_v52 = vunpack.c.h.bf16 %v6898_v32 }
 0x20f   : > { %v2497_v43 = vadd.f32 %v7778_v12, %v2496_v44  ;;  %v6067_v22 = vpop.f32.mrb[66].mxu1  ;;  %6507 = vperm.xlu1 %6430, %v6506_v35   ;;  %v4133_v4 = vunpack.c.l.bf16 %v6896_v61 }
 0x210   : > { %v2508_v28 = vadd.f32 %v6067_v22, %v7778_v12  ;;  %v2499_v29 = vpop.f32.mrb[67].mxu1  ;;  %v3009_v33 = vmax.f32 %v2505_v9, 0.0  ;;  %v4134_v9 = vunpack.c.h.bf16 %v6896_v61  ;;  %v6904_v61 = vld [vmem:[%s7334_s16 + $0xf8] sm:$0xff]  }
 0x211   : > { %v2500_v14 = vadd.f32 %v7778_v12, %v2499_v29  ;;  %v3007_v42 = vmax.f32 %v2497_v43, 0.0  ;;  %v4136_v29 = vunpack.c.h.bf16 %v6897_v27 }
 0x212   : > { %v3010_v34 = vmax.f32 %v2508_v28, 0.0  ;;  %6173 = vmatmul.mubr.msk.bf16.gmra.mrb[172].mxu1 %vm2269_vm2, %v7659_v37  ;;  %v6511_v37 = vpack.i.bf16 %v4124_v51, %v4123_v49  ;;  %v6536_v26 = vpack.i.bf16 %v4134_v9, %v4133_v4  ;;  %v4135_v28 = vunpack.c.l.bf16 %v6897_v27  ;;  %v6899_v51 = vld [vmem:[%s7334_s16 + $0xd0] sm:$0xff]  }
 0x213   : > { %v3008_v46 = vmax.f32 %v2500_v14, 0.0  ;;  %6176 = vmatprep.mubr.msk.bf16.mxu1 %vm2269_vm2, %v7675_v24  ;;  %6517 = vperm.xlu1 %6430, %v6516_v62   ;;  %v4137_v14 = vunpack.c.l.bf16 %v6898_v32  ;;  %v4140_v53 = vunpack.c.h.bf16 %v6899_v51  ;;  %v4149_v4 = vunpack.c.l.bf16 %v6904_v61 }
 0x214   : > { %v3136_v50 = vpack.c.bf16 %v3010_v34, %v3009_v33  ;;  %6512 = vperm.xlu0 %6419, %v6511_v37   ;;  %v6541_v34 = vpack.i.bf16 %v4136_v29, %v4135_v28  ;;  %v4150_v9 = vunpack.c.h.bf16 %v6904_v61 }
 0x215   : > { %v3135_v57 = vpack.c.bf16 %v3008_v46, %v3007_v42  ;;  %v6070_v58 = vpop.f32.mrb[68].mxu1  ;;  %v6546_v46 = vpack.i.bf16 %v4138_v52, %v4137_v14 }
 0x216   : > { %v2521_v59 = vadd.f32 %v6070_v58, %v7778_v12  ;;  %v2512_v60 = vpop.f32.mrb[69].mxu1  ;;  %v4142_v58 = vunpack.c.h.bf16 %v6900_v25 }
 0x217   : > { %v2513_v24 = vadd.f32 %v7778_v12, %v2512_v60  ;;  %v6071_v0 = vpop.f32.mrb[70].mxu1  ;;  %6196 = vmatprep.mubr.msk.bf16.mxu0 %vm2269_vm2, %v3135_v57  ;;  %6527 = vperm.xlu1 %6430, %v6526_v10   ;;  %v4141_v57 = vunpack.c.l.bf16 %v6900_v25  ;;  %v6566_v10 = vpack.i.bf16 %v4146_v23, %v4145_v18 }
 0x218   : > { %v2524_v13 = vadd.f32 %v6071_v0, %v7778_v12  ;;  %v2515_v15 = vpop.f32.mrb[71].mxu1  ;;  %6197 = vmatmul.mubr.msk.bf16.vlgmr.msra.gmra.mrb[64].mxu0 %vm2269_vm2, %v3136_v50  ;;  %v3013_v45 = vmax.f32 %v2521_v59, 0.0  ;;  %6522 = vperm.xlu0 %6419, %v6521_v63   ;;  %v4139_v50 = vunpack.c.l.bf16 %v6899_v51  ;;  %v6561_v63 = vpack.i.bf16 %v4144_v11, %v4143_v7  ;;  %v6910_v11 = vld [vmem:[%s7334_s16 + $0x128] sm:$0xff]  }
 0x219   : > { %v2516_v6 = vadd.f32 %v7778_v12, %v2515_v15  ;;  %v3011_v38 = vmax.f32 %v2513_v24, 0.0  ;;  %v6556_v24 = vpack.i.bf16 %v4142_v58, %v4141_v57 }
 0x21a   : > { %v3014_v47 = vmax.f32 %v2524_v13, 0.0  ;;  %6177 = vmatmul.mubr.msk.bf16.gmra.mrb[176].mxu1 %vm2269_vm2, %v7673_v21  ;;  %v6531_v21 = vpack.i.bf16 %v4132_v36, %v4131_v8  ;;  %v4147_v8 = vunpack.c.l.bf16 %v6903_v5  ;;  %v4148_v36 = vunpack.c.h.bf16 %v6903_v5 }
 0x21b   : > { %v3012_v40 = vmax.f32 %v2516_v6, 0.0  ;;  %6180 = vmatprep.mubr.msk.bf16.mxu1 %vm2269_vm2, %v7689_v3  ;;  %6537 = vperm.xlu1 %6430, %v6536_v26  }
 0x21c   : > { %v3138_v39 = vpack.c.bf16 %v3014_v47, %v3013_v45  ;;  %6532 = vperm.xlu0 %6419, %v6531_v21  }
 0x21d   : > { %v3137_v44 = vpack.c.bf16 %v3012_v40, %v3011_v38  ;;  %v6074_v41 = vpop.f32.mrb[72].mxu1 }
 0x21e   : > { %v2537_v43 = vadd.f32 %v6074_v41, %v7778_v12  ;;  %v2528_v22 = vpop.f32.mrb[73].mxu1 }
 0x21f   : > { %v2529_v3 = vadd.f32 %v7778_v12, %v2528_v22  ;;  %v6075_v16 = vpop.f32.mrb[74].mxu1  ;;  %6200 = vmatprep.mubr.msk.bf16.mxu0 %vm2269_vm2, %v3137_v44  ;;  %6547 = vperm.xlu1 %6430, %v6546_v46   ;;  %v6905_v44 = vld [vmem:[%s7334_s16 + $0x100] sm:$0xff]   ;;  %v6571_v22 = vpack.i.bf16 %v4148_v36, %v4147_v8  ;;  %v6912_v8 = vld [vmem:[%s7334_s16 + $0x138] sm:$0xff]  }
 0x220   : > { %v2540_v30 = vadd.f32 %v6075_v16, %v7778_v12  ;;  %v2531_v31 = vpop.f32.mrb[75].mxu1  ;;  %6201 = vmatmul.mubr.msk.bf16.gmra.mrb[68].mxu0 %vm2269_vm2, %v3138_v39  ;;  %v3017_v35 = vmax.f32 %v2537_v43, 0.0  ;;  %6542 = vperm.xlu0 %6419, %v6541_v34   ;;  %v4151_v41 = vunpack.c.l.bf16 %v6905_v44  ;;  %v4152_v21 = vunpack.c.h.bf16 %v6905_v44 }
 0x221   : > { %v2532_v33 = vadd.f32 %v7778_v12, %v2531_v31  ;;  %v3015_v48 = vmax.f32 %v2529_v3, 0.0  ;;  %v4165_v36 = vunpack.c.l.bf16 %v6912_v8 }
 0x222   : > { %v3018_v42 = vmax.f32 %v2540_v30, 0.0  ;;  %6181 = vmatmul.mubr.msk.bf16.gmra.mrb[180].mxu1 %vm2269_vm2, %v7687_v1  ;;  %v6551_v1 = vpack.i.bf16 %v4140_v53, %v4139_v50  ;;  %v6906_v30 = vld [vmem:[%s7334_s16 + $0x108] sm:$0xff]   ;;  %v6581_v52 = vpack.i.bf16 %v4152_v21, %v4151_v41  ;;  %v6908_v53 = vld [vmem:[%s7334_s16 + $0x118] sm:$0xff]  }
 0x223   : > { %v3016_v49 = vmax.f32 %v2532_v33, 0.0  ;;  %6184 = vmatprep.mubr.msk.bf16.mxu1 %vm2269_vm2, %v7703_v56  ;;  %6557 = vperm.xlu1 %6430, %v6556_v24   ;;  %v4153_v31 = vunpack.c.l.bf16 %v6906_v30  ;;  %v4154_v32 = vunpack.c.h.bf16 %v6906_v30  ;;  %v4158_v25 = vunpack.c.h.bf16 %v6908_v53  ;;  %v6909_v24 = vld [vmem:[%s7334_s16 + $0x120] sm:$0xff]  }
 0x224   : > { %v3140_v55 = vpack.c.bf16 %v3018_v42, %v3017_v35  ;;  %6552 = vperm.xlu0 %6419, %v6551_v1  }
 0x225   : > { %v3139_v37 = vpack.c.bf16 %v3016_v49, %v3015_v48  ;;  %v6078_v59 = vpop.f32.mrb[76].mxu1  ;;  %v6586_v35 = vpack.i.bf16 %v4154_v32, %v4153_v31  ;;  %v6907_v48 = vld [vmem:[%s7334_s16 + $0x110] sm:$0xff]  }
 0x226   : > { %v2553_v60 = vadd.f32 %v6078_v59, %v7778_v12  ;;  %v2544_v62 = vpop.f32.mrb[77].mxu1  ;;  %v4155_v49 = vunpack.c.l.bf16 %v6907_v48  ;;  %v4156_v51 = vunpack.c.h.bf16 %v6907_v48 }
 0x227   : > { %v2545_v56 = vadd.f32 %v7778_v12, %v2544_v62  ;;  %v6079_v0 = vpop.f32.mrb[78].mxu1  ;;  %6204 = vmatprep.mubr.msk.bf16.mxu0 %vm2269_vm2, %v3139_v37  ;;  %6567 = vperm.xlu1 %6430, %v6566_v10   ;;  %v6911_v10 = vld [vmem:[%s7334_s16 + $0x130] sm:$0xff]  }
 0x228   : > { %v2556_v13 = vadd.f32 %v6079_v0, %v7778_v12  ;;  %v2547_v15 = vpop.f32.mrb[79].mxu1  ;;  %6205 = vmatmul.mubr.msk.bf16.gmra.mrb[72].mxu0 %vm2269_vm2, %v3140_v55  ;;  %v3021_v45 = vmax.f32 %v2553_v60, 0.0  ;;  %6562 = vperm.xlu0 %6419, %v6561_v63   ;;  %v4157_v55 = vunpack.c.l.bf16 %v6908_v53  ;;  %v6591_v37 = vpack.i.bf16 %v4156_v51, %v4155_v49  ;;  %v6916_v49 = vld [vmem:[%s7334_s16 + $0x158] sm:$0xff]  }
 0x229   : > { %v2548_v6 = vadd.f32 %v7778_v12, %v2547_v15  ;;  %v3019_v38 = vmax.f32 %v2545_v56, 0.0  ;;  %v4159_v56 = vunpack.c.l.bf16 %v6909_v24  ;;  %v4160_v0 = vunpack.c.h.bf16 %v6909_v24 }
 0x22a   : > { %v3022_v47 = vmax.f32 %v2556_v13, 0.0  ;;  %6185 = vmatmul.mubr.msk.bf16.gmra.mrb[184].mxu1 %vm2269_vm2, %v7701_v54  ;;  %v6596_v1 = vpack.i.bf16 %v4158_v25, %v4157_v55  ;;  %v4161_v13 = vunpack.c.l.bf16 %v6910_v11  ;;  %v4162_v15 = vunpack.c.h.bf16 %v6910_v11 }
 0x22b   : > { %v3020_v40 = vmax.f32 %v2548_v6, 0.0  ;;  %6188 = vmatprep.mubr.msk.bf16.mxu1 %vm2269_vm2, %v7715_v20  ;;  %v6576_v20 = vpack.i.bf16 %v4150_v9, %v4149_v4  ;;  %v6601_v18 = vpack.i.bf16 %v4160_v0, %v4159_v56  ;;  %v4173_v51 = vunpack.c.l.bf16 %v6916_v49  ;;  %v6918_v0 = vld [vmem:[%s7334_s16 + $0x168] sm:$0xff]  }
 0x22c   : > { %v3142_v39 = vpack.c.bf16 %v3022_v47, %v3021_v45  ;;  %6572 = vperm.xlu0 %6419, %v6571_v22   ;;  %v6606_v63 = vpack.i.bf16 %v4162_v15, %v4161_v13  ;;  %v6913_v22 = vld [vmem:[%s7334_s16 + $0x140] sm:$0xff]  }
 0x22d   : > { %v3141_v54 = vpack.c.bf16 %v3020_v40, %v3019_v38  ;;  %v6082_v43 = vpop.f32.mrb[80].mxu1  ;;  %6577 = vperm.xlu1 %6430, %v6576_v20   ;;  %v4163_v38 = vunpack.c.l.bf16 %v6911_v10  ;;  %v4164_v40 = vunpack.c.h.bf16 %v6911_v10 }
 0x22e   : > { %v2569_v26 = vadd.f32 %v6082_v43, %v7778_v12  ;;  %v2560_v3 = vpop.f32.mrb[81].mxu1 }
 0x22f   : > { %v2561_v16 = vadd.f32 %v7778_v12, %v2560_v3  ;;  %v6083_v27 = vpop.f32.mrb[82].mxu1  ;;  %6208 = vmatprep.mubr.msk.bf16.mxu0 %vm2269_vm2, %v3141_v54  ;;  %v6611_v9 = vpack.i.bf16 %v4164_v40, %v4163_v38  ;;  %v4168_v3 = vunpack.c.h.bf16 %v6913_v22  ;;  %v6920_v38 = vld [vmem:[%s7334_s16 + $0x178] sm:$0xff]  }
 0x230   : > { %v2572_v28 = vadd.f32 %v6083_v27, %v7778_v12  ;;  %v2563_v29 = vpop.f32.mrb[83].mxu1  ;;  %6209 = vmatmul.mubr.msk.bf16.gmra.mrb[76].mxu0 %vm2269_vm2, %v3142_v39  ;;  %v3025_v33 = vmax.f32 %v2569_v26, 0.0  ;;  %6582 = vperm.xlu0 %6419, %v6581_v52   ;;  %v4166_v39 = vunpack.c.h.bf16 %v6912_v8  ;;  %v4167_v26 = vunpack.c.l.bf16 %v6913_v22  ;;  %v6914_v27 = vld [vmem:[%s7334_s16 + $0x148] sm:$0xff]  }
 0x231   : > { %v2564_v14 = vadd.f32 %v7778_v12, %v2563_v29  ;;  %v3023_v42 = vmax.f32 %v2561_v16, 0.0  ;;  %6587 = vperm.xlu1 %6430, %v6586_v35   ;;  %v4170_v29 = vunpack.c.h.bf16 %v6914_v27  ;;  %v6915_v35 = vld [vmem:[%s7334_s16 + $0x150] sm:$0xff]   ;;  %v4181_v40 = vunpack.c.l.bf16 %v6920_v38 }
 0x232   : > { %v3026_v34 = vmax.f32 %v2572_v28, 0.0  ;;  %6189 = vmatmul.mubr.msk.bf16.gmra.mrb[188].mxu1 %vm2269_vm2, %v7713_v19  ;;  %v6616_v21 = vpack.i.bf16 %v4166_v39, %v4165_v36  ;;  %v4169_v28 = vunpack.c.l.bf16 %v6914_v27  ;;  %v6621_v31 = vpack.i.bf16 %v4168_v3, %v4167_v26  ;;  %v6922_v3 = vld [vmem:[%s7334_s16 + $0x188] sm:$0xff]  }
 0x233   : > { %v3024_v46 = vmax.f32 %v2564_v14, 0.0 }
 0x234   : > { %v3144_v50 = vpack.c.bf16 %v3026_v34, %v3025_v33  ;;  %6592 = vperm.xlu0 %6419, %v6591_v37   ;;  %v6626_v52 = vpack.i.bf16 %v4170_v29, %v4169_v28 }
 0x235   : > { %v3143_v57 = vpack.c.bf16 %v3024_v46, %v3023_v42  ;;  %v6086_v58 = vpop.f32.mrb[84].mxu1  ;;  %6597 = vperm.xlu1 %6430, %v6596_v1   ;;  %v4171_v42 = vunpack.c.l.bf16 %v6915_v35  ;;  %v4172_v46 = vunpack.c.h.bf16 %v6915_v35  ;;  %v6917_v1 = vld [vmem:[%s7334_s16 + $0x160] sm:$0xff]  }
 0x236   : > { %v2585_v59 = vadd.f32 %v6086_v58, %v7778_v12  ;;  %v2576_v19 = vpop.f32.mrb[85].mxu1 }
 0x237   : > { %v2577_v60 = vadd.f32 %v7778_v12, %v2576_v19  ;;  %v6087_v62 = vpop.f32.mrb[86].mxu1  ;;  %6212 = vmatprep.mubr.msk.bf16.mxu0 %vm2269_vm2, %v3143_v57  ;;  %v6631_v25 = vpack.i.bf16 %v4172_v46, %v4171_v42  ;;  %v6924_v42 = vld [vmem:[%s7334_s16 + $0x198] sm:$0xff]  }
 0x238   : > { %v2588_v2 = vadd.f32 %v6087_v62, %v7778_v12  ;;  %v2579_v7 = vpop.f32.mrb[87].mxu1  ;;  %6213 = vmatmul.mubr.msk.bf16.gmra.mrb[80].mxu0 %vm2269_vm2, %v3144_v50  ;;  %v3029_v23 = vmax.f32 %v2585_v59, 0.0  ;;  %6602 = vperm.xlu0 %6419, %v6601_v18   ;;  %v4174_v50 = vunpack.c.h.bf16 %v6916_v49  ;;  %v4176_v62 = vunpack.c.h.bf16 %v6917_v1 }
 0x239   : > { %v2580_v17 = vadd.f32 %v7778_v12, %v2579_v7  ;;  %v3027_v45 = vmax.f32 %v2577_v60, 0.0  ;;  %6607 = vperm.xlu1 %6430, %v6606_v63   ;;  %v4175_v60 = vunpack.c.l.bf16 %v6917_v1  ;;  %v4178_v7 = vunpack.c.h.bf16 %v6918_v0  ;;  %v6919_v63 = vld [vmem:[%s7334_s16 + $0x170] sm:$0xff]  }
 0x23a   : > { %v3030_v6 = vmax.f32 %v2588_v2, 0.0  ;;  %v6636_v37 = vpack.i.bf16 %v4174_v50, %v4173_v51  ;;  %v4177_v2 = vunpack.c.l.bf16 %v6918_v0  ;;  %v4189_v46 = vunpack.c.l.bf16 %v6924_v42 }
 0x23b   : > { %v3028_v47 = vmax.f32 %v2580_v17, 0.0  ;;  %v6641_v13 = vpack.i.bf16 %v4176_v62, %v4175_v60  ;;  %v6926_v62 = vld [vmem:[%s7334_s16 + $0x1b0] sm:$0xff]  }
 0x23c   : > { %v3146_v5 = vpack.c.bf16 %v3030_v6, %v3029_v23  ;;  %6612 = vperm.xlu0 %6419, %v6611_v9   ;;  %v6646_v18 = vpack.i.bf16 %v4178_v7, %v4177_v2 }
 0x23d   : > { %v3145_v61 = vpack.c.bf16 %v3028_v47, %v3027_v45  ;;  %v6090_v4 = vpop.f32.mrb[88].mxu1  ;;  %6617 = vperm.xlu1 %6430, %v6616_v21   ;;  %v4179_v45 = vunpack.c.l.bf16 %v6919_v63  ;;  %v4180_v47 = vunpack.c.h.bf16 %v6919_v63  ;;  %v6921_v21 = vld [vmem:[%s7334_s16 + $0x180] sm:$0xff]  }
 0x23e   : > { %v2601_v44 = vadd.f32 %v6090_v4, %v7778_v12  ;;  %v2592_v41 = vpop.f32.mrb[89].mxu1 }
 0x23f   : > { %v2593_v54 = vadd.f32 %v7778_v12, %v2592_v41  ;;  %v6091_v43 = vpop.f32.mrb[90].mxu1  ;;  %6216 = vmatprep.mubr.msk.bf16.mxu0 %vm2269_vm2, %v3145_v61  ;;  %v6651_v39 = vpack.i.bf16 %v4180_v47, %v4179_v45  ;;  %v6929_v47 = vld [vmem:[%s7334_s16 + $0x1b8] sm:$0xff]  }
 0x240   : > { %v2604_v20 = vadd.f32 %v6091_v43, %v7778_v12  ;;  %v2595_v16 = vpop.f32.mrb[91].mxu1  ;;  %6217 = vmatmul.mubr.msk.bf16.gmra.mrb[84].mxu0 %vm2269_vm2, %v3146_v5  ;;  %v3033_v32 = vmax.f32 %v2601_v44, 0.0  ;;  %6622 = vperm.xlu0 %6419, %v6621_v31   ;;  %v4182_v5 = vunpack.c.h.bf16 %v6920_v38  ;;  %v4184_v43 = vunpack.c.h.bf16 %v6921_v21 }
 0x241   : > { %v2596_v30 = vadd.f32 %v7778_v12, %v2595_v16  ;;  %v3031_v33 = vmax.f32 %v2593_v54, 0.0  ;;  %6627 = vperm.xlu1 %6430, %v6626_v52   ;;  %v4183_v54 = vunpack.c.l.bf16 %v6921_v21  ;;  %v4186_v16 = vunpack.c.h.bf16 %v6922_v3  ;;  %v6923_v52 = vld [vmem:[%s7334_s16 + $0x190] sm:$0xff]  }
 0x242   : > { %v3034_v14 = vmax.f32 %v2604_v20, 0.0  ;;  %v6656_v9 = vpack.i.bf16 %v4182_v5, %v4181_v40  ;;  %v4185_v20 = vunpack.c.l.bf16 %v6922_v3 }
 0x243   : > { %v3032_v34 = vmax.f32 %v2596_v30, 0.0  ;;  %v6661_v28 = vpack.i.bf16 %v4184_v43, %v4183_v54 }
 0x244   : > { %v3148_v48 = vpack.c.bf16 %v3034_v14, %v3033_v32  ;;  %6632 = vperm.xlu0 %6419, %v6631_v25   ;;  %v6666_v31 = vpack.i.bf16 %v4186_v16, %v4185_v20 }
 0x245   : > { %v3147_v53 = vpack.c.bf16 %v3032_v34, %v3031_v33  ;;  %v6094_v55 = vpop.f32.mrb[92].mxu1  ;;  %6637 = vperm.xlu1 %6430, %v6636_v37   ;;  %v4187_v33 = vunpack.c.l.bf16 %v6923_v52  ;;  %v4188_v34 = vunpack.c.h.bf16 %v6923_v52  ;;  %v6925_v37 = vld [vmem:[%s7334_s16 + $0x1a0] sm:$0xff]  }
 0x246   : > { %v2617_v57 = vadd.f32 %v6094_v55, %v7778_v12  ;;  %v2608_v58 = vpop.f32.mrb[93].mxu1 }
 0x247   : > { %v2609_v59 = vadd.f32 %v7778_v12, %v2608_v58  ;;  %v6095_v19 = vpop.f32.mrb[94].mxu1  ;;  %6220 = vmatprep.mubr.msk.bf16.mxu0 %vm2269_vm2, %v3147_v53  ;;  %v6671_v50 = vpack.i.bf16 %v4188_v34, %v4187_v33  ;;  %v4198_v34 = vunpack.c.h.bf16 %v6929_v47 }
 0x248   : > { %v2620_v24 = vadd.f32 %v6095_v19, %v7778_v12  ;;  %v2611_v56 = vpop.f32.mrb[95].mxu1  ;;  %6221 = vmatmul.mubr.msk.bf16.gmra.mrb[88].mxu0 %vm2269_vm2, %v3148_v48  ;;  %v3037_v15 = vmax.f32 %v2617_v57, 0.0  ;;  %6642 = vperm.xlu0 %6419, %v6641_v13   ;;  %v4190_v48 = vunpack.c.h.bf16 %v6924_v42  ;;  %v4192_v19 = vunpack.c.h.bf16 %v6925_v37 }
 0x249   : > { %v2612_v11 = vadd.f32 %v7778_v12, %v2611_v56  ;;  %v3035_v23 = vmax.f32 %v2609_v59, 0.0  ;;  %6647 = vperm.xlu1 %6430, %v6646_v18   ;;  %v4191_v59 = vunpack.c.l.bf16 %v6925_v37  ;;  %v4196_v56 = vunpack.c.h.bf16 %v6926_v62  ;;  %v6927_v18 = vld [vmem:[%s7334_s16 + $0x1a8] sm:$0xff]  }
 0x24a   : > { %v3038_v17 = vmax.f32 %v2620_v24, 0.0  ;;  %v6676_v25 = vpack.i.bf16 %v4190_v48, %v4189_v46  ;;  %v4195_v24 = vunpack.c.l.bf16 %v6926_v62 }
 0x24b   : > { %v3036_v6 = vmax.f32 %v2612_v11, 0.0  ;;  %v6681_v2 = vpack.i.bf16 %v4192_v19, %v4191_v59 }
 0x24c   : > { %v3150_v10 = vpack.c.bf16 %v3038_v17, %v3037_v15  ;;  %6652 = vperm.xlu0 %6419, %v6651_v39   ;;  %v6686_v13 = vpack.i.bf16 %v4196_v56, %v4195_v24 }
 0x24d   : > { %v3149_v8 = vpack.c.bf16 %v3036_v6, %v3035_v23  ;;  %v6098_v36 = vpop.f32.mrb[96].mxu1  ;;  %6657 = vperm.xlu1 %6430, %v6656_v9   ;;  %v4193_v23 = vunpack.c.l.bf16 %v6927_v18  ;;  %v6928_v6 = vld [vmem:[%s7334_s16 + $0x1c0] sm:$0xff]  }
 0x24e   : > { %v2633_v61 = vadd.f32 %v6098_v36, %v7778_v12  ;;  %v2624_v4 = vpop.f32.mrb[97].mxu1  ;;  %v4199_v63 = vunpack.c.l.bf16 %v6928_v6  ;;  %v4200_v38 = vunpack.c.h.bf16 %v6928_v6 }
 0x24f   : > { %v2625_v44 = vadd.f32 %v7778_v12, %v2624_v4  ;;  %v6099_v41 = vpop.f32.mrb[98].mxu1  ;;  %6224 = vmatprep.mubr.msk.bf16.mxu0 %vm2269_vm2, %v3149_v8 }
 0x250   : > { %v2636_v22 = vadd.f32 %v6099_v41, %v7778_v12  ;;  %v2627_v26 = vpop.f32.mrb[99].mxu1  ;;  %6225 = vmatmul.mubr.msk.bf16.gmra.mrb[92].mxu0 %vm2269_vm2, %v3150_v10  ;;  %v3041_v29 = vmax.f32 %v2633_v61, 0.0  ;;  %6662 = vperm.xlu0 %6419, %v6661_v28   ;;  %v4197_v10 = vunpack.c.l.bf16 %v6929_v47  ;;  %v6691_v8 = vpack.i.bf16 %v4199_v63, %v4193_v23 }
 0x251   : > { %v2628_v27 = vadd.f32 %v7778_v12, %v2627_v26  ;;  %v3039_v32 = vmax.f32 %v2625_v44, 0.0  ;;  %6667 = vperm.xlu1 %6430, %v6666_v31   ;;  %v6930_v44 = vld [vmem:[%s7334_s16 + $0x1d0] sm:$0xff]   ;;  %v6931_v26 = vld [vmem:[%s7334_s16 + $0x1c8] sm:$0xff]  }
 0x252   : > { %v3042_v30 = vmax.f32 %v2636_v22, 0.0  ;;  %v6696_v61 = vpack.i.bf16 %v4197_v10, %v4200_v38  ;;  %v4203_v41 = vunpack.c.l.bf16 %v6930_v44  ;;  %v4204_v21 = vunpack.c.h.bf16 %v6930_v44 }
 0x253   : > { %v3040_v14 = vmax.f32 %v2628_v27, 0.0  ;;  %v4194_v22 = vunpack.c.h.bf16 %v6927_v18  ;;  %v4201_v3 = vunpack.c.l.bf16 %v6931_v26 }
 0x254   : > { %v3152_v35 = vpack.c.bf16 %v3042_v30, %v3041_v29  ;;  %6672 = vperm.xlu0 %6419, %v6671_v50   ;;  %v6701_v16 = vpack.i.bf16 %v4204_v21, %v4203_v41 }
 0x255   : > { %v3151_v49 = vpack.c.bf16 %v3040_v14, %v3039_v32  ;;  %v6102_v51 = vpop.f32.mrb[100].mxu1  ;;  %6677 = vperm.xlu1 %6430, %v6676_v25   ;;  %v6706_v29 = vpack.i.bf16 %v4201_v3, %v4194_v22  ;;  %v6932_v32 = vld [vmem:[%s7334_s16 + $0x1e0] sm:$0xff]  }
 0x256   : > { %v2649_v53 = vadd.f32 %v6102_v51, %v7778_v12  ;;  %v2640_v55 = vpop.f32.mrb[101].mxu1  ;;  %v4207_v14 = vunpack.c.l.bf16 %v6932_v32  ;;  %v4208_v52 = vunpack.c.h.bf16 %v6932_v32 }
 0x257   : > { %v2641_v57 = vadd.f32 %v7778_v12, %v2640_v55  ;;  %v6103_v58 = vpop.f32.mrb[102].mxu1  ;;  %6228 = vmatprep.mubr.msk.bf16.mxu0 %vm2269_vm2, %v3151_v49 }
 0x258   : > { %v2652_v1 = vadd.f32 %v6103_v58, %v7778_v12  ;;  %v2643_v60 = vpop.f32.mrb[103].mxu1  ;;  %6229 = vmatmul.mubr.msk.bf16.gmra.mrb[96].mxu0 %vm2269_vm2, %v3152_v35  ;;  %v3045_v7 = vmax.f32 %v2649_v53, 0.0  ;;  %6682 = vperm.xlu0 %6419, %v6681_v2   ;;  %v6933_v35 = vld [vmem:[%s7334_s16 + $0x1d8] sm:$0xff]   ;;  %v6711_v49 = vpack.i.bf16 %v4208_v52, %v4207_v14 }
 0x259   : > { %v2644_v0 = vadd.f32 %v7778_v12, %v2643_v60  ;;  %v3043_v15 = vmax.f32 %v2641_v57, 0.0  ;;  %6687 = vperm.xlu1 %6430, %v6686_v13   ;;  %v4205_v42 = vunpack.c.l.bf16 %v6933_v35  ;;  %v6934_v57 = vld [vmem:[%s7334_s16 + $0x1f0] sm:$0xff]   ;;  %v6935_v60 = vld [vmem:[%s7334_s16 + $0x1e8] sm:$0xff]  }
 0x25a   : > { %v3046_v11 = vmax.f32 %v2652_v1, 0.0  ;;  %v4211_v58 = vunpack.c.l.bf16 %v6934_v57  ;;  %v4212_v37 = vunpack.c.h.bf16 %v6934_v57  ;;  %v4202_v1 = vunpack.c.h.bf16 %v6931_v26 }
 0x25b   : > { %v3044_v17 = vmax.f32 %v2644_v0, 0.0  ;;  %v6716_v53 = vpack.i.bf16 %v4205_v42, %v4198_v34  ;;  %v4209_v62 = vunpack.c.l.bf16 %v6935_v60  ;;  %v4210_v6 = vunpack.c.h.bf16 %v6935_v60 }
 0x25c   : > { %v3154_v45 = vpack.c.bf16 %v3046_v11, %v3045_v7  ;;  %6692 = vperm.xlu0 %6419, %v6691_v8   ;;  %v6721_v56 = vpack.i.bf16 %v4212_v37, %v4211_v58 }
 0x25d   : > { %v3153_v40 = vpack.c.bf16 %v3044_v17, %v3043_v15  ;;  %v6106_v5 = vpop.f32.mrb[104].mxu1  ;;  %6697 = vperm.xlu1 %6430, %v6696_v61   ;;  %v6726_v7 = vpack.i.bf16 %v4209_v62, %v4202_v1  ;;  %v4206_v15 = vunpack.c.h.bf16 %v6933_v35  ;;  %v6936_v17 = vld [vmem:[%s7334_s16 + $0x1f8] sm:$0xff]  }
 0x25e   : > { %v2665_v36 = vadd.f32 %v6106_v5, %v7778_v12  ;;  %v2656_v39 = vpop.f32.mrb[105].mxu1  ;;  %v4213_v18 = vunpack.c.l.bf16 %v6936_v17  ;;  %v4214_v63 = vunpack.c.h.bf16 %v6936_v17 }
 0x25f   : > { %v2657_v4 = vadd.f32 %v7778_v12, %v2656_v39  ;;  %v6107_v9 = vpop.f32.mrb[106].mxu1  ;;  %6232 = vmatprep.mubr.msk.bf16.mxu0 %vm2269_vm2, %v3153_v40 }
 0x260   : > { %v2668_v54 = vadd.f32 %v6107_v9, %v7778_v12  ;;  %v2659_v43 = vpop.f32.mrb[107].mxu1  ;;  %6233 = vmatmul.mubr.msk.bf16.gmra.mrb[100].mxu0 %vm2269_vm2, %v3154_v45  ;;  %v3049_v27 = vmax.f32 %v2665_v36, 0.0  ;;  %6702 = vperm.xlu0 %6419, %v6701_v16   ;;  %v6731_v10 = vpack.i.bf16 %v4213_v18, %v4206_v15  ;;  %v6736_v5 = vpack.i.bf16 %v4214_v63, %v4210_v6 }
 0x261   : > { %v2660_v20 = vadd.f32 %v7778_v12, %v2659_v43  ;;  %v3047_v30 = vmax.f32 %v2657_v4, 0.0  ;;  %6707 = vperm.xlu1 %6430, %v6706_v29  }
 0x262   : > { %v3050_v28 = vmax.f32 %v2668_v54, 0.0 }
 0x263   : > { %v3048_v31 = vmax.f32 %v2660_v20, 0.0 }
 0x264   : > { %v3156_v33 = vpack.c.bf16 %v3050_v28, %v3049_v27  ;;  %6712 = vperm.xlu0 %6419, %v6711_v49  }
 0x265   : > { %v3155_v46 = vpack.c.bf16 %v3048_v31, %v3047_v30  ;;  %v6110_v48 = vpop.f32.mrb[108].mxu1  ;;  %6717 = vperm.xlu1 %6430, %v6716_v53  }
 0x266   : > { %v2681_v51 = vadd.f32 %v6110_v48, %v7778_v12  ;;  %v2672_v50 = vpop.f32.mrb[109].mxu1 }
 0x267   : > { %v2673_v55 = vadd.f32 %v7778_v12, %v2672_v50  ;;  %v6111_v25 = vpop.f32.mrb[110].mxu1  ;;  %6236 = vmatprep.mubr.msk.bf16.mxu0 %vm2269_vm2, %v3155_v46 }
 0x268   : > { %v2684_v59 = vadd.f32 %v6111_v25, %v7778_v12  ;;  %v2675_v19 = vpop.f32.mrb[111].mxu1  ;;  %6237 = vmatmul.mubr.msk.bf16.gmra.mrb[104].mxu0 %vm2269_vm2, %v3156_v33  ;;  %v3053_v0 = vmax.f32 %v2681_v51, 0.0  ;;  %6722 = vperm.xlu0 %6419, %v6721_v56  }
 0x269   : > { %v2676_v24 = vadd.f32 %v7778_v12, %v2675_v19  ;;  %v3051_v11 = vmax.f32 %v2673_v55, 0.0  ;;  %6727 = vperm.xlu1 %6430, %v6726_v7  }
 0x26a   : > { %v3054_v2 = vmax.f32 %v2684_v59, 0.0 }
 0x26b   : > { %v3052_v13 = vmax.f32 %v2676_v24, 0.0 }
 0x26c   : > { %v3158_v23 = vpack.c.bf16 %v3054_v2, %v3053_v0  ;;  %6732 = vperm.xlu0 %6419, %v6731_v10  }
 0x26d   : > { %v3157_v45 = vpack.c.bf16 %v3052_v13, %v3051_v11  ;;  %v6114_v47 = vpop.f32.mrb[112].mxu1  ;;  %6737 = vperm.xlu1 %6430, %v6736_v5  }
 0x26e   : > { %v2697_v38 = vadd.f32 %v6114_v47, %v7778_v12  ;;  %v2688_v40 = vpop.f32.mrb[113].mxu1 }
 0x26f   : > { %v2689_v8 = vadd.f32 %v7778_v12, %v2688_v40  ;;  %v6115_v36 = vpop.f32.mrb[114].mxu1  ;;  %6240 = vmatprep.mubr.msk.bf16.mxu0 %vm2269_vm2, %v3157_v45 }
 0x270   : > { %v2700_v39 = vadd.f32 %v6115_v36, %v7778_v12  ;;  %v2691_v61 = vpop.f32.mrb[115].mxu1  ;;  %6241 = vmatmul.mubr.msk.bf16.gmra.mrb[108].mxu0 %vm2269_vm2, %v3158_v23  ;;  %v3057_v9 = vmax.f32 %v2697_v38, 0.0 }
 0x271   : > { %v2692_v4 = vadd.f32 %v7778_v12, %v2691_v61  ;;  %v3055_v41 = vmax.f32 %v2689_v8, 0.0 }
 0x272   : > { %v3058_v44 = vmax.f32 %v2700_v39, 0.0 }
 0x273   : > { %v3056_v21 = vmax.f32 %v2692_v4, 0.0 }
 0x274   : > { %v3160_v54 = vpack.c.bf16 %v3058_v44, %v3057_v9 }
 0x275   : > { %v3159_v43 = vpack.c.bf16 %v3056_v21, %v3055_v41  ;;  %v6118_v22 = vpop.f32.mrb[116].mxu1 }
 0x276   : > { %v2713_v26 = vadd.f32 %v6118_v22, %v7778_v12  ;;  %v2704_v3 = vpop.f32.mrb[117].mxu1 }
 0x277   : > { %v2705_v20 = vadd.f32 %v7778_v12, %v2704_v3  ;;  %v6119_v16 = vpop.f32.mrb[118].mxu1  ;;  %6244 = vmatprep.mubr.msk.bf16.mxu0 %vm2269_vm2, %v3159_v43 }
 0x278   : > { %v2716_v27 = vadd.f32 %v6119_v16, %v7778_v12  ;;  %v2707_v28 = vpop.f32.mrb[119].mxu1  ;;  %6245 = vmatmul.mubr.msk.bf16.gmra.mrb[112].mxu0 %vm2269_vm2, %v3160_v54  ;;  %v3061_v30 = vmax.f32 %v2713_v26, 0.0 }
 0x279   : > { %v2708_v29 = vadd.f32 %v7778_v12, %v2707_v28  ;;  %v3059_v32 = vmax.f32 %v2705_v20, 0.0 }
 0x27a   : > { %v3062_v31 = vmax.f32 %v2716_v27, 0.0 }
 0x27b   : > { %v3060_v14 = vmax.f32 %v2708_v29, 0.0 }
 0x27c   : > { %v3162_v52 = vpack.c.bf16 %v3062_v31, %v3061_v30 }
 0x27d   : > { %v3161_v33 = vpack.c.bf16 %v3060_v14, %v3059_v32  ;;  %v6122_v34 = vpop.f32.mrb[120].mxu1 }
 0x27e   : > { %v2729_v35 = vadd.f32 %v6122_v34, %v7778_v12  ;;  %v2720_v42 = vpop.f32.mrb[121].mxu1 }
 0x27f   : > { %v2721_v46 = vadd.f32 %v7778_v12, %v2720_v42  ;;  %v6123_v48 = vpop.f32.mrb[122].mxu1  ;;  %6248 = vmatprep.mubr.msk.bf16.mxu0 %vm2269_vm2, %v3161_v33 }
 0x280   : > { %v2732_v49 = vadd.f32 %v6123_v48, %v7778_v12  ;;  %v2723_v51 = vpop.f32.mrb[123].mxu1  ;;  %6249 = vmatmul.mubr.msk.bf16.gmra.mrb[116].mxu0 %vm2269_vm2, %v3162_v52  ;;  %v3065_v53 = vmax.f32 %v2729_v35, 0.0 }
 0x281   : > { %v2724_v50 = vadd.f32 %v7778_v12, %v2723_v51  ;;  %v3063_v25 = vmax.f32 %v2721_v46, 0.0 }
 0x282   : > { %v3066_v55 = vmax.f32 %v2732_v49, 0.0 }
 0x283   : > { %v3064_v57 = vmax.f32 %v2724_v50, 0.0 }
 0x284   : > { %v3164_v58 = vpack.c.bf16 %v3066_v55, %v3065_v53  ;;  %v7963_v53 = vld [vmem:[%s8361_s4] ss:$0 sm:$0xff] }
 0x285   : > { %v3163_v37 = vpack.c.bf16 %v3064_v57, %v3063_v25  ;;  %v6126_v59 = vpop.f32.mrb[124].mxu1 }
 0x286   : > { %v2745_v19 = vadd.f32 %v6126_v59, %v7778_v12  ;;  %v2736_v1 = vpop.f32.mrb[125].mxu1 }
 0x287   : > { %v2737_v60 = vadd.f32 %v7778_v12, %v2736_v1  ;;  %v6127_v62 = vpop.f32.mrb[126].mxu1  ;;  %6252 = vmatprep.mubr.msk.bf16.mxu0 %vm2269_vm2, %v3163_v37 }
 0x288   : > { %v2748_v24 = vadd.f32 %v6127_v62, %v7778_v12  ;;  %v2739_v56 = vpop.f32.mrb[127].mxu1  ;;  %6253 = vmatmul.mubr.msk.bf16.gmra.mrb[120].mxu0 %vm2269_vm2, %v3164_v58  ;;  %v3069_v2 = vmax.f32 %v2745_v19, 0.0 }
 0x289   : > { %v2740_v0 = vadd.f32 %v7778_v12, %v2739_v56  ;;  %v3067_v11 = vmax.f32 %v2737_v60, 0.0 }
 0x28a   : > { %v3070_v7 = vmax.f32 %v2748_v24, 0.0 }
 0x28b   : > { %v3068_v13 = vmax.f32 %v2740_v0, 0.0 }
 0x28c   : > { %v3166_v15 = vpack.c.bf16 %v3070_v7, %v3069_v2 }
 0x28d   : > { %v3165_v17 = vpack.c.bf16 %v3068_v13, %v3067_v11  ;;  %v6130_v18 = vpop.f32.mrb[128].mxu1 }
 0x28e   : > { %v2761_v23 = vadd.f32 %v6130_v18, %v7778_v12  ;;  %v2752_v6 = vpop.f32.mrb[129].mxu1 }
 0x28f   : > { %v2753_v63 = vadd.f32 %v7778_v12, %v2752_v6  ;;  %v6131_v45 = vpop.f32.mrb[130].mxu1  ;;  %6256 = vmatprep.mubr.msk.bf16.mxu0 %vm2269_vm2, %v3165_v17 }
 0x290   : > { %v2764_v47 = vadd.f32 %v6131_v45, %v7778_v12  ;;  %v2755_v10 = vpop.f32.mrb[131].mxu1  ;;  %6257 = vmatmul.mubr.msk.bf16.gmra.mrb[124].mxu0 %vm2269_vm2, %v3166_v15  ;;  %v3073_v40 = vmax.f32 %v2761_v23, 0.0 }
 0x291   : > { %v2756_v38 = vadd.f32 %v7778_v12, %v2755_v10  ;;  %v3071_v8 = vmax.f32 %v2753_v63, 0.0 }
 0x292   : > { %v3074_v5 = vmax.f32 %v2764_v47, 0.0 }
 0x293   : > { %v3072_v36 = vmax.f32 %v2756_v38, 0.0 }
 0x294   : > { %v3168_v39 = vpack.c.bf16 %v3074_v5, %v3073_v40 }
 0x295   : > { %v3167_v61 = vpack.c.bf16 %v3072_v36, %v3071_v8  ;;  %v6134_v4 = vpop.f32.mrb[132].mxu1 }
 0x296   : > { %v2777_v9 = vadd.f32 %v6134_v4, %v7778_v12  ;;  %v2768_v44 = vpop.f32.mrb[133].mxu1 }
 0x297   : > { %v2769_v41 = vadd.f32 %v7778_v12, %v2768_v44  ;;  %v6135_v21 = vpop.f32.mrb[134].mxu1  ;;  %6260 = vmatprep.mubr.msk.bf16.mxu0 %vm2269_vm2, %v3167_v61 }
 0x298   : > { %v2780_v54 = vadd.f32 %v6135_v21, %v7778_v12  ;;  %v2771_v43 = vpop.f32.mrb[135].mxu1  ;;  %6261 = vmatmul.mubr.msk.bf16.gmra.mrb[128].mxu0 %vm2269_vm2, %v3168_v39  ;;  %v3077_v26 = vmax.f32 %v2777_v9, 0.0 }
 0x299   : > { %v2772_v22 = vadd.f32 %v7778_v12, %v2771_v43  ;;  %v3075_v20 = vmax.f32 %v2769_v41, 0.0 }
 0x29a   : > { %v3078_v3 = vmax.f32 %v2780_v54, 0.0 }
 0x29b   : > { %v3076_v16 = vmax.f32 %v2772_v22, 0.0 }
 0x29c   : > { %v3170_v27 = vpack.c.bf16 %v3078_v3, %v3077_v26 }
 0x29d   : > { %v3169_v28 = vpack.c.bf16 %v3076_v16, %v3075_v20  ;;  %v6138_v29 = vpop.f32.mrb[136].mxu1 }
 0x29e   : > { %v2793_v30 = vadd.f32 %v6138_v29, %v7778_v12  ;;  %v2784_v31 = vpop.f32.mrb[137].mxu1 }
 0x29f   : > { %v2785_v32 = vadd.f32 %v7778_v12, %v2784_v31  ;;  %v6139_v14 = vpop.f32.mrb[138].mxu1  ;;  %6264 = vmatprep.mubr.msk.bf16.mxu0 %vm2269_vm2, %v3169_v28 }
 0x2a0   : > { %v2796_v52 = vadd.f32 %v6139_v14, %v7778_v12  ;;  %v2787_v33 = vpop.f32.mrb[139].mxu1  ;;  %6265 = vmatmul.mubr.msk.bf16.gmra.mrb[132].mxu0 %vm2269_vm2, %v3170_v27  ;;  %v3081_v35 = vmax.f32 %v2793_v30, 0.0 }
 0x2a1   : > { %v2788_v34 = vadd.f32 %v7778_v12, %v2787_v33  ;;  %v3079_v46 = vmax.f32 %v2785_v32, 0.0 }
 0x2a2   : > { %v3082_v42 = vmax.f32 %v2796_v52, 0.0 }
 0x2a3   : > { %v3080_v48 = vmax.f32 %v2788_v34, 0.0 }
 0x2a4   : > { %v3172_v49 = vpack.c.bf16 %v3082_v42, %v3081_v35 }
 0x2a5   : > { %v3171_v51 = vpack.c.bf16 %v3080_v48, %v3079_v46  ;;  %v6142_v50 = vpop.f32.mrb[140].mxu1 }
 0x2a6   : > { %v2809_v55 = vadd.f32 %v7963_v53, %v6142_v50  ;;  %v2800_v25 = vpop.f32.mrb[141].mxu1 }
 0x2a7   : > { %v2801_v57 = vadd.f32 %v7963_v53, %v2800_v25  ;;  %v6143_v58 = vpop.f32.mrb[142].mxu1  ;;  %6268 = vmatprep.mubr.msk.bf16.mxu0 %vm2269_vm2, %v3171_v51 }
 0x2a8   : > { %v2812_v12 = vadd.f32 %v7963_v53, %v6143_v58  ;;  %v2803_v37 = vpop.f32.mrb[143].mxu1  ;;  %6269 = vmatmul.mubr.msk.bf16.gmra.mrb[136].mxu0 %vm2269_vm2, %v3172_v49  ;;  %v3085_v19 = vmax.f32 %v2809_v55, 0.0 }
 0x2a9   : > { %v2804_v59 = vadd.f32 %v7963_v53, %v2803_v37  ;;  %v3083_v60 = vmax.f32 %v2801_v57, 0.0 }
 0x2aa   : > { %v3086_v1 = vmax.f32 %v2812_v12, 0.0 }
 0x2ab   : > { %v3084_v62 = vmax.f32 %v2804_v59, 0.0 }
 0x2ac   : > { %v3174_v24 = vpack.c.bf16 %v3086_v1, %v3085_v19 }
 0x2ad   : > { %v3173_v56 = vpack.c.bf16 %v3084_v62, %v3083_v60  ;;  %v6146_v0 = vpop.f32.mrb[144].mxu1 }
 0x2ae   : > { %v2825_v2 = vadd.f32 %v7963_v53, %v6146_v0  ;;  %v2816_v7 = vpop.f32.mrb[145].mxu1 }
 0x2af   : > { %v2817_v11 = vadd.f32 %v7963_v53, %v2816_v7  ;;  %v6147_v13 = vpop.f32.mrb[146].mxu1  ;;  %6272 = vmatprep.mubr.msk.bf16.mxu0 %vm2269_vm2, %v3173_v56 }
 0x2b0   : > { %v2828_v15 = vadd.f32 %v7963_v53, %v6147_v13  ;;  %v2819_v17 = vpop.f32.mrb[147].mxu1  ;;  %6273 = vmatmul.mubr.msk.bf16.gmra.mrb[140].mxu0 %vm2269_vm2, %v3174_v24  ;;  %v3089_v23 = vmax.f32 %v2825_v2, 0.0 }
 0x2b1   : > { %v2820_v18 = vadd.f32 %v7963_v53, %v2819_v17  ;;  %v3087_v63 = vmax.f32 %v2817_v11, 0.0 }
 0x2b2   : > { %v3090_v6 = vmax.f32 %v2828_v15, 0.0 }
 0x2b3   : > { %v3088_v45 = vmax.f32 %v2820_v18, 0.0 }
 0x2b4   : > { %v3176_v47 = vpack.c.bf16 %v3090_v6, %v3089_v23 }
 0x2b5   : > { %v3175_v10 = vpack.c.bf16 %v3088_v45, %v3087_v63  ;;  %v6150_v38 = vpop.f32.mrb[148].mxu1 }
 0x2b6   : > { %v2841_v40 = vadd.f32 %v7963_v53, %v6150_v38  ;;  %v2832_v5 = vpop.f32.mrb[149].mxu1 }
 0x2b7   : > { %v2833_v8 = vadd.f32 %v7963_v53, %v2832_v5  ;;  %v6151_v36 = vpop.f32.mrb[150].mxu1  ;;  %6276 = vmatprep.mubr.msk.bf16.mxu0 %vm2269_vm2, %v3175_v10 }
 0x2b8   : > { %v2844_v39 = vadd.f32 %v7963_v53, %v6151_v36  ;;  %v2835_v61 = vpop.f32.mrb[151].mxu1  ;;  %6277 = vmatmul.mubr.msk.bf16.gmra.mrb[144].mxu0 %vm2269_vm2, %v3176_v47  ;;  %v3093_v9 = vmax.f32 %v2841_v40, 0.0 }
 0x2b9   : > { %v2836_v4 = vadd.f32 %v7963_v53, %v2835_v61  ;;  %v3091_v41 = vmax.f32 %v2833_v8, 0.0 }
 0x2ba   : > { %v3094_v44 = vmax.f32 %v2844_v39, 0.0 }
 0x2bb   : > { %v3092_v21 = vmax.f32 %v2836_v4, 0.0 }
 0x2bc   : > { %v3178_v54 = vpack.c.bf16 %v3094_v44, %v3093_v9 }
 0x2bd   : > { %v3177_v43 = vpack.c.bf16 %v3092_v21, %v3091_v41  ;;  %v6154_v22 = vpop.f32.mrb[152].mxu1 }
 0x2be   : > { %v2857_v26 = vadd.f32 %v7963_v53, %v6154_v22  ;;  %v2848_v3 = vpop.f32.mrb[153].mxu1 }
 0x2bf   : > { %v2849_v20 = vadd.f32 %v7963_v53, %v2848_v3  ;;  %v6155_v16 = vpop.f32.mrb[154].mxu1  ;;  %6280 = vmatprep.mubr.msk.bf16.mxu0 %vm2269_vm2, %v3177_v43 }
 0x2c0   : > { %v2860_v27 = vadd.f32 %v7963_v53, %v6155_v16  ;;  %v2851_v28 = vpop.f32.mrb[155].mxu1  ;;  %6281 = vmatmul.mubr.msk.bf16.gmra.mrb[148].mxu0 %vm2269_vm2, %v3178_v54  ;;  %v3097_v30 = vmax.f32 %v2857_v26, 0.0 }
 0x2c1   : > { %v2852_v29 = vadd.f32 %v7963_v53, %v2851_v28  ;;  %v3095_v32 = vmax.f32 %v2849_v20, 0.0 }
 0x2c2   : > { %v3098_v31 = vmax.f32 %v2860_v27, 0.0 }
 0x2c3   : > { %v3096_v14 = vmax.f32 %v2852_v29, 0.0 }
 0x2c4   : > { %v3180_v52 = vpack.c.bf16 %v3098_v31, %v3097_v30 }
 0x2c5   : > { %v3179_v33 = vpack.c.bf16 %v3096_v14, %v3095_v32  ;;  %v6158_v34 = vpop.f32.mrb[156].mxu1  ;;  %v6422_v32 = vpop.permute.xlu0 %6421 }
 0x2c6   : > { %v2873_v35 = vadd.f32 %v7963_v53, %v6158_v34  ;;  %v2864_v42 = vpop.f32.mrb[157].mxu1 }
 0x2c7   : > { %v2865_v46 = vadd.f32 %v7963_v53, %v2864_v42  ;;  %v6159_v48 = vpop.f32.mrb[158].mxu1  ;;  %6284 = vmatprep.mubr.msk.bf16.mxu0 %vm2269_vm2, %v3179_v33 }
 0x2c8   : > { %v2876_v49 = vadd.f32 %v7963_v53, %v6159_v48  ;;  %v2867_v51 = vpop.f32.mrb[159].mxu1  ;;  %6285 = vmatmul.mubr.msk.bf16.gmra.mrb[152].mxu0 %vm2269_vm2, %v3180_v52  ;;  %v3101_v55 = vmax.f32 %v2873_v35, 0.0  ;;  %v8022_v48 = vld [vmem:[%s8363_s6] ss:$0 sm:$0xff] }
 0x2c9   : > { %v2868_v50 = vadd.f32 %v7963_v53, %v2867_v51  ;;  %v3099_v57 = vmax.f32 %v2865_v46, 0.0 }
 0x2ca   : > { %v3102_v25 = vmax.f32 %v2876_v49, 0.0 }
 0x2cb   : > { %v3100_v58 = vmax.f32 %v2868_v50, 0.0 }
 0x2cc   : > { %v3182_v12 = vpack.c.bf16 %v3102_v25, %v3101_v55  ;;  %v8024_v55 = vpop.permute.xlu1 %6432 }
 0x2cd   : > { %v3181_v37 = vpack.c.bf16 %v3100_v58, %v3099_v57  ;;  %v6162_v59 = vpop.f32.mrb[160].mxu1  ;;  %v6427_v58 = vpop.permute.xlu0 %6426 }
 0x2ce   : > { %v2889_v19 = vadd.f32 %v7963_v53, %v6162_v59  ;;  %v2880_v1 = vpop.f32.mrb[161].mxu1 }
 0x2cf   : > { %v2881_v60 = vadd.f32 %v7963_v53, %v2880_v1  ;;  %v6163_v62 = vpop.f32.mrb[162].mxu1  ;;  %6288 = vmatprep.mubr.msk.bf16.mxu0 %vm2269_vm2, %v3181_v37 }
 0x2d0   : > { %v2892_v24 = vadd.f32 %v7963_v53, %v6163_v62  ;;  %v2883_v56 = vpop.f32.mrb[163].mxu1  ;;  %6289 = vmatmul.mubr.msk.bf16.gmra.mrb[156].mxu0 %vm2269_vm2, %v3182_v12  ;;  %v3105_v2 = vmax.f32 %v2889_v19, 0.0 }
 0x2d1   : > { %v2884_v0 = vadd.f32 %v7963_v53, %v2883_v56  ;;  %v3103_v11 = vmax.f32 %v2881_v60, 0.0  ;;  %v6424_v60 = vunpack.i.h.bf16 %v6422_v32 }
 0x2d2   : > { %v3106_v7 = vmax.f32 %v2892_v24, 0.0 }
 0x2d3   : > { %v3104_v13 = vmax.f32 %v2884_v0, 0.0 }
 0x2d4   : > { %v3184_v15 = vpack.c.bf16 %v3106_v7, %v3105_v2  ;;  %v6423_v2 = vunpack.i.l.bf16 %v6422_v32 }
 0x2d5   : > { %v3183_v17 = vpack.c.bf16 %v3104_v13, %v3103_v11  ;;  %v6166_v18 = vpop.f32.mrb[164].mxu1 }
 0x2d6   : > { %v2905_v23 = vadd.f32 %v7963_v53, %v6166_v18  ;;  %v2896_v6 = vpop.f32.mrb[165].mxu1 }
 0x2d7   : > { %v2897_v63 = vadd.f32 %v7963_v53, %v2896_v6  ;;  %v6167_v45 = vpop.f32.mrb[166].mxu1  ;;  %6292 = vmatprep.mubr.msk.bf16.mxu0 %vm2269_vm2, %v3183_v17  ;;  %v6428_v6 = vunpack.i.l.bf16 %v6427_v58 }
 0x2d8   : > { %v2908_v47 = vadd.f32 %v7963_v53, %v6167_v45  ;;  %v2899_v10 = vpop.f32.mrb[167].mxu1  ;;  %6293 = vmatmul.mubr.msk.bf16.gmra.mrb[160].mxu0 %vm2269_vm2, %v3184_v15  ;;  %v3109_v40 = vmax.f32 %v2905_v23, 0.0 }
 0x2d9   : > { %v2900_v38 = vadd.f32 %v7963_v53, %v2899_v10  ;;  %v3107_v8 = vmax.f32 %v2897_v63, 0.0  ;;  %v6429_v10 = vunpack.i.h.bf16 %v6427_v58 }
 0x2da   : > { %v3110_v5 = vmax.f32 %v2908_v47, 0.0  ;;  %v8036_v47 = vpop.permute.xlu1 %6437 }
 0x2db   : > { %v3108_v36 = vmax.f32 %v2900_v38, 0.0 }
 0x2dc   : > { %v3186_v39 = vpack.c.bf16 %v3110_v5, %v3109_v40 }
 0x2dd   : > { %v3185_v61 = vpack.c.bf16 %v3108_v36, %v3107_v8  ;;  %v6170_v4 = vpop.f32.mrb[168].mxu1 }
 0x2de   : > { %v2921_v9 = vadd.f32 %v7963_v53, %v6170_v4  ;;  %v2912_v44 = vpop.f32.mrb[169].mxu1 }
 0x2df   : > { %v2913_v41 = vadd.f32 %v7963_v53, %v2912_v44  ;;  %v6171_v21 = vpop.f32.mrb[170].mxu1  ;;  %6296 = vmatprep.mubr.msk.bf16.mxu0 %vm2269_vm2, %v3185_v61  ;;  %v6434_v44 = vunpack.i.l.bf16 %v8024_v55 }
 0x2e0   : > { %v2924_v54 = vadd.f32 %v7963_v53, %v6171_v21  ;;  %v2915_v43 = vpop.f32.mrb[171].mxu1  ;;  %6297 = vmatmul.mubr.msk.bf16.gmra.mrb[164].mxu0 %vm2269_vm2, %v3186_v39  ;;  %v3113_v26 = vmax.f32 %v2921_v9, 0.0 }
 0x2e1   : > { %v2916_v22 = vadd.f32 %v7963_v53, %v2915_v43  ;;  %v3111_v20 = vmax.f32 %v2913_v41, 0.0  ;;  %v8041_v43 = vpop.permute.xlu0 %6442 }
 0x2e2   : > { %v3114_v3 = vmax.f32 %v2924_v54, 0.0  ;;  %v6439_v54 = vunpack.i.l.bf16 %v8036_v47 }
 0x2e3   : > { %v3112_v16 = vmax.f32 %v2916_v22, 0.0 }
 0x2e4   : > { %v3188_v27 = vpack.c.bf16 %v3114_v3, %v3113_v26 }
 0x2e5   : > { %v3187_v28 = vpack.c.bf16 %v3112_v16, %v3111_v20  ;;  %v6174_v29 = vpop.f32.mrb[172].mxu1 }
 0x2e6   : > { %v2937_v30 = vadd.f32 %v7963_v53, %v6174_v29  ;;  %v2928_v31 = vpop.f32.mrb[173].mxu1  ;;  %v6440_v29 = vunpack.i.h.bf16 %v8036_v47 }
 0x2e7   : > { %v2929_v14 = vadd.f32 %v7963_v53, %v2928_v31  ;;  %v6175_v52 = vpop.f32.mrb[174].mxu1  ;;  %6300 = vmatprep.mubr.msk.bf16.mxu0 %vm2269_vm2, %v3187_v28  ;;  %v6435_v28 = vunpack.i.h.bf16 %v8024_v55 }
 0x2e8   : > { %v2940_v33 = vadd.f32 %v7963_v53, %v6175_v52  ;;  %v2931_v34 = vpop.f32.mrb[175].mxu1  ;;  %6301 = vmatmul.mubr.msk.bf16.gmra.mrb[168].mxu0 %vm2269_vm2, %v3188_v27  ;;  %v3117_v42 = vmax.f32 %v2937_v30, 0.0 }
 0x2e9   : > { %v2932_v35 = vadd.f32 %v7963_v53, %v2931_v34  ;;  %v3115_v49 = vmax.f32 %v2929_v14, 0.0 }
 0x2ea   : > { %v3118_v46 = vmax.f32 %v2940_v33, 0.0 }
 0x2eb   : > { %v3116_v51 = vmax.f32 %v2932_v35, 0.0  ;;  %v6198_v50 = vpop.f32.mrb[64].mxu0 }
 0x2ec   : > { %v3190_v25 = vpack.c.bf16 %v3118_v46, %v3117_v42  ;;  %v3448_v57 = vpop.f32.mrb[65].mxu0  ;;  %v3457_v37 = vadd.f32 %v6198_v50, %v8022_v48  ;;  %v8050_v46 = vpop.permute.xlu1 %6447 }
 0x2ed   : > { %v3189_v12 = vpack.c.bf16 %v3116_v51, %v3115_v49  ;;  %v3449_v59 = vadd.f32 %v8022_v48, %v3448_v57  ;;  %v6178_v19 = vpop.f32.mrb[176].mxu1  ;;  %v6199_v1 = vpop.f32.mrb[66].mxu0 }
 0x2ee   : > { %v2953_v62 = vadd.f32 %v7963_v53, %v6178_v19  ;;  %v3460_v24 = vadd.f32 %v6199_v1, %v8022_v48  ;;  %v2944_v56 = vpop.f32.mrb[177].mxu1  ;;  %v3451_v0 = vpop.f32.mrb[67].mxu0  ;;  %v3961_v23 = vmax.f32 %v3457_v37, 0.0  ;;  %v6450_v37 = vunpack.i.h.bf16 %v8050_v46 }
 0x2ef   : > { %v3959_v7 = vmax.f32 %v3449_v59, 0.0  ;;  %v2945_v11 = vadd.f32 %v7963_v53, %v2944_v56  ;;  %v3452_v13 = vadd.f32 %v8022_v48, %v3451_v0  ;;  %v6179_v15 = vpop.f32.mrb[178].mxu1  ;;  %6304 = vmatprep.mubr.msk.bf16.mxu0 %vm2269_vm2, %v3189_v12  ;;  %v6444_v12 = vunpack.i.l.bf16 %v8041_v43 }
 0x2f0   : > { %v2956_v17 = vadd.f32 %v7963_v53, %v6179_v15  ;;  %v2947_v18 = vpop.f32.mrb[179].mxu1  ;;  %6305 = vmatmul.mubr.msk.bf16.gmra.mrb[172].mxu0 %vm2269_vm2, %v3190_v25  ;;  %v3121_v38 = vmax.f32 %v2953_v62, 0.0  ;;  %v3962_v40 = vmax.f32 %v3460_v24, 0.0  ;;  %v4857_v22 = vmul.f32 %v6428_v6, %v3961_v23 }
 0x2f1   : > { %v3960_v63 = vmax.f32 %v3452_v13, 0.0  ;;  %v2948_v45 = vadd.f32 %v7963_v53, %v2947_v18  ;;  %v4855_v8 = vmul.f32 %v6423_v2, %v3959_v7  ;;  %v3119_v36 = vmax.f32 %v2945_v11, 0.0  ;;  %v8060_v18 = vpop.permute.xlu0 %6452 }
 0x2f2   : > { %v3122_v5 = vmax.f32 %v2956_v17, 0.0  ;;  %v4858_v52 = vmul.f32 %v6429_v10, %v3962_v40  ;;  %v6449_v25 = vunpack.i.l.bf16 %v8050_v46  ;;  %v6445_v0 = vunpack.i.h.bf16 %v8041_v43 }
 0x2f3   : > { %v4856_v39 = vmul.f32 %v6424_v60, %v3960_v63  ;;  %v3120_v61 = vmax.f32 %v2948_v45, 0.0  ;;  %v6202_v4 = vpop.f32.mrb[68].mxu0 }
 0x2f4   : > { %v3192_v9 = vpack.c.bf16 %v3122_v5, %v3121_v38  ;;  %v3473_v41 = vadd.f32 %v6202_v4, %v8022_v48  ;;  %v3464_v21 = vpop.f32.mrb[69].mxu0 }
 0x2f5   : > { %v4987_v26 = vmax.f32 %v4855_v8, %v4856_v39  ;;  %v3191_v3 = vpack.c.bf16 %v3120_v61, %v3119_v36  ;;  %v3465_v20 = vadd.f32 %v8022_v48, %v3464_v21  ;;  %v6182_v16 = vpop.f32.mrb[180].mxu1  ;;  %v6203_v27 = vpop.f32.mrb[70].mxu0 }
 0x2f6   : > { %v2969_v30 = vadd.f32 %v7963_v53, %v6182_v16  ;;  %v3476_v31 = vadd.f32 %v6203_v27, %v8022_v48  ;;  %v2960_v32 = vpop.f32.mrb[181].mxu1  ;;  %v3467_v14 = vpop.f32.mrb[71].mxu0  ;;  %v3965_v49 = vmax.f32 %v3473_v41, 0.0 }
 0x2f7   : > { %v4988_v33 = vmax.f32 %v4987_v26, %v4857_v22  ;;  %v3963_v34 = vmax.f32 %v3465_v20, 0.0  ;;  %v3468_v35 = vadd.f32 %v8022_v48, %v3467_v14  ;;  %v6183_v42 = vpop.f32.mrb[182].mxu1  ;;  %6308 = vmatprep.mubr.msk.bf16.mxu0 %vm2269_vm2, %v3191_v3  ;;  %v2961_v51 = vadd.f32 %v7963_v53, %v2960_v32  ;;  %v8067_v41 = vpop.permute.xlu1 %6457 }
 0x2f8   : > { %v2972_v50 = vadd.f32 %v7963_v53, %v6183_v42  ;;  %v2963_v55 = vpop.f32.mrb[183].mxu1  ;;  %6309 = vmatmul.mubr.msk.bf16.gmra.mrb[176].mxu0 %vm2269_vm2, %v3192_v9  ;;  %v3125_v59 = vmax.f32 %v2969_v30, 0.0  ;;  %v3966_v19 = vmax.f32 %v3476_v31, 0.0  ;;  %v4861_v7 = vmul.f32 %v6439_v54, %v3965_v49 }
 0x2f9   : > { %v4989_v57 = vmax.f32 %v4988_v33, %v4858_v52  ;;  %v3964_v58 = vmax.f32 %v3468_v35, 0.0  ;;  %v2964_v60 = vadd.f32 %v7963_v53, %v2963_v55  ;;  %v4859_v24 = vmul.f32 %v6434_v44, %v3963_v34 }
 0x2fa   : > { %v3126_v1 = vmax.f32 %v2972_v50, 0.0  ;;  %v3123_v11 = vmax.f32 %v2961_v51, 0.0  ;;  %v4862_v38 = vmul.f32 %v6440_v29, %v3966_v19  ;;  %v6454_v54 = vunpack.i.l.bf16 %v8060_v18  ;;  %v8078_v50 = vpop.permute.xlu0 %6462 }
 0x2fb   : > { %v4990_v62 = vrot.slane %v4989_v57, 4  ;;  %v4860_v56 = vmul.f32 %v6435_v28, %v3964_v58  ;;  %v6206_v2 = vpop.f32.mrb[72].mxu0  ;;  %v3124_v15 = vmax.f32 %v2964_v60, 0.0  ;;  %v6460_v22 = vunpack.i.h.bf16 %v8067_v41 }
 0x2fc   : > { %v3194_v13 = vpack.c.bf16 %v3126_v1, %v3125_v59  ;;  %v3480_v17 = vpop.f32.mrb[73].mxu0  ;;  %v3489_v63 = vadd.f32 %v6206_v2, %v8022_v48  ;;  %v6459_v26 = vunpack.i.l.bf16 %v8067_v41  ;;  %v6455_v28 = vunpack.i.h.bf16 %v8060_v18 }
 0x2fd   : > { %v4991_v23 = vmax.f32 %v4989_v57, %v4990_v62  ;;  %v4996_v6 = vmax.f32 %v4859_v24, %v4860_v56  ;;  %v3481_v45 = vadd.f32 %v8022_v48, %v3480_v17  ;;  %v6186_v47 = vpop.f32.mrb[184].mxu1  ;;  %v6207_v10 = vpop.f32.mrb[74].mxu0  ;;  %v3193_v40 = vpack.c.bf16 %v3124_v15, %v3123_v11 }
 0x2fe   : > { %v2985_v5 = vadd.f32 %v7963_v53, %v6186_v47  ;;  %v3492_v8 = vadd.f32 %v6207_v10, %v8022_v48  ;;  %v2976_v36 = vpop.f32.mrb[185].mxu1  ;;  %v3483_v39 = vpop.f32.mrb[75].mxu0  ;;  %v3969_v27 = vmax.f32 %v3489_v63, 0.0 }
 0x2ff   : > { %v4992_v61 = vrot.slane %v4991_v23, 2  ;;  %v4997_v4 = vmax.f32 %v4996_v6, %v4861_v7  ;;  %v3967_v9 = vmax.f32 %v3481_v45, 0.0  ;;  %v2977_v44 = vadd.f32 %v7963_v53, %v2976_v36  ;;  %v6187_v21 = vpop.f32.mrb[186].mxu1  ;;  %6312 = vmatprep.mubr.msk.bf16.mxu0 %vm2269_vm2, %v3193_v40 }
 0x300   : > { %v3484_v43 = vadd.f32 %v8022_v48, %v3483_v39  ;;  %v2979_v3 = vpop.f32.mrb[187].mxu1  ;;  %6313 = vmatmul.mubr.msk.bf16.gmra.mrb[180].mxu0 %vm2269_vm2, %v3194_v13  ;;  %v3129_v29 = vmax.f32 %v2985_v5, 0.0  ;;  %v2988_v31 = vadd.f32 %v7963_v53, %v6187_v21  ;;  %v3970_v33 = vmax.f32 %v3492_v8, 0.0 }
 0x301   : > { %v4993_v20 = vmax.f32 %v4991_v23, %v4992_v61  ;;  %v4998_v16 = vmax.f32 %v4997_v4, %v4862_v38  ;;  %v2980_v32 = vadd.f32 %v7963_v53, %v2979_v3  ;;  %v4863_v52 = vmul.f32 %v6444_v12, %v3967_v9 }
 0x302   : > { %v3968_v30 = vmax.f32 %v3484_v43, 0.0  ;;  %v3127_v34 = vmax.f32 %v2977_v44, 0.0  ;;  %v3130_v49 = vmax.f32 %v2988_v31, 0.0  ;;  %v4865_v19 = vmul.f32 %v6449_v25, %v3969_v27 }
 0x303   : > { %v4999_v14 = vrot.slane %v4998_v16, 4  ;;  %v6210_v35 = vpop.f32.mrb[76].mxu0  ;;  %v3128_v51 = vmax.f32 %v2980_v32, 0.0  ;;  %v4994_v58 = vrot.slane %v4993_v20, 1  ;;  %v6464_v13 = vunpack.i.l.bf16 %v8078_v50 }
 0x304   : > { %v4864_v42 = vmul.f32 %v6445_v0, %v3968_v30  ;;  %v3505_v55 = vadd.f32 %v6210_v35, %v8022_v48  ;;  %v3496_v57 = vpop.f32.mrb[77].mxu0  ;;  %v3196_v24 = vpack.c.bf16 %v3130_v49, %v3129_v29  ;;  %v4866_v25 = vmul.f32 %v6450_v37, %v3970_v33 }
 0x305   : > { %v5000_v59 = vmax.f32 %v4998_v16, %v4999_v14  ;;  %v3497_v1 = vadd.f32 %v8022_v48, %v3496_v57  ;;  %v6190_v12 = vpop.f32.mrb[188].mxu1  ;;  %v6211_v60 = vpop.f32.mrb[78].mxu0  ;;  %v3195_v56 = vpack.c.bf16 %v3128_v51, %v3127_v34  ;;  %v4995_v47 = vmax.f32 %v4993_v20, %v4994_v58 }
 0x306   : > { %v5005_v62 = vmax.f32 %v4863_v52, %v4864_v42  ;;  %v3973_v0 = vmax.f32 %v3505_v55, 0.0  ;;  %v2992_v2 = vpop.f32.mrb[189].mxu1  ;;  %v3499_v7 = vpop.f32.mrb[79].mxu0  ;;  %v3508_v17 = vadd.f32 %v6211_v60, %v8022_v48  ;;  %v3001_v6 = vadd.f32 %v7963_v53, %v6190_v12 }
 0x307   : > { %v5001_v11 = vrot.slane %v5000_v59, 2  ;;  %v3971_v15 = vmax.f32 %v3497_v1, 0.0  ;;  %v6191_v18 = vpop.f32.mrb[190].mxu1  ;;  %v3500_v63 = vadd.f32 %v8022_v48, %v3499_v7  ;;  %6316 = vmatprep.mubr.msk.bf16.mxu0 %vm2269_vm2, %v3195_v56  ;;  %v6465_v38 = vunpack.i.h.bf16 %v8078_v50  ;;  %v6468_v42 = vpop.permute.xlu1 %6467 }
 0x308   : > { %v5006_v23 = vmax.f32 %v5005_v62, %v4865_v19  ;;  %v2995_v45 = vpop.f32.mrb[191].mxu1  ;;  %v2993_v40 = vadd.f32 %v7963_v53, %v2992_v2  ;;  %6317 = vmatmul.mubr.msk.bf16.gmra.mrb[184].mxu0 %vm2269_vm2, %v3196_v24  ;;  %v4869_v8 = vmul.f32 %v6459_v26, %v3973_v0  ;;  %v3004_v37 = vadd.f32 %v7963_v53, %v6191_v18  ;;  %v6473_v60 = vpop.permute.xlu0 %6472 }
 0x309   : > { %v5002_v10 = vmax.f32 %v5000_v59, %v5001_v11  ;;  %v3972_v46 = vmax.f32 %v3500_v63, 0.0  ;;  %v4867_v39 = vmul.f32 %v6454_v54, %v3971_v15  ;;  %v3974_v61 = vmax.f32 %v3508_v17, 0.0 }
 0x30a   : > { %v5007_v5 = vmax.f32 %v5006_v23, %v4866_v25  ;;  %v2996_v4 = vadd.f32 %v7963_v53, %v2995_v45  ;;  %v3133_v21 = vmax.f32 %v3001_v6, 0.0  ;;  %v3134_v3 = vmax.f32 %v3004_v37, 0.0 }
 0x30b   : > { %v5003_v36 = vrot.slane %v5002_v10, 1  ;;  %v6214_v9 = vpop.f32.mrb[80].mxu0  ;;  %v4868_v43 = vmul.f32 %v6455_v28, %v3972_v46  ;;  %v3131_v27 = vmax.f32 %v2993_v40, 0.0  ;;  %v4870_v33 = vmul.f32 %v6460_v22, %v3974_v61  ;;  %v6478_v40 = vpop.permute.xlu1 %6477 }
 0x30c   : > { %v5008_v44 = vrot.slane %v5007_v5, 4  ;;  %v3512_v20 = vpop.f32.mrb[81].mxu0  ;;  %v3132_v29 = vmax.f32 %v2996_v4, 0.0  ;;  %v3198_v14 = vpack.c.bf16 %v3134_v3, %v3133_v21  ;;  %v3521_v54 = vadd.f32 %v6214_v9, %v8022_v48  ;;  %v6483_v9 = vpop.permute.xlu0 %6482 }
 0x30d   : > { %v5004_v16 = vmax.f32 %v5002_v10, %v5003_v36  ;;  %v3513_v30 = vadd.f32 %v8022_v48, %v3512_v20  ;;  %v6215_v26 = vpop.f32.mrb[82].mxu0  ;;  %v5014_v32 = vmax.f32 %v4867_v39, %v4868_v43  ;;  %v6469_v55 = vunpack.i.l.bf16 %v6468_v42 }
 0x30e   : > { %v5009_v31 = vmax.f32 %v5007_v5, %v5008_v44  ;;  %v3515_v52 = vpop.f32.mrb[83].mxu0  ;;  %v3197_v28 = vpack.c.bf16 %v3132_v29, %v3131_v27  ;;  %v3524_v51 = vadd.f32 %v6215_v26, %v8022_v48  ;;  %v3977_v59 = vmax.f32 %v3521_v54, 0.0 }
 0x30f   : > { %v5308_v53 = vsel %vm5307_vm3, %v5004_v16, %v4995_v47  ;;  %v3975_v34 = vmax.f32 %v3513_v30, 0.0  ;;  %v5015_v49 = vmax.f32 %v5014_v32, %v4869_v8  ;;  %v3516_v50 = vadd.f32 %v8022_v48, %v3515_v52 }
 0x310   : > { %v5010_v35 = vrot.slane %v5009_v31, 2  ;;  %6320 = vmatprep.mubr.msk.bf16.mxu0 %vm2269_vm2, %v3197_v28  ;;  %v6470_v41 = vunpack.i.h.bf16 %v6468_v42  ;;  %v3978_v24 = vmax.f32 %v3524_v51, 0.0  ;;  %v6475_v2 = vunpack.i.h.bf16 %v6473_v60 }
 0x311   : > { %v5016_v58 = vmax.f32 %v5015_v49, %v4870_v33  ;;  %v3976_v19 = vmax.f32 %v3516_v50, 0.0  ;;  %6321 = vmatmul.mubr.msk.bf16.gmra.mrb[188].mxu0 %vm2269_vm2, %v3198_v14  ;;  %v4871_v22 = vmul.f32 %v6464_v13, %v3975_v34  ;;  %v4873_v25 = vmul.f32 %v6469_v55, %v3977_v59  ;;  %v6488_v50 = vpop.permute.xlu1 %6487 }
 0x312   : > { %v5011_v57 = vmax.f32 %v5009_v31, %v5010_v35  ;;  %v6474_v13 = vunpack.i.l.bf16 %v6473_v60  ;;  %v4874_v5 = vmul.f32 %v6470_v41, %v3978_v24  ;;  %v6479_v46 = vunpack.i.l.bf16 %v6478_v40 }
 0x313   : > { %v6218_v1 = vpop.f32.mrb[84].mxu0  ;;  %v5017_v62 = vrot.slane %v5016_v58, 4  ;;  %v4872_v56 = vmul.f32 %v6465_v38, %v3976_v19  ;;  %v6480_v4 = vunpack.i.h.bf16 %v6478_v40  ;;  %v6485_v16 = vunpack.i.h.bf16 %v6483_v9 }
 0x314   : > { %v5012_v12 = vrot.slane %v5011_v57, 1  ;;  %v3528_v0 = vpop.f32.mrb[85].mxu0  ;;  %v3537_v7 = vadd.f32 %v6218_v1, %v8022_v48  ;;  %v6484_v52 = vunpack.i.l.bf16 %v6483_v9  ;;  %v6490_v41 = vunpack.i.h.bf16 %v6488_v50 }
 0x315   : > { %v3529_v11 = vadd.f32 %v8022_v48, %v3528_v0  ;;  %v6219_v15 = vpop.f32.mrb[86].mxu0  ;;  %v5018_v18 = vmax.f32 %v5016_v58, %v5017_v62  ;;  %v5023_v23 = vmax.f32 %v4871_v22, %v4872_v56 }
 0x316   : > { %v5013_v17 = vmax.f32 %v5011_v57, %v5012_v12  ;;  %v3531_v6 = vpop.f32.mrb[87].mxu0  ;;  %v3540_v45 = vadd.f32 %v6219_v15, %v8022_v48  ;;  %v3981_v37 = vmax.f32 %v3537_v7, 0.0  ;;  %v6489_v57 = vunpack.i.l.bf16 %v6488_v50  ;;  %v6493_v12 = vpop.permute.xlu0 %6492 }
 0x317   : > { %v3979_v63 = vmax.f32 %v3529_v11, 0.0  ;;  %v3532_v47 = vadd.f32 %v8022_v48, %v3531_v6  ;;  %v5019_v38 = vrot.slane %v5018_v18, 2  ;;  %v5024_v8 = vmax.f32 %v5023_v23, %v4873_v25 }
 0x318   : > { %v5310_v10 = vsel %vm5309_vm4, %v5013_v17, %v5308_v53  ;;  %v3982_v21 = vmax.f32 %v3540_v45, 0.0  ;;  %v4877_v30 = vmul.f32 %v6479_v46, %v3981_v37  ;;  %v6495_v0 = vunpack.i.h.bf16 %v6493_v12 }
 0x319   : > { %v3980_v36 = vmax.f32 %v3532_v47, 0.0  ;;  %v5020_v39 = vmax.f32 %v5018_v18, %v5019_v38  ;;  %v5025_v61 = vmax.f32 %v5024_v8, %v4874_v5  ;;  %v4875_v44 = vmul.f32 %v6474_v13, %v3979_v63 }
 0x31a   : > { %v4878_v34 = vmul.f32 %v6480_v4, %v3982_v21  ;;  %v6494_v6 = vunpack.i.l.bf16 %v6493_v12 }
 0x31b   : > { %v4876_v43 = vmul.f32 %v6475_v2, %v3980_v36  ;;  %v6222_v3 = vpop.f32.mrb[88].mxu0  ;;  %v5021_v20 = vrot.slane %v5020_v39, 1  ;;  %v5026_v27 = vrot.slane %v5025_v61, 4 }
 0x31c   : > { %v3544_v29 = vpop.f32.mrb[89].mxu0  ;;  %v3553_v31 = vadd.f32 %v6222_v3, %v8022_v48 }
 0x31d   : > { %v5032_v26 = vmax.f32 %v4875_v44, %v4876_v43  ;;  %v3545_v32 = vadd.f32 %v8022_v48, %v3544_v29  ;;  %v6223_v14 = vpop.f32.mrb[90].mxu0  ;;  %v5022_v54 = vmax.f32 %v5020_v39, %v5021_v20  ;;  %v5027_v53 = vmax.f32 %v5025_v61, %v5026_v27 }
 0x31e   : > { %v3556_v33 = vadd.f32 %v6223_v14, %v8022_v48  ;;  %v3547_v28 = vpop.f32.mrb[91].mxu0  ;;  %v3985_v59 = vmax.f32 %v3553_v31, 0.0 }
 0x31f   : > { %v5033_v35 = vmax.f32 %v5032_v26, %v4877_v30  ;;  %v3983_v42 = vmax.f32 %v3545_v32, 0.0  ;;  %v3548_v49 = vadd.f32 %v8022_v48, %v3547_v28  ;;  %v5312_v51 = vsel %vm5311_vm5, %v5022_v54, %v5310_v10  ;;  %v6498_v10 = vpop.permute.xlu1 %6497  ;;  %v6503_v30 = vpop.permute.xlu0 %6502 }
 0x320   : > { %v5028_v55 = vrot.slane %v5027_v53, 2  ;;  %v3986_v1 = vmax.f32 %v3556_v33, 0.0  ;;  %v4881_v17 = vmul.f32 %v6489_v57, %v3985_v59  ;;  %v6499_v37 = vunpack.i.l.bf16 %v6498_v10 }
 0x321   : > { %v5034_v58 = vmax.f32 %v5033_v35, %v4878_v34  ;;  %v3984_v19 = vmax.f32 %v3548_v49, 0.0  ;;  %v4879_v62 = vmul.f32 %v6484_v52, %v3983_v42  ;;  %v6500_v9 = vunpack.i.h.bf16 %v6498_v10 }
 0x322   : > { %v5029_v22 = vmax.f32 %v5027_v53, %v5028_v55  ;;  %v4882_v63 = vmul.f32 %v6490_v41, %v3986_v1  ;;  %v6505_v52 = vunpack.i.h.bf16 %v6503_v30  ;;  %v6504_v49 = vunpack.i.l.bf16 %v6503_v30 }
 0x323   : > { %v5035_v60 = vrot.slane %v5034_v58, 4  ;;  %v4880_v24 = vmul.f32 %v6485_v16, %v3984_v19  ;;  %v6226_v56 = vpop.f32.mrb[92].mxu0  ;;  %v6508_v57 = vpop.permute.xlu1 %6507 }
 0x324   : > { %v5030_v2 = vrot.slane %v5029_v22, 1  ;;  %v3569_v7 = vadd.f32 %v6226_v56, %v8022_v48  ;;  %v3560_v11 = vpop.f32.mrb[93].mxu0  ;;  %v6509_v19 = vunpack.i.l.bf16 %v6508_v57  ;;  %v6510_v1 = vunpack.i.h.bf16 %v6508_v57 }
 0x325   : > { %v5036_v15 = vmax.f32 %v5034_v58, %v5035_v60  ;;  %v5041_v18 = vmax.f32 %v4879_v62, %v4880_v24  ;;  %v3561_v25 = vadd.f32 %v8022_v48, %v3560_v11  ;;  %v6227_v23 = vpop.f32.mrb[94].mxu0  ;;  %v6513_v24 = vpop.permute.xlu0 %6512 }
 0x326   : > { %v5031_v13 = vmax.f32 %v5029_v22, %v5030_v2  ;;  %v3572_v45 = vadd.f32 %v6227_v23, %v8022_v48  ;;  %v3563_v47 = vpop.f32.mrb[95].mxu0  ;;  %v3989_v36 = vmax.f32 %v3569_v7, 0.0 }
 0x327   : > { %v5037_v38 = vrot.slane %v5036_v15, 2  ;;  %v5042_v40 = vmax.f32 %v5041_v18, %v4881_v17  ;;  %v3987_v5 = vmax.f32 %v3561_v25, 0.0  ;;  %v3564_v8 = vadd.f32 %v8022_v48, %v3563_v47  ;;  %v6518_v10 = vpop.permute.xlu1 %6517 }
 0x328   : > { %v5314_v46 = vsel %vm5313_vm6, %v5031_v13, %v5312_v51  ;;  %v3990_v44 = vmax.f32 %v3572_v45, 0.0  ;;  %v4885_v27 = vmul.f32 %v6499_v37, %v3989_v36 }
 0x329   : > { %v5038_v39 = vmax.f32 %v5036_v15, %v5037_v38  ;;  %v5043_v61 = vmax.f32 %v5042_v40, %v4882_v63  ;;  %v3988_v4 = vmax.f32 %v3564_v8, 0.0  ;;  %v4883_v3 = vmul.f32 %v6494_v6, %v3987_v5 }
 0x32a   : > { %v4886_v35 = vmul.f32 %v6500_v9, %v3990_v44  ;;  %v6515_v15 = vunpack.i.h.bf16 %v6513_v24  ;;  %v6514_v6 = vunpack.i.l.bf16 %v6513_v24  ;;  %v6520_v9 = vunpack.i.h.bf16 %v6518_v10 }
 0x32b   : > { %v5039_v21 = vrot.slane %v5038_v39, 1  ;;  %v5044_v43 = vrot.slane %v5043_v61, 4  ;;  %v4884_v20 = vmul.f32 %v6495_v0, %v3988_v4  ;;  %v6230_v16 = vpop.f32.mrb[96].mxu0 }
 0x32c   : > { %v3576_v29 = vpop.f32.mrb[97].mxu0  ;;  %v3585_v53 = vadd.f32 %v6230_v16, %v8022_v48 }
 0x32d   : > { %v5040_v26 = vmax.f32 %v5038_v39, %v5039_v21  ;;  %v5045_v31 = vmax.f32 %v5043_v61, %v5044_v43  ;;  %v5050_v32 = vmax.f32 %v4883_v3, %v4884_v20  ;;  %v3577_v14 = vadd.f32 %v8022_v48, %v3576_v29  ;;  %v6231_v54 = vpop.f32.mrb[98].mxu0  ;;  %v6523_v43 = vpop.permute.xlu0 %6522 }
 0x32e   : > { %v3579_v33 = vpop.f32.mrb[99].mxu0  ;;  %v3588_v50 = vadd.f32 %v6231_v54, %v8022_v48  ;;  %v3993_v41 = vmax.f32 %v3585_v53, 0.0  ;;  %v6525_v29 = vunpack.i.h.bf16 %v6523_v43 }
 0x32f   : > { %v5316_v28 = vsel %vm5315_vm7, %v5040_v26, %v5314_v46  ;;  %v5046_v34 = vrot.slane %v5045_v31, 2  ;;  %v5051_v42 = vmax.f32 %v5050_v32, %v4885_v27  ;;  %v3991_v51 = vmax.f32 %v3577_v14, 0.0  ;;  %v4983_v32 = vld [vmem:[%s7336_s20] sm:$0xff] }
 0x330   : > { %v3580_v55 = vadd.f32 %v8022_v48, %v3579_v33  ;;  %v3994_v0 = vmax.f32 %v3588_v50, 0.0  ;;  %v4889_v13 = vmul.f32 %v6509_v19, %v3993_v41  ;;  %v6519_v46 = vunpack.i.l.bf16 %v6518_v10 }
 0x331   : > { %v5047_v58 = vmax.f32 %v5045_v31, %v5046_v34  ;;  %v5052_v59 = vmax.f32 %v5051_v42, %v4886_v35  ;;  %v4887_v56 = vmul.f32 %v6504_v49, %v3991_v51 }
 0x332   : > { %v3992_v22 = vmax.f32 %v3580_v55, 0.0  ;;  %v4890_v37 = vmul.f32 %v6510_v1, %v3994_v0 }
 0x333   : > { %v5048_v12 = vrot.slane %v5047_v58, 1  ;;  %v5053_v60 = vrot.slane %v5052_v59, 4  ;;  %v6234_v62 = vpop.f32.mrb[100].mxu0 }
 0x334   : > { %v4888_v2 = vmul.f32 %v6505_v52, %v3992_v22  ;;  %v3601_v7 = vadd.f32 %v6234_v62, %v8022_v48  ;;  %v3592_v11 = vpop.f32.mrb[101].mxu0 }
 0x335   : > { %v5049_v17 = vmax.f32 %v5047_v58, %v5048_v12  ;;  %v5054_v18 = vmax.f32 %v5052_v59, %v5053_v60  ;;  %v3593_v25 = vadd.f32 %v8022_v48, %v3592_v11  ;;  %v6235_v23 = vpop.f32.mrb[102].mxu0  ;;  %v6528_v58 = vpop.permute.xlu1 %6527 }
 0x336   : > { %v5059_v63 = vmax.f32 %v4887_v56, %v4888_v2  ;;  %v3604_v45 = vadd.f32 %v6235_v23, %v8022_v48  ;;  %v3595_v47 = vpop.f32.mrb[103].mxu0  ;;  %v3997_v39 = vmax.f32 %v3601_v7, 0.0  ;;  %v6529_v41 = vunpack.i.l.bf16 %v6528_v58 }
 0x337   : > { %v5318_v38 = vsel %vm5317_vm8, %v5049_v17, %v5316_v28  ;;  %v5055_v40 = vrot.slane %v5054_v18, 2  ;;  %v3995_v5 = vmax.f32 %v3593_v25, 0.0  ;;  %v3596_v8 = vadd.f32 %v8022_v48, %v3595_v47  ;;  %v6533_v17 = vpop.permute.xlu0 %6532 }
 0x338   : > { %v5060_v36 = vmax.f32 %v5059_v63, %v4889_v13  ;;  %v3998_v21 = vmax.f32 %v3604_v45, 0.0  ;;  %v4893_v26 = vmul.f32 %v6519_v46, %v3997_v39  ;;  %v6524_v28 = vunpack.i.l.bf16 %v6523_v43 }
 0x339   : > { %v5056_v61 = vmax.f32 %v5054_v18, %v5055_v40  ;;  %v3996_v4 = vmax.f32 %v3596_v8, 0.0  ;;  %v4891_v20 = vmul.f32 %v6514_v6, %v3995_v5  ;;  %v6530_v60 = vunpack.i.h.bf16 %v6528_v58  ;;  %v6538_v40 = vpop.permute.xlu1 %6537 }
 0x33a   : > { %v5061_v44 = vmax.f32 %v5060_v36, %v4890_v37  ;;  %v4894_v35 = vmul.f32 %v6520_v9, %v3998_v21  ;;  %v6535_v63 = vunpack.i.h.bf16 %v6533_v17  ;;  %v6534_v45 = vunpack.i.l.bf16 %v6533_v17 }
 0x33b   : > { %v5057_v3 = vrot.slane %v5056_v61, 1  ;;  %v4892_v16 = vmul.f32 %v6515_v15, %v3996_v4  ;;  %v6238_v27 = vpop.f32.mrb[104].mxu0  ;;  %v6539_v36 = vunpack.i.l.bf16 %v6538_v40  ;;  %v6540_v21 = vunpack.i.h.bf16 %v6538_v40 }
 0x33c   : > { %v5062_v30 = vrot.slane %v5061_v44, 4  ;;  %v3608_v31 = vpop.f32.mrb[105].mxu0  ;;  %v3617_v52 = vadd.f32 %v6238_v27, %v8022_v48 }
 0x33d   : > { %v5058_v14 = vmax.f32 %v5056_v61, %v5057_v3  ;;  %v5068_v54 = vmax.f32 %v4891_v20, %v4892_v16  ;;  %v3609_v53 = vadd.f32 %v8022_v48, %v3608_v31  ;;  %v6239_v33 = vpop.f32.mrb[106].mxu0 }
 0x33e   : > { %v5063_v34 = vmax.f32 %v5061_v44, %v5062_v30  ;;  %v3620_v42 = vadd.f32 %v6239_v33, %v8022_v48  ;;  %v3611_v49 = vpop.f32.mrb[107].mxu0  ;;  %v4001_v1 = vmax.f32 %v3617_v52, 0.0 }
 0x33f   : > { %v5320_v51 = vsel %vm5319_vm9, %v5058_v14, %v5318_v38  ;;  %v5069_v50 = vmax.f32 %v5068_v54, %v4893_v26  ;;  %v3999_v55 = vmax.f32 %v3609_v53, 0.0  ;;  %v3612_v57 = vadd.f32 %v8022_v48, %v3611_v49 }
 0x340   : > { %v5346_v59 = vmax.f32 %v4983_v32, %v5320_v51  ;;  %v5064_v19 = vrot.slane %v5063_v34, 2  ;;  %v4002_v62 = vmax.f32 %v3620_v42, 0.0  ;;  %v4897_v25 = vmul.f32 %v6529_v41, %v4001_v1  ;;  %v6543_v32 = vpop.permute.xlu0 %6542 }
 0x341   : > { %v5070_v22 = vmax.f32 %v5069_v50, %v4894_v35  ;;  %v4000_v12 = vmax.f32 %v3612_v57, 0.0  ;;  %v4895_v56 = vmul.f32 %v6524_v28, %v3999_v55  ;;  %v6545_v28 = vunpack.i.h.bf16 %v6543_v32 }
 0x342   : > { %5350 = vst [vmem:[%s7336_s20] sm:$0xff] %v5346_v59  ;;  %v5065_v7 = vmax.f32 %v5063_v34, %v5064_v19  ;;  %v4898_v47 = vmul.f32 %v6530_v60, %v4002_v62  ;;  %v6544_v55 = vunpack.i.l.bf16 %v6543_v32  ;;  %v6548_v19 = vpop.permute.xlu1 %6547 }
 0x343   : > { %v5071_v24 = vrot.slane %v5070_v22, 4  ;;  %v4896_v0 = vmul.f32 %v6525_v29, %v4000_v12  ;;  %v6242_v2 = vpop.f32.mrb[108].mxu0  ;;  %v6549_v1 = vunpack.i.l.bf16 %v6548_v19  ;;  %v6550_v62 = vunpack.i.h.bf16 %v6548_v19 }
 0x344   : > { %v3633_v11 = vadd.f32 %v6242_v2, %v8022_v48  ;;  %v3624_v15 = vpop.f32.mrb[109].mxu0  ;;  %v5066_v39 = vrot.slane %v5065_v7, 1  ;;  %v6553_v2 = vpop.permute.xlu0 %6552 }
 0x345   : > { %v5072_v18 = vmax.f32 %v5070_v22, %v5071_v24  ;;  %v5077_v23 = vmax.f32 %v4895_v56, %v4896_v0  ;;  %v3625_v6 = vadd.f32 %v8022_v48, %v3624_v15  ;;  %v6243_v13 = vpop.f32.mrb[110].mxu0 }
 0x346   : > { %v3636_v10 = vadd.f32 %v6243_v13, %v8022_v48  ;;  %v3627_v38 = vpop.f32.mrb[111].mxu0  ;;  %v4005_v61 = vmax.f32 %v3633_v11, 0.0  ;;  %v5067_v30 = vmax.f32 %v5065_v7, %v5066_v39 }
 0x347   : > { %v5073_v5 = vrot.slane %v5072_v18, 2  ;;  %v5078_v8 = vmax.f32 %v5077_v23, %v4897_v25  ;;  %v4003_v46 = vmax.f32 %v3625_v6, 0.0  ;;  %v3628_v37 = vadd.f32 %v8022_v48, %v3627_v38 }
 0x348   : > { %v4006_v43 = vmax.f32 %v3636_v10, 0.0  ;;  %v4901_v26 = vmul.f32 %v6539_v36, %v4005_v61  ;;  %v6555_v25 = vunpack.i.h.bf16 %v6553_v2 }
 0x349   : > { %v5074_v4 = vmax.f32 %v5072_v18, %v5073_v5  ;;  %v5079_v9 = vmax.f32 %v5078_v8, %v4898_v47  ;;  %v4004_v44 = vmax.f32 %v3628_v37, 0.0  ;;  %v4899_v16 = vmul.f32 %v6534_v45, %v4003_v46  ;;  %v6558_v5 = vpop.permute.xlu1 %6557 }
 0x34a   : > { %v4902_v51 = vmul.f32 %v6540_v21, %v4006_v43  ;;  %v6554_v45 = vunpack.i.l.bf16 %v6553_v2  ;;  %v6559_v39 = vunpack.i.l.bf16 %v6558_v5  ;;  %v6560_v43 = vunpack.i.h.bf16 %v6558_v5 }
 0x34b   : > { %v5075_v3 = vrot.slane %v5074_v4, 1  ;;  %v5080_v20 = vrot.slane %v5079_v9, 4  ;;  %v4900_v27 = vmul.f32 %v6535_v63, %v4004_v44  ;;  %v6246_v29 = vpop.f32.mrb[112].mxu0 }
 0x34c   : > { %v3640_v31 = vpop.f32.mrb[113].mxu0  ;;  %v3649_v34 = vadd.f32 %v6246_v29, %v8022_v48 }
 0x34d   : > { %v5076_v14 = vmax.f32 %v5074_v4, %v5075_v3  ;;  %v5081_v54 = vmax.f32 %v5079_v9, %v5080_v20  ;;  %v5086_v52 = vmax.f32 %v4899_v16, %v4900_v27  ;;  %v3641_v53 = vadd.f32 %v8022_v48, %v3640_v31  ;;  %v6247_v33 = vpop.f32.mrb[114].mxu0  ;;  %v6563_v16 = vpop.permute.xlu0 %6562 }
 0x34e   : > { %v3643_v35 = vpop.f32.mrb[115].mxu0  ;;  %v3652_v58 = vadd.f32 %v6247_v33, %v8022_v48  ;;  %v4009_v12 = vmax.f32 %v3649_v34, 0.0  ;;  %v6565_v31 = vunpack.i.h.bf16 %v6563_v16  ;;  %v6568_v19 = vpop.permute.xlu1 %6567 }
 0x34f   : > { %v5321_v42 = vsel %vm5307_vm3, %v5076_v14, %v5067_v30  ;;  %v5082_v49 = vrot.slane %v5081_v54, 2  ;;  %v5087_v50 = vmax.f32 %v5086_v52, %v4901_v26  ;;  %v4007_v57 = vmax.f32 %v3641_v53, 0.0  ;;  %v8154_v53 = vld [vmem:[%s8363_s6] ss:$0 sm:$0xff] }
 0x350   : > { %v3644_v59 = vadd.f32 %v8022_v48, %v3643_v35  ;;  %v4010_v11 = vmax.f32 %v3652_v58, 0.0  ;;  %v4905_v47 = vmul.f32 %v6549_v1, %v4009_v12  ;;  %v6564_v35 = vunpack.i.l.bf16 %v6563_v16 }
 0x351   : > { %v5083_v41 = vmax.f32 %v5081_v54, %v5082_v49  ;;  %v5088_v22 = vmax.f32 %v5087_v50, %v4902_v51  ;;  %v4903_v7 = vmul.f32 %v6544_v55, %v4007_v57 }
 0x352   : > { %v4008_v60 = vmax.f32 %v3644_v59, 0.0  ;;  %v4906_v61 = vmul.f32 %v6550_v62, %v4010_v11  ;;  %v6570_v62 = vunpack.i.h.bf16 %v6568_v19 }
 0x353   : > { %v5084_v24 = vrot.slane %v5083_v41, 1  ;;  %v5089_v56 = vrot.slane %v5088_v22, 4  ;;  %v6250_v0 = vpop.f32.mrb[116].mxu0 }
 0x354   : > { %v4904_v15 = vmul.f32 %v6545_v28, %v4008_v60  ;;  %v3665_v17 = vadd.f32 %v6250_v0, %v8022_v48  ;;  %v3656_v18 = vpop.f32.mrb[117].mxu0  ;;  %v6573_v0 = vpop.permute.xlu0 %6572 }
 0x355   : > { %v5085_v23 = vmax.f32 %v5083_v41, %v5084_v24  ;;  %v5090_v6 = vmax.f32 %v5088_v22, %v5089_v56  ;;  %v3657_v13 = vadd.f32 %v8022_v48, %v3656_v18  ;;  %v6251_v63 = vpop.f32.mrb[118].mxu0  ;;  %v6569_v22 = vunpack.i.l.bf16 %v6568_v19 }
 0x356   : > { %v5095_v10 = vmax.f32 %v4903_v7, %v4904_v15  ;;  %v3668_v38 = vadd.f32 %v6251_v63, %v8022_v48  ;;  %v3659_v40 = vpop.f32.mrb[119].mxu0  ;;  %v4013_v9 = vmax.f32 %v3665_v17, 0.0  ;;  %v6575_v17 = vunpack.i.h.bf16 %v6573_v0 }
 0x357   : > { %v5322_v8 = vsel %vm5309_vm4, %v5085_v23, %v5321_v42  ;;  %v5091_v46 = vrot.slane %v5090_v6, 2  ;;  %v4011_v37 = vmax.f32 %v3657_v13, 0.0  ;;  %v3660_v36 = vadd.f32 %v8022_v48, %v3659_v40 }
 0x358   : > { %v5096_v4 = vmax.f32 %v5095_v10, %v4905_v47  ;;  %v4014_v20 = vmax.f32 %v3668_v38, 0.0  ;;  %v4909_v14 = vmul.f32 %v6559_v39, %v4013_v9  ;;  %v6574_v10 = vunpack.i.l.bf16 %v6573_v0 }
 0x359   : > { %v5092_v44 = vmax.f32 %v5090_v6, %v5091_v46  ;;  %v4012_v21 = vmax.f32 %v3660_v36, 0.0  ;;  %v4907_v29 = vmul.f32 %v6554_v45, %v4011_v37  ;;  %v6578_v46 = vpop.permute.xlu1 %6577 }
 0x35a   : > { %v5097_v3 = vmax.f32 %v5096_v4, %v4906_v61  ;;  %v4910_v49 = vmul.f32 %v6560_v43, %v4014_v20  ;;  %v6579_v4 = vunpack.i.l.bf16 %v6578_v46  ;;  %v6580_v20 = vunpack.i.h.bf16 %v6578_v46 }
 0x35b   : > { %v5093_v27 = vrot.slane %v5092_v44, 1  ;;  %v4908_v30 = vmul.f32 %v6555_v25, %v4012_v21  ;;  %v6254_v26 = vpop.f32.mrb[120].mxu0 }
 0x35c   : > { %v5098_v32 = vrot.slane %v5097_v3, 4  ;;  %v3672_v54 = vpop.f32.mrb[121].mxu0  ;;  %v3681_v33 = vadd.f32 %v8154_v53, %v6254_v26 }
 0x35d   : > { %v5094_v52 = vmax.f32 %v5092_v44, %v5093_v27  ;;  %v5104_v48 = vmax.f32 %v4907_v29, %v4908_v30  ;;  %v3673_v28 = vadd.f32 %v8154_v53, %v3672_v54  ;;  %v6255_v34 = vpop.f32.mrb[122].mxu0 }
 0x35e   : > { %v5099_v42 = vmax.f32 %v5097_v3, %v5098_v32  ;;  %v3684_v51 = vadd.f32 %v8154_v53, %v6255_v34  ;;  %v3675_v50 = vpop.f32.mrb[123].mxu0  ;;  %v4017_v12 = vmax.f32 %v3681_v33, 0.0 }
 0x35f   : > { %v5323_v55 = vsel %vm5311_vm5, %v5094_v52, %v5322_v8  ;;  %v5105_v57 = vmax.f32 %v5104_v48, %v4909_v14  ;;  %v4015_v58 = vmax.f32 %v3673_v28, 0.0  ;;  %v3676_v59 = vadd.f32 %v8154_v53, %v3675_v50 }
 0x360   : > { %v5100_v41 = vrot.slane %v5099_v42, 2  ;;  %v4018_v56 = vmax.f32 %v3684_v51, 0.0  ;;  %v4913_v13 = vmul.f32 %v6569_v22, %v4017_v12 }
 0x361   : > { %v5106_v1 = vmax.f32 %v5105_v57, %v4910_v49  ;;  %v4016_v60 = vmax.f32 %v3676_v59, 0.0  ;;  %v4911_v7 = vmul.f32 %v6564_v35, %v4015_v58 }
 0x362   : > { %v5101_v24 = vmax.f32 %v5099_v42, %v5100_v41  ;;  %v4914_v40 = vmul.f32 %v6570_v62, %v4018_v56  ;;  %v6583_v42 = vpop.permute.xlu0 %6582  ;;  %v6588_v41 = vpop.permute.xlu1 %6587 }
 0x363   : > { %v5107_v2 = vrot.slane %v5106_v1, 4  ;;  %v4912_v11 = vmul.f32 %v6565_v31, %v4016_v60  ;;  %v6258_v15 = vpop.f32.mrb[124].mxu0  ;;  %v6584_v57 = vunpack.i.l.bf16 %v6583_v42  ;;  %v6585_v12 = vunpack.i.h.bf16 %v6583_v42 }
 0x364   : > { %v5102_v18 = vrot.slane %v5101_v24, 1  ;;  %v3697_v25 = vadd.f32 %v8154_v53, %v6258_v15  ;;  %v3688_v23 = vpop.f32.mrb[125].mxu0  ;;  %v6589_v60 = vunpack.i.l.bf16 %v6588_v41  ;;  %v6590_v56 = vunpack.i.h.bf16 %v6588_v41 }
 0x365   : > { %v5108_v6 = vmax.f32 %v5106_v1, %v5107_v2  ;;  %v5113_v63 = vmax.f32 %v4911_v7, %v4912_v11  ;;  %v3689_v45 = vadd.f32 %v8154_v53, %v3688_v23  ;;  %v6259_v47 = vpop.f32.mrb[126].mxu0 }
 0x366   : > { %v5103_v38 = vmax.f32 %v5101_v24, %v5102_v18  ;;  %v3700_v5 = vadd.f32 %v8154_v53, %v6259_v47  ;;  %v3691_v8 = vpop.f32.mrb[127].mxu0  ;;  %v4021_v44 = vmax.f32 %v3697_v25, 0.0 }
 0x367   : > { %v5109_v37 = vrot.slane %v5108_v6, 2  ;;  %v5114_v36 = vmax.f32 %v5113_v63, %v4913_v13  ;;  %v4019_v39 = vmax.f32 %v3689_v45, 0.0  ;;  %v3692_v61 = vadd.f32 %v8154_v53, %v3691_v8 }
 0x368   : > { %v5324_v9 = vsel %vm5313_vm6, %v5103_v38, %v5323_v55  ;;  %v4022_v16 = vmax.f32 %v3700_v5, 0.0  ;;  %v4917_v32 = vmul.f32 %v6579_v4, %v4021_v44  ;;  %v6598_v44 = vpop.permute.xlu1 %6597 }
 0x369   : > { %v5110_v21 = vmax.f32 %v5108_v6, %v5109_v37  ;;  %v5115_v43 = vmax.f32 %v5114_v36, %v4914_v40  ;;  %v4020_v3 = vmax.f32 %v3692_v61, 0.0  ;;  %v4915_v30 = vmul.f32 %v6574_v10, %v4019_v39  ;;  %v6593_v37 = vpop.permute.xlu0 %6592 }
 0x36a   : > { %v4918_v50 = vmul.f32 %v6580_v20, %v4022_v16  ;;  %v6595_v4 = vunpack.i.h.bf16 %v6593_v37 }
 0x36b   : > { %v5111_v27 = vrot.slane %v5110_v21, 1  ;;  %v5116_v29 = vrot.slane %v5115_v43, 4  ;;  %v4916_v26 = vmul.f32 %v6575_v17, %v4020_v3  ;;  %v6262_v31 = vpop.f32.mrb[128].mxu0  ;;  %v6599_v3 = vunpack.i.l.bf16 %v6598_v44 }
 0x36c   : > { %v3704_v14 = vpop.f32.mrb[129].mxu0  ;;  %v3713_v34 = vadd.f32 %v8154_v53, %v6262_v31  ;;  %v6600_v31 = vunpack.i.h.bf16 %v6598_v44 }
 0x36d   : > { %v5112_v54 = vmax.f32 %v5110_v21, %v5111_v27  ;;  %v5117_v52 = vmax.f32 %v5115_v43, %v5116_v29  ;;  %v5122_v48 = vmax.f32 %v4915_v30, %v4916_v26  ;;  %v3705_v33 = vadd.f32 %v8154_v53, %v3704_v14  ;;  %v6263_v28 = vpop.f32.mrb[130].mxu0 }
 0x36e   : > { %v3707_v35 = vpop.f32.mrb[131].mxu0  ;;  %v3716_v59 = vadd.f32 %v8154_v53, %v6263_v28  ;;  %v4025_v62 = vmax.f32 %v3713_v34, 0.0 }
 0x36f   : > { %v5325_v49 = vsel %vm5315_vm7, %v5112_v54, %v5324_v9  ;;  %v5118_v51 = vrot.slane %v5117_v52, 2  ;;  %v5123_v55 = vmax.f32 %v5122_v48, %v4917_v32  ;;  %v4023_v58 = vmax.f32 %v3705_v33, 0.0 }
 0x370   : > { %v3708_v19 = vadd.f32 %v8154_v53, %v3707_v35  ;;  %v4026_v15 = vmax.f32 %v3716_v59, 0.0  ;;  %v4921_v45 = vmul.f32 %v6589_v60, %v4025_v62  ;;  %v6594_v9 = vunpack.i.l.bf16 %v6593_v37 }
 0x371   : > { %v5119_v22 = vmax.f32 %v5117_v52, %v5118_v51  ;;  %v5124_v1 = vmax.f32 %v5123_v55, %v4918_v50  ;;  %v4919_v11 = vmul.f32 %v6584_v57, %v4023_v58  ;;  %v4984_v52 = vld [vmem:[%s7336_s20 + $0x8] sm:$0xff]  ;;  %v6603_v55 = vpop.permute.xlu0 %6602 }
 0x372   : > { %v4024_v24 = vmax.f32 %v3708_v19, 0.0  ;;  %v4922_v36 = vmul.f32 %v6590_v56, %v4026_v15  ;;  %v6605_v41 = vunpack.i.h.bf16 %v6603_v55  ;;  %v6608_v56 = vpop.permute.xlu1 %6607 }
 0x373   : > { %v5120_v0 = vrot.slane %v5119_v22, 1  ;;  %v5125_v2 = vrot.slane %v5124_v1, 4  ;;  %v6266_v7 = vpop.f32.mrb[132].mxu0 }
 0x374   : > { %v4920_v17 = vmul.f32 %v6585_v12, %v4024_v24  ;;  %v3729_v18 = vadd.f32 %v8154_v53, %v6266_v7  ;;  %v3720_v25 = vpop.f32.mrb[133].mxu0  ;;  %v6604_v12 = vunpack.i.l.bf16 %v6603_v55 }
 0x375   : > { %v5121_v23 = vmax.f32 %v5119_v22, %v5120_v0  ;;  %v5126_v6 = vmax.f32 %v5124_v1, %v5125_v2  ;;  %v3721_v13 = vadd.f32 %v8154_v53, %v3720_v25  ;;  %v6267_v63 = vpop.f32.mrb[134].mxu0  ;;  %v6609_v2 = vunpack.i.l.bf16 %v6608_v56 }
 0x376   : > { %v5131_v47 = vmax.f32 %v4919_v11, %v4920_v17  ;;  %v3732_v10 = vadd.f32 %v8154_v53, %v6267_v63  ;;  %v3723_v38 = vpop.f32.mrb[135].mxu0  ;;  %v4029_v61 = vmax.f32 %v3729_v18, 0.0  ;;  %v6610_v18 = vunpack.i.h.bf16 %v6608_v56 }
 0x377   : > { %v5326_v40 = vsel %vm5317_vm8, %v5121_v23, %v5325_v49  ;;  %v5127_v5 = vrot.slane %v5126_v6, 2  ;;  %v4027_v8 = vmax.f32 %v3721_v13, 0.0  ;;  %v3724_v46 = vadd.f32 %v8154_v53, %v3723_v38 }
 0x378   : > { %v5132_v39 = vmax.f32 %v5131_v47, %v4921_v45  ;;  %v4030_v16 = vmax.f32 %v3732_v10, 0.0  ;;  %v4925_v14 = vmul.f32 %v6599_v3, %v4029_v61 }
 0x379   : > { %v5128_v21 = vmax.f32 %v5126_v6, %v5127_v5  ;;  %v4028_v43 = vmax.f32 %v3724_v46, 0.0  ;;  %v4923_v29 = vmul.f32 %v6594_v9, %v4027_v8  ;;  %v6613_v8 = vpop.permute.xlu0 %6612 }
 0x37a   : > { %v5133_v20 = vmax.f32 %v5132_v39, %v4922_v36  ;;  %v4926_v49 = vmul.f32 %v6600_v31, %v4030_v16  ;;  %v6615_v61 = vunpack.i.h.bf16 %v6613_v8  ;;  %v6614_v44 = vunpack.i.l.bf16 %v6613_v8 }
 0x37b   : > { %v5129_v27 = vrot.slane %v5128_v21, 1  ;;  %v4924_v30 = vmul.f32 %v6595_v4, %v4028_v43  ;;  %v6270_v26 = vpop.f32.mrb[136].mxu0 }
 0x37c   : > { %v5134_v32 = vrot.slane %v5133_v20, 4  ;;  %v3736_v54 = vpop.f32.mrb[137].mxu0  ;;  %v3745_v28 = vadd.f32 %v8154_v53, %v6270_v26 }
 0x37d   : > { %v5130_v48 = vmax.f32 %v5128_v21, %v5129_v27  ;;  %v5140_v33 = vmax.f32 %v4923_v29, %v4924_v30  ;;  %v3737_v34 = vadd.f32 %v8154_v53, %v3736_v54  ;;  %v6271_v35 = vpop.f32.mrb[138].mxu0  ;;  %v6618_v21 = vpop.permute.xlu1 %6617 }
 0x37e   : > { %v5135_v42 = vmax.f32 %v5133_v20, %v5134_v32  ;;  %v3748_v51 = vadd.f32 %v8154_v53, %v6271_v35  ;;  %v3739_v50 = vpop.f32.mrb[139].mxu0  ;;  %v4033_v62 = vmax.f32 %v3745_v28, 0.0  ;;  %v6619_v16 = vunpack.i.l.bf16 %v6618_v21 }
 0x37f   : > { %v5327_v57 = vsel %vm5319_vm9, %v5130_v48, %v5326_v40  ;;  %v5141_v58 = vmax.f32 %v5140_v33, %v4925_v14  ;;  %v4031_v59 = vmax.f32 %v3737_v34, 0.0  ;;  %v3740_v19 = vadd.f32 %v8154_v53, %v3739_v50 }
 0x380   : > { %v5347_v22 = vmax.f32 %v4984_v52, %v5327_v57  ;;  %v5136_v1 = vrot.slane %v5135_v42, 2  ;;  %v4034_v0 = vmax.f32 %v3748_v51, 0.0  ;;  %v4929_v63 = vmul.f32 %v6609_v2, %v4033_v62 }
 0x381   : > { %v5142_v60 = vmax.f32 %v5141_v58, %v4926_v49  ;;  %v4032_v24 = vmax.f32 %v3740_v19, 0.0  ;;  %v4927_v11 = vmul.f32 %v6604_v12, %v4031_v59  ;;  %v6620_v14 = vunpack.i.h.bf16 %v6618_v21 }
 0x382   : > { %5351 = vst [vmem:[%s7336_s20 + $0x8] sm:$0xff] %v5347_v22  ;;  %v5137_v25 = vmax.f32 %v5135_v42, %v5136_v1  ;;  %v4930_v38 = vmul.f32 %v6610_v18, %v4034_v0  ;;  %v6623_v22 = vpop.permute.xlu0 %6622 }
 0x383   : > { %v5143_v7 = vrot.slane %v5142_v60, 4  ;;  %v4928_v15 = vmul.f32 %v6605_v41, %v4032_v24  ;;  %v6274_v17 = vpop.f32.mrb[140].mxu0  ;;  %v6624_v62 = vunpack.i.l.bf16 %v6623_v22  ;;  %v6628_v24 = vpop.permute.xlu1 %6627 }
 0x384   : > { %v3761_v23 = vadd.f32 %v8154_v53, %v6274_v17  ;;  %v3752_v6 = vpop.f32.mrb[141].mxu0  ;;  %v5138_v4 = vrot.slane %v5137_v25, 1  ;;  %v6629_v2 = vunpack.i.l.bf16 %v6628_v24 }
 0x385   : > { %v5144_v13 = vmax.f32 %v5142_v60, %v5143_v7  ;;  %v5149_v45 = vmax.f32 %v4927_v11, %v4928_v15  ;;  %v3753_v47 = vadd.f32 %v8154_v53, %v3752_v6  ;;  %v6275_v10 = vpop.f32.mrb[142].mxu0  ;;  %v6625_v60 = vunpack.i.h.bf16 %v6623_v22 }
 0x386   : > { %v3764_v40 = vadd.f32 %v8154_v53, %v6275_v10  ;;  %v3755_v5 = vpop.f32.mrb[143].mxu0  ;;  %v4037_v9 = vmax.f32 %v3761_v23, 0.0  ;;  %v5139_v54 = vmax.f32 %v5137_v25, %v5138_v4  ;;  %v6630_v10 = vunpack.i.h.bf16 %v6628_v24 }
 0x387   : > { %v5145_v46 = vrot.slane %v5144_v13, 2  ;;  %v5150_v37 = vmax.f32 %v5149_v45, %v4929_v63  ;;  %v4035_v36 = vmax.f32 %v3753_v47, 0.0  ;;  %v3756_v39 = vadd.f32 %v8154_v53, %v3755_v5 }
 0x388   : > { %v4038_v27 = vmax.f32 %v3764_v40, 0.0  ;;  %v4933_v52 = vmul.f32 %v6619_v16, %v4037_v9 }
 0x389   : > { %v5146_v43 = vmax.f32 %v5144_v13, %v5145_v46  ;;  %v5151_v3 = vmax.f32 %v5150_v37, %v4930_v38  ;;  %v4036_v20 = vmax.f32 %v3756_v39, 0.0  ;;  %v4931_v26 = vmul.f32 %v6614_v44, %v4035_v36 }
 0x38a   : > { %v4934_v57 = vmul.f32 %v6620_v14, %v4038_v27 }
 0x38b   : > { %v5147_v29 = vrot.slane %v5146_v43, 1  ;;  %v5152_v30 = vrot.slane %v5151_v3, 4  ;;  %v4932_v31 = vmul.f32 %v6615_v61, %v4036_v20  ;;  %v6278_v32 = vpop.f32.mrb[144].mxu0  ;;  %v6633_v61 = vpop.permute.xlu0 %6632 }
 0x38c   : > { %v3768_v48 = vpop.f32.mrb[145].mxu0  ;;  %v3777_v49 = vadd.f32 %v8154_v53, %v6278_v32  ;;  %v6635_v21 = vunpack.i.h.bf16 %v6633_v61 }
 0x38d   : > { %v5148_v33 = vmax.f32 %v5146_v43, %v5147_v29  ;;  %v5153_v28 = vmax.f32 %v5151_v3, %v5152_v30  ;;  %v5158_v34 = vmax.f32 %v4931_v26, %v4932_v31  ;;  %v3769_v35 = vadd.f32 %v8154_v53, %v3768_v48  ;;  %v6279_v42 = vpop.f32.mrb[146].mxu0  ;;  %v6638_v3 = vpop.permute.xlu1 %6637 }
 0x38e   : > { %v3771_v51 = vpop.f32.mrb[147].mxu0  ;;  %v3780_v19 = vadd.f32 %v8154_v53, %v6279_v42  ;;  %v4041_v56 = vmax.f32 %v3777_v49, 0.0  ;;  %v6634_v43 = vunpack.i.l.bf16 %v6633_v61  ;;  %v6639_v27 = vunpack.i.l.bf16 %v6638_v3 }
 0x38f   : > { %v5328_v50 = vsel %vm5307_vm3, %v5148_v33, %v5139_v54  ;;  %v5154_v55 = vrot.slane %v5153_v28, 2  ;;  %v5159_v58 = vmax.f32 %v5158_v34, %v4933_v52  ;;  %v4039_v59 = vmax.f32 %v3769_v35, 0.0 }
 0x390   : > { %v3772_v41 = vadd.f32 %v8154_v53, %v3771_v51  ;;  %v4042_v18 = vmax.f32 %v3780_v19, 0.0  ;;  %v4937_v38 = vmul.f32 %v6629_v2, %v4041_v56  ;;  %v6640_v54 = vunpack.i.h.bf16 %v6638_v3 }
 0x391   : > { %v5155_v1 = vmax.f32 %v5153_v28, %v5154_v55  ;;  %v5160_v12 = vmax.f32 %v5159_v58, %v4934_v57  ;;  %v4935_v17 = vmul.f32 %v6624_v62, %v4039_v59  ;;  %v6643_v58 = vpop.permute.xlu0 %6642  ;;  %v6648_v59 = vpop.permute.xlu1 %6647 }
 0x392   : > { %v4040_v0 = vmax.f32 %v3772_v41, 0.0  ;;  %v4938_v4 = vmul.f32 %v6630_v10, %v4042_v18  ;;  %v6644_v62 = vunpack.i.l.bf16 %v6643_v58 }
 0x393   : > { %v5156_v7 = vrot.slane %v5155_v1, 1  ;;  %v5161_v11 = vrot.slane %v5160_v12, 4  ;;  %v6282_v15 = vpop.f32.mrb[148].mxu0 }
 0x394   : > { %v4936_v25 = vmul.f32 %v6625_v60, %v4040_v0  ;;  %v3793_v23 = vadd.f32 %v8154_v53, %v6282_v15  ;;  %v3784_v6 = vpop.f32.mrb[149].mxu0 }
 0x395   : > { %v5157_v13 = vmax.f32 %v5155_v1, %v5156_v7  ;;  %v5162_v63 = vmax.f32 %v5160_v12, %v5161_v11  ;;  %v3785_v45 = vadd.f32 %v8154_v53, %v3784_v6  ;;  %v6283_v47 = vpop.f32.mrb[150].mxu0  ;;  %v6645_v12 = vunpack.i.h.bf16 %v6643_v58 }
 0x396   : > { %v5167_v40 = vmax.f32 %v4935_v17, %v4936_v25  ;;  %v3796_v5 = vadd.f32 %v8154_v53, %v6283_v47  ;;  %v3787_v8 = vpop.f32.mrb[151].mxu0  ;;  %v4045_v44 = vmax.f32 %v3793_v23, 0.0  ;;  %v6649_v11 = vunpack.i.l.bf16 %v6648_v59 }
 0x397   : > { %v5329_v46 = vsel %vm5309_vm4, %v5157_v13, %v5328_v50  ;;  %v5163_v37 = vrot.slane %v5162_v63, 2  ;;  %v4043_v36 = vmax.f32 %v3785_v45, 0.0  ;;  %v3788_v39 = vadd.f32 %v8154_v53, %v3787_v8  ;;  %v6658_v45 = vpop.permute.xlu1 %6657 }
 0x398   : > { %v5168_v9 = vmax.f32 %v5167_v40, %v4937_v38  ;;  %v4046_v30 = vmax.f32 %v3796_v5, 0.0  ;;  %v4941_v48 = vmul.f32 %v6639_v27, %v4045_v44  ;;  %v6650_v23 = vunpack.i.h.bf16 %v6648_v59 }
 0x399   : > { %v5164_v20 = vmax.f32 %v5162_v63, %v5163_v37  ;;  %v4044_v16 = vmax.f32 %v3788_v39, 0.0  ;;  %v4939_v31 = vmul.f32 %v6634_v43, %v4043_v36  ;;  %v6653_v39 = vpop.permute.xlu0 %6652 }
 0x39a   : > { %v5169_v29 = vmax.f32 %v5168_v9, %v4938_v4  ;;  %v4942_v50 = vmul.f32 %v6640_v54, %v4046_v30  ;;  %v6659_v30 = vunpack.i.l.bf16 %v6658_v45 }
 0x39b   : > { %v5165_v26 = vrot.slane %v5164_v20, 1  ;;  %v4940_v32 = vmul.f32 %v6635_v21, %v4044_v16  ;;  %v6286_v14 = vpop.f32.mrb[152].mxu0  ;;  %v6655_v21 = vunpack.i.h.bf16 %v6653_v39 }
 0x39c   : > { %v5170_v52 = vrot.slane %v5169_v29, 4  ;;  %v3800_v33 = vpop.f32.mrb[153].mxu0  ;;  %v3809_v35 = vadd.f32 %v8154_v53, %v6286_v14 }
 0x39d   : > { %v5166_v28 = vmax.f32 %v5164_v20, %v5165_v26  ;;  %v5176_v34 = vmax.f32 %v4939_v31, %v4940_v32  ;;  %v3801_v42 = vadd.f32 %v8154_v53, %v3800_v33  ;;  %v6287_v49 = vpop.f32.mrb[154].mxu0  ;;  %v6654_v20 = vunpack.i.l.bf16 %v6653_v39  ;;  %v6668_v31 = vpop.permute.xlu1 %6667 }
 0x39e   : > { %v5171_v51 = vmax.f32 %v5169_v29, %v5170_v52  ;;  %v3812_v55 = vadd.f32 %v8154_v53, %v6287_v49  ;;  %v3803_v57 = vpop.f32.mrb[155].mxu0  ;;  %v4049_v56 = vmax.f32 %v3809_v35, 0.0  ;;  %v6660_v33 = vunpack.i.h.bf16 %v6658_v45 }
 0x39f   : > { %v5330_v19 = vsel %vm5311_vm5, %v5166_v28, %v5329_v46  ;;  %v5177_v41 = vmax.f32 %v5176_v34, %v4941_v48  ;;  %v4047_v22 = vmax.f32 %v3801_v42, 0.0  ;;  %v3804_v1 = vadd.f32 %v8154_v53, %v3803_v57 }
 0x3a0   : > { %v5172_v60 = vrot.slane %v5171_v51, 2  ;;  %v4050_v7 = vmax.f32 %v3812_v55, 0.0  ;;  %v4945_v10 = vmul.f32 %v6649_v11, %v4049_v56 }
 0x3a1   : > { %v5178_v24 = vmax.f32 %v5177_v41, %v4942_v50  ;;  %v4048_v0 = vmax.f32 %v3804_v1, 0.0  ;;  %v4943_v17 = vmul.f32 %v6644_v62, %v4047_v22  ;;  %v6663_v22 = vpop.permute.xlu0 %6662  ;;  %v6678_v62 = vpop.permute.xlu1 %6677 }
 0x3a2   : > { %v5173_v2 = vmax.f32 %v5171_v51, %v5172_v60  ;;  %v4946_v46 = vmul.f32 %v6650_v23, %v4050_v7 }
 0x3a3   : > { %v5179_v15 = vrot.slane %v5178_v24, 4  ;;  %v4944_v18 = vmul.f32 %v6645_v12, %v4048_v0  ;;  %v6290_v25 = vpop.f32.mrb[156].mxu0  ;;  %v6665_v0 = vunpack.i.h.bf16 %v6663_v22 }
 0x3a4   : > { %v5174_v6 = vrot.slane %v5173_v2, 1  ;;  %v3825_v13 = vadd.f32 %v8154_v53, %v6290_v25  ;;  %v3816_v63 = vpop.f32.mrb[157].mxu0 }
 0x3a5   : > { %v5180_v47 = vmax.f32 %v5178_v24, %v5179_v15  ;;  %v5185_v38 = vmax.f32 %v4943_v17, %v4944_v18  ;;  %v3817_v40 = vadd.f32 %v8154_v53, %v3816_v63  ;;  %v6291_v5 = vpop.f32.mrb[158].mxu0  ;;  %v6669_v15 = vunpack.i.l.bf16 %v6668_v31 }
 0x3a6   : > { %v5175_v8 = vmax.f32 %v5173_v2, %v5174_v6  ;;  %v3828_v37 = vadd.f32 %v8154_v53, %v6291_v5  ;;  %v3819_v36 = vpop.f32.mrb[159].mxu0  ;;  %v4053_v3 = vmax.f32 %v3825_v13, 0.0  ;;  %v6664_v2 = vunpack.i.l.bf16 %v6663_v22 }
 0x3a7   : > { %v5181_v61 = vrot.slane %v5180_v47, 2  ;;  %v5186_v4 = vmax.f32 %v5185_v38, %v4945_v10  ;;  %v4051_v9 = vmax.f32 %v3817_v40, 0.0  ;;  %v3820_v44 = vadd.f32 %v8154_v53, %v3819_v36 }
 0x3a8   : > { %v5331_v43 = vsel %vm5313_vm6, %v5175_v8, %v5330_v19  ;;  %v4054_v26 = vmax.f32 %v3828_v37, 0.0  ;;  %v4949_v28 = vmul.f32 %v6659_v30, %v4053_v3  ;;  %v6670_v5 = vunpack.i.h.bf16 %v6668_v31  ;;  %v6673_v8 = vpop.permute.xlu0 %6672 }
 0x3a9   : > { %v5182_v16 = vmax.f32 %v5180_v47, %v5181_v61  ;;  %v5187_v27 = vmax.f32 %v5186_v4, %v4946_v46  ;;  %v4052_v29 = vmax.f32 %v3820_v44, 0.0  ;;  %v4947_v54 = vmul.f32 %v6654_v20, %v4051_v9  ;;  %v8215_v61 = vpop.permute.xlu1 %6687 }
 0x3aa   : > { %v4950_v19 = vmul.f32 %v6660_v33, %v4054_v26  ;;  %v6679_v26 = vunpack.i.l.bf16 %v6678_v62  ;;  %v6680_v33 = vunpack.i.h.bf16 %v6678_v62 }
 0x3ab   : > { %v5183_v32 = vrot.slane %v5182_v16, 1  ;;  %v5188_v14 = vrot.slane %v5187_v27, 4  ;;  %v4948_v52 = vmul.f32 %v6655_v21, %v4052_v29  ;;  %v6294_v48 = vpop.f32.mrb[160].mxu0 }
 0x3ac   : > { %v3832_v34 = vpop.f32.mrb[161].mxu0  ;;  %v3841_v55 = vadd.f32 %v8154_v53, %v6294_v48 }
 0x3ad   : > { %v5184_v35 = vmax.f32 %v5182_v16, %v5183_v32  ;;  %v5189_v42 = vmax.f32 %v5187_v27, %v5188_v14  ;;  %v5194_v49 = vmax.f32 %v4947_v54, %v4948_v52  ;;  %v3833_v51 = vadd.f32 %v8154_v53, %v3832_v34  ;;  %v6295_v50 = vpop.f32.mrb[162].mxu0 }
 0x3ae   : > { %v3835_v57 = vpop.f32.mrb[163].mxu0  ;;  %v3844_v12 = vadd.f32 %v8154_v53, %v6295_v50  ;;  %v4057_v7 = vmax.f32 %v3841_v55, 0.0  ;;  %v6675_v16 = vunpack.i.h.bf16 %v6673_v8  ;;  %v6674_v27 = vunpack.i.l.bf16 %v6673_v8 }
 0x3af   : > { %v5332_v58 = vsel %vm5315_vm7, %v5184_v35, %v5331_v43  ;;  %v5190_v59 = vrot.slane %v5189_v42, 2  ;;  %v5195_v41 = vmax.f32 %v5194_v49, %v4949_v28  ;;  %v4055_v1 = vmax.f32 %v3833_v51, 0.0  ;;  %v6683_v28 = vpop.permute.xlu0 %6682  ;;  %v8219_v49 = vpop.permute.xlu1 %6697  ;;  %v4985_v51 = vld [vmem:[%s7336_s20 + $0x10] sm:$0xff] }
 0x3b0   : > { %v3836_v60 = vadd.f32 %v8154_v53, %v3835_v57  ;;  %v4058_v6 = vmax.f32 %v3844_v12, 0.0  ;;  %v4953_v46 = vmul.f32 %v6669_v15, %v4057_v7  ;;  %v6684_v7 = vunpack.i.l.bf16 %v6683_v28 }
 0x3b1   : > { %v5191_v24 = vmax.f32 %v5189_v42, %v5190_v59  ;;  %v5196_v56 = vmax.f32 %v5195_v41, %v4950_v19  ;;  %v4951_v23 = vmul.f32 %v6664_v2, %v4055_v1 }
 0x3b2   : > { %v4056_v11 = vmax.f32 %v3836_v60, 0.0  ;;  %v4954_v43 = vmul.f32 %v6670_v5, %v4058_v6 }
 0x3b3   : > { %v5192_v17 = vrot.slane %v5191_v24, 1  ;;  %v5197_v18 = vrot.slane %v5196_v56, 4  ;;  %v6298_v25 = vpop.f32.mrb[164].mxu0  ;;  %v8231_v6 = vpop.permute.xlu1 %6707 }
 0x3b4   : > { %v4952_v13 = vmul.f32 %v6665_v0, %v4056_v11  ;;  %v3857_v63 = vadd.f32 %v8154_v53, %v6298_v25  ;;  %v3848_v45 = vpop.f32.mrb[165].mxu0 }
 0x3b5   : > { %v5193_v47 = vmax.f32 %v5191_v24, %v5192_v17  ;;  %v5198_v10 = vmax.f32 %v5196_v56, %v5197_v18  ;;  %v3849_v38 = vadd.f32 %v8154_v53, %v3848_v45  ;;  %v6299_v40 = vpop.f32.mrb[166].mxu0  ;;  %v6685_v56 = vunpack.i.h.bf16 %v6683_v28  ;;  %v8227_v18 = vpop.permute.xlu0 %6692 }
 0x3b6   : > { %v5203_v37 = vmax.f32 %v4951_v23, %v4952_v13  ;;  %v3860_v36 = vadd.f32 %v8154_v53, %v6299_v40  ;;  %v3851_v39 = vpop.f32.mrb[167].mxu0  ;;  %v4061_v20 = vmax.f32 %v3857_v63, 0.0  ;;  %v6694_v23 = vunpack.i.l.bf16 %v8227_v18 }
 0x3b7   : > { %v5333_v4 = vsel %vm5317_vm8, %v5193_v47, %v5332_v58  ;;  %v5199_v9 = vrot.slane %v5198_v10, 2  ;;  %v4059_v44 = vmax.f32 %v3849_v38, 0.0  ;;  %v3852_v21 = vadd.f32 %v8154_v53, %v3851_v39 }
 0x3b8   : > { %v5204_v3 = vmax.f32 %v5203_v37, %v4953_v46  ;;  %v4062_v32 = vmax.f32 %v3860_v36, 0.0  ;;  %v4957_v35 = vmul.f32 %v6679_v26, %v4061_v20  ;;  %v6689_v26 = vunpack.i.l.bf16 %v8215_v61 }
 0x3b9   : > { %v5200_v29 = vmax.f32 %v5198_v10, %v5199_v9  ;;  %v4060_v30 = vmax.f32 %v3852_v21, 0.0  ;;  %v4955_v54 = vmul.f32 %v6674_v27, %v4059_v44  ;;  %v6709_v10 = vunpack.i.l.bf16 %v8231_v6  ;;  %v8239_v27 = vpop.permute.xlu0 %6702 }
 0x3ba   : > { %v5205_v31 = vmax.f32 %v5204_v3, %v4954_v43  ;;  %v4958_v41 = vmul.f32 %v6680_v33, %v4062_v32 }
 0x3bb   : > { %v5201_v14 = vrot.slane %v5200_v29, 1  ;;  %v4956_v52 = vmul.f32 %v6675_v16, %v4060_v30  ;;  %v6302_v48 = vpop.f32.mrb[168].mxu0  ;;  %v6690_v16 = vunpack.i.h.bf16 %v8215_v61 }
 0x3bc   : > { %v5206_v34 = vrot.slane %v5205_v31, 4  ;;  %v3864_v42 = vpop.f32.mrb[169].mxu0  ;;  %v3873_v57 = vadd.f32 %v8154_v53, %v6302_v48  ;;  %v8243_v48 = vpop.permute.xlu1 %6717 }
 0x3bd   : > { %v5202_v50 = vmax.f32 %v5200_v29, %v5201_v14  ;;  %v5212_v55 = vmax.f32 %v4955_v54, %v4956_v52  ;;  %v3865_v58 = vadd.f32 %v8154_v53, %v3864_v42  ;;  %v6303_v59 = vpop.f32.mrb[170].mxu0  ;;  %v6700_v54 = vunpack.i.h.bf16 %v8219_v49 }
 0x3be   : > { %v5207_v19 = vmax.f32 %v5205_v31, %v5206_v34  ;;  %v3876_v22 = vadd.f32 %v8154_v53, %v6303_v59  ;;  %v3867_v1 = vpop.f32.mrb[171].mxu0  ;;  %v4065_v15 = vmax.f32 %v3873_v57, 0.0 }
 0x3bf   : > { %v5334_v12 = vsel %vm5319_vm9, %v5202_v50, %v5333_v4  ;;  %v5213_v60 = vmax.f32 %v5212_v55, %v4957_v35  ;;  %v4063_v62 = vmax.f32 %v3865_v58, 0.0  ;;  %v3868_v24 = vadd.f32 %v8154_v53, %v3867_v1 }
 0x3c0   : > { %v5348_v0 = vmax.f32 %v4985_v51, %v5334_v12  ;;  %v5208_v2 = vrot.slane %v5207_v19, 2  ;;  %v4066_v25 = vmax.f32 %v3876_v22, 0.0  ;;  %v4961_v46 = vmul.f32 %v6694_v23, %v4065_v15  ;;  %v8247_v22 = vpop.permute.xlu0 %6712 }
 0x3c1   : > { %v5214_v11 = vmax.f32 %v5213_v60, %v4958_v41  ;;  %v4064_v17 = vmax.f32 %v3868_v24, 0.0  ;;  %v4959_v63 = vmul.f32 %v6684_v7, %v4063_v62  ;;  %v6719_v51 = vunpack.i.l.bf16 %v8243_v48 }
 0x3c2   : > { %5352 = vst [vmem:[%s7336_s20 + $0x10] sm:$0xff] %v5348_v0  ;;  %v5209_v38 = vmax.f32 %v5207_v19, %v5208_v2  ;;  %v4962_v4 = vmul.f32 %v6709_v10, %v4066_v25  ;;  %v6699_v25 = vunpack.i.l.bf16 %v8219_v49 }
 0x3c3   : > { %v5215_v13 = vrot.slane %v5214_v11, 4  ;;  %v4960_v45 = vmul.f32 %v6685_v56, %v4064_v17  ;;  %v6306_v47 = vpop.f32.mrb[172].mxu0  ;;  %v6695_v17 = vunpack.i.h.bf16 %v8227_v18 }
 0x3c4   : > { %v3889_v40 = vadd.f32 %v8154_v53, %v6306_v47  ;;  %v3880_v5 = vpop.f32.mrb[173].mxu0  ;;  %v5210_v29 = vrot.slane %v5209_v38, 1  ;;  %v6710_v47 = vunpack.i.h.bf16 %v8231_v6  ;;  %v8256_v10 = vpop.permute.xlu0 %6722 }
 0x3c5   : > { %v5216_v8 = vmax.f32 %v5214_v11, %v5215_v13  ;;  %v5221_v37 = vmax.f32 %v4959_v63, %v4960_v45  ;;  %v3881_v36 = vadd.f32 %v8154_v53, %v3880_v5  ;;  %v6307_v39 = vpop.f32.mrb[174].mxu0 }
 0x3c6   : > { %v3892_v9 = vadd.f32 %v8154_v53, %v6307_v39  ;;  %v3883_v44 = vpop.f32.mrb[175].mxu0  ;;  %v4069_v30 = vmax.f32 %v3889_v40, 0.0  ;;  %v5211_v50 = vmax.f32 %v5209_v38, %v5210_v29 }
 0x3c7   : > { %v5217_v21 = vrot.slane %v5216_v8, 2  ;;  %v5222_v43 = vmax.f32 %v5221_v37, %v4961_v46  ;;  %v4067_v3 = vmax.f32 %v3881_v36, 0.0  ;;  %v3884_v20 = vadd.f32 %v8154_v53, %v3883_v44  ;;  %v8258_v46 = vpop.permute.xlu1 %6727 }
 0x3c8   : > { %v4070_v52 = vmax.f32 %v3892_v9, 0.0  ;;  %v4965_v55 = vmul.f32 %v6700_v54, %v4069_v30  ;;  %v6729_v49 = vunpack.i.l.bf16 %v8258_v46  ;;  %v6704_v54 = vunpack.i.l.bf16 %v8239_v27 }
 0x3c9   : > { %v5218_v31 = vmax.f32 %v5216_v8, %v5217_v21  ;;  %v5223_v32 = vmax.f32 %v5222_v43, %v4962_v4  ;;  %v4068_v14 = vmax.f32 %v3884_v20, 0.0  ;;  %v4963_v34 = vmul.f32 %v6689_v26, %v4067_v3 }
 0x3ca   : > { %v4966_v24 = vmul.f32 %v6719_v51, %v4070_v52  ;;  %v8268_v52 = vpop.permute.xlu0 %6732 }
 0x3cb   : > { %v5219_v33 = vrot.slane %v5218_v31, 1  ;;  %v5224_v28 = vrot.slane %v5223_v32, 4  ;;  %v4964_v35 = vmul.f32 %v6690_v16, %v4068_v14  ;;  %v6310_v42 = vpop.f32.mrb[176].mxu0  ;;  %v6705_v14 = vunpack.i.h.bf16 %v8239_v27  ;;  %v6939_v27 = vld [vmem:[%s8363_s6] ss:$0 sm:$0xff] }
 0x3cc   : > { %v3896_v57 = vpop.f32.mrb[177].mxu0  ;;  %v3905_v1 = vadd.f32 %v8154_v53, %v6310_v42 }
 0x3cd   : > { %v5220_v58 = vmax.f32 %v5218_v31, %v5219_v33  ;;  %v5225_v61 = vmax.f32 %v5223_v32, %v5224_v28  ;;  %v5230_v59 = vmax.f32 %v4963_v34, %v4964_v35  ;;  %v3897_v19 = vadd.f32 %v8154_v53, %v3896_v57  ;;  %v6311_v41 = vpop.f32.mrb[178].mxu0 }
 0x3ce   : > { %v3899_v12 = vpop.f32.mrb[179].mxu0  ;;  %v3908_v2 = vadd.f32 %v8154_v53, %v6311_v41  ;;  %v4073_v23 = vmax.f32 %v3905_v1, 0.0  ;;  %v6720_v34 = vunpack.i.h.bf16 %v8243_v48 }
 0x3cf   : > { %v5335_v60 = vsel %vm5307_vm3, %v5220_v58, %v5211_v50  ;;  %v5226_v62 = vrot.slane %v5225_v61, 2  ;;  %v5231_v56 = vmax.f32 %v5230_v59, %v4965_v55  ;;  %v4071_v0 = vmax.f32 %v3897_v19, 0.0 }
 0x3d0   : > { %v3900_v7 = vadd.f32 %v8154_v53, %v3899_v12  ;;  %v4074_v40 = vmax.f32 %v3908_v2, 0.0  ;;  %v4969_v4 = vmul.f32 %v6710_v47, %v4073_v23  ;;  %v6730_v47 = vunpack.i.h.bf16 %v8258_v46 }
 0x3d1   : > { %v5227_v11 = vmax.f32 %v5225_v61, %v5226_v62  ;;  %v5232_v15 = vmax.f32 %v5231_v56, %v4966_v24  ;;  %v4967_v38 = vmul.f32 %v6695_v17, %v4071_v0  ;;  %v6714_v17 = vunpack.i.l.bf16 %v8247_v22 }
 0x3d2   : > { %v4072_v13 = vmax.f32 %v3900_v7, 0.0  ;;  %v4970_v16 = vmul.f32 %v6729_v49, %v4074_v40 }
 0x3d3   : > { %v5228_v63 = vrot.slane %v5227_v11, 1  ;;  %v5233_v45 = vrot.slane %v5232_v15, 4  ;;  %v6314_v8 = vpop.f32.mrb[180].mxu0 }
 0x3d4   : > { %v4968_v5 = vmul.f32 %v6699_v25, %v4072_v13  ;;  %v3921_v18 = vadd.f32 %v8154_v53, %v6314_v8  ;;  %v3912_v39 = vpop.f32.mrb[181].mxu0  ;;  %v6738_v25 = vpop.permute.xlu1 %6737 }
 0x3d5   : > { %v5229_v37 = vmax.f32 %v5227_v11, %v5228_v63  ;;  %v5234_v36 = vmax.f32 %v5232_v15, %v5233_v45  ;;  %v3913_v44 = vadd.f32 %v8154_v53, %v3912_v39  ;;  %v6315_v6 = vpop.f32.mrb[182].mxu0  ;;  %v6715_v15 = vunpack.i.h.bf16 %v8247_v22 }
 0x3d6   : > { %v5239_v9 = vmax.f32 %v4967_v38, %v4968_v5  ;;  %v3924_v3 = vadd.f32 %v8154_v53, %v6315_v6  ;;  %v3915_v20 = vpop.f32.mrb[183].mxu0  ;;  %v4077_v32 = vmax.f32 %v3921_v18, 0.0 }
 0x3d7   : > { %v5336_v21 = vsel %vm5309_vm4, %v5229_v37, %v5335_v60  ;;  %v5235_v43 = vrot.slane %v5234_v36, 2  ;;  %v4075_v30 = vmax.f32 %v3913_v44, 0.0  ;;  %v3916_v26 = vadd.f32 %v8154_v53, %v3915_v20 }
 0x3d8   : > { %v5240_v29 = vmax.f32 %v5239_v9, %v4969_v4  ;;  %v4078_v42 = vmax.f32 %v3924_v3, 0.0  ;;  %v6734_v53 = vunpack.i.l.bf16 %v8268_v52  ;;  %v4973_v61 = vmul.f32 %v6720_v34, %v4077_v32 }
 0x3d9   : > { %v5236_v31 = vmax.f32 %v5234_v36, %v5235_v43  ;;  %v4076_v28 = vmax.f32 %v3916_v26, 0.0  ;;  %v4971_v50 = vmul.f32 %v6704_v54, %v4075_v30  ;;  %v6739_v36 = vunpack.i.l.bf16 %v6738_v25 }
 0x3da   : > { %v5241_v33 = vmax.f32 %v5240_v29, %v4970_v16  ;;  %v4974_v62 = vmul.f32 %v6734_v53, %v4078_v42  ;;  %v6724_v54 = vunpack.i.l.bf16 %v8256_v10  ;;  %v6735_v42 = vunpack.i.h.bf16 %v8268_v52 }
 0x3db   : > { %v5237_v35 = vrot.slane %v5236_v31, 1  ;;  %v4972_v55 = vmul.f32 %v6705_v14, %v4076_v28  ;;  %v6318_v57 = vpop.f32.mrb[184].mxu0  ;;  %v6725_v14 = vunpack.i.h.bf16 %v8256_v10 }
 0x3dc   : > { %v5242_v51 = vrot.slane %v5241_v33, 4  ;;  %v3928_v59 = vpop.f32.mrb[185].mxu0  ;;  %v3937_v1 = vadd.f32 %v6939_v27, %v6318_v57 }
 0x3dd   : > { %v5238_v58 = vmax.f32 %v5236_v31, %v5237_v35  ;;  %v5248_v41 = vmax.f32 %v4971_v50, %v4972_v55  ;;  %v3929_v12 = vadd.f32 %v6939_v27, %v3928_v59  ;;  %v6319_v48 = vpop.f32.mrb[186].mxu0 }
 0x3de   : > { %v5243_v19 = vmax.f32 %v5241_v33, %v5242_v51  ;;  %v3940_v24 = vadd.f32 %v6939_v27, %v6319_v48  ;;  %v3931_v56 = vpop.f32.mrb[187].mxu0  ;;  %v4081_v63 = vmax.f32 %v3937_v1, 0.0 }
 0x3df   : > { %v5337_v60 = vsel %vm5311_vm5, %v5238_v58, %v5336_v21  ;;  %v5249_v2 = vmax.f32 %v5248_v41, %v4973_v61  ;;  %v4079_v7 = vmax.f32 %v3929_v12, 0.0  ;;  %v3932_v11 = vadd.f32 %v6939_v27, %v3931_v56 }
 0x3e0   : > { %v5244_v0 = vrot.slane %v5243_v19, 2  ;;  %v4082_v38 = vmax.f32 %v3940_v24, 0.0  ;;  %v4977_v4 = vmul.f32 %v6730_v47, %v4081_v63  ;;  %v6740_v58 = vunpack.i.h.bf16 %v6738_v25 }
 0x3e1   : > { %v5250_v13 = vmax.f32 %v5249_v2, %v4974_v62  ;;  %v4080_v45 = vmax.f32 %v3932_v11, 0.0  ;;  %v4975_v8 = vmul.f32 %v6714_v17, %v4079_v7  ;;  %v4986_v7 = vld [vmem:[%s7336_s20 + $0x18] sm:$0xff] }
 0x3e2   : > { %v5245_v23 = vmax.f32 %v5243_v19, %v5244_v0  ;;  %v4978_v20 = vmul.f32 %v6739_v36, %v4082_v38 }
 0x3e3   : > { %v5251_v5 = vrot.slane %v5250_v13, 4  ;;  %v4976_v37 = vmul.f32 %v6715_v15, %v4080_v45 }
 0x3e4   : > { %v5246_v40 = vrot.slane %v5245_v23, 1  ;;  %v6322_v18 = vpop.f32.mrb[188].mxu0 }
 0x3e5   : > { %v5252_v49 = vmax.f32 %v5250_v13, %v5251_v5  ;;  %v5257_v9 = vmax.f32 %v4975_v8, %v4976_v37  ;;  %v3944_v44 = vpop.f32.mrb[189].mxu0  ;;  %v3953_v22 = vadd.f32 %v6939_v27, %v6322_v18 }
 0x3e6   : > { %v5247_v39 = vmax.f32 %v5245_v23, %v5246_v40  ;;  %v3945_v6 = vadd.f32 %v6939_v27, %v3944_v44  ;;  %v6323_v21 = vpop.f32.mrb[190].mxu0 }
 0x3e7   : > { %v5253_v3 = vrot.slane %v5252_v49, 2  ;;  %v5258_v46 = vmax.f32 %v5257_v9, %v4977_v4  ;;  %v3947_v16 = vpop.f32.mrb[191].mxu0  ;;  %v3956_v30 = vadd.f32 %v6939_v27, %v6323_v21  ;;  %v4085_v33 = vmax.f32 %v3953_v22, 0.0 }
 0x3e8   : > { %v5338_v43 = vsel %vm5313_vm6, %v5247_v39, %v5337_v60  ;;  %v4083_v29 = vmax.f32 %v3945_v6, 0.0  ;;  %v3948_v26 = vadd.f32 %v6939_v27, %v3947_v16 }
 0x3e9   : > { %v5254_v31 = vmax.f32 %v5252_v49, %v5253_v3  ;;  %v5259_v32 = vmax.f32 %v5258_v46, %v4978_v20  ;;  %v4086_v50 = vmax.f32 %v3956_v30, 0.0  ;;  %v4981_v61 = vmul.f32 %v6735_v42, %v4085_v33 }
 0x3ea   : > { %v4084_v28 = vmax.f32 %v3948_v26, 0.0  ;;  %v4979_v51 = vmul.f32 %v6724_v54, %v4083_v29 }
 0x3eb   : > { %v5255_v34 = vrot.slane %v5254_v31, 1  ;;  %v5260_v35 = vrot.slane %v5259_v32, 4  ;;  %v4982_v41 = vmul.f32 %v6740_v58, %v4086_v50 }
 0x3ec   : > { %v4980_v55 = vmul.f32 %v6725_v14, %v4084_v28 }
 0x3ed   : > { %v5256_v57 = vmax.f32 %v5254_v31, %v5255_v34  ;;  %v5261_v53 = vmax.f32 %v5259_v32, %v5260_v35 }
 0x3ee   : > { %v5266_v59 = vmax.f32 %v4979_v51, %v4980_v55 }
 0x3ef   : > { %v5339_v19 = vsel %vm5315_vm7, %v5256_v57, %v5338_v43  ;;  %v5262_v10 = vrot.slane %v5261_v53, 2 }
 0x3f0   : > { %v5267_v27 = vmax.f32 %v5266_v59, %v4981_v61 }
 0x3f1   : > { %v5263_v1 = vmax.f32 %v5261_v53, %v5262_v10 }
 0x3f2   : > { %v5268_v12 = vmax.f32 %v5267_v27, %v4982_v41 }
 0x3f3   : > { %v5264_v48 = vrot.slane %v5263_v1, 1 }
 0x3f4   : > { %v5269_v52 = vrot.slane %v5268_v12, 4 }
 0x3f5   : > { %v5265_v60 = vmax.f32 %v5263_v1, %v5264_v48 }
 0x3f6   : > { %v5270_v62 = vmax.f32 %v5268_v12, %v5269_v52 }
 0x3f7   : > { %v5340_v24 = vsel %vm5317_vm8, %v5265_v60, %v5339_v19 }
 0x3f8   : > { %v5271_v56 = vrot.slane %v5270_v62, 2 }
 0x3fa   : > { %v5272_v0 = vmax.f32 %v5270_v62, %v5271_v56 }
 0x3fc   : > { %v5273_v2 = vrot.slane %v5272_v0, 1 }
 0x3fe   : > { %v5274_v11 = vmax.f32 %v5272_v0, %v5273_v2 }
 0x400   : > { %v5341_v15 = vsel %vm5319_vm9, %v5274_v11, %v5340_v24 }
 0x401   : > { %v5349_v17 = vmax.f32 %v4986_v7, %v5341_v15 }
 0x403   : > { %5353 = vst [vmem:[%s7336_s20 + $0x18] sm:$0xff] %v5349_v17 }
 0x404   : > { %6953 = shalt.err (!%p6950_p11)
}
 0x405   : > { %s6954_s14 = scalar_lea.hbm %s8292_s13, 512  ;;  %s6958_s18 = scalar_lea.hbm %s8364_s7, 1024 }
 0x406   : > { %p6955_p13 = scmp.ne.s32.totalorder %s8292_s13, %s6954_s14  ;;  %p6959_p2 = scmp.lt.u32.totalorder %s8292_s13, %s8364_s7 }
 0x407   : > { %p6960_p3 = scmp.lt.u32.totalorder %s6958_s18, %s6954_s14  ;;  %p6962_p5 = scmp.lt.u32.totalorder %s6954_s14, %s8292_s13 }
 0x408   : > { %p6956_p0 = pnand %p6955_p13, %p7169_p7 }
 0x409   : > { %p6961_p4 = por %p6960_p3, %p6959_p2 }
 0x40a   : > { %p6957_p1 = pneg %p6956_p0 }
 0x40b   : > { %p6963_p6 = por %p6962_p5, %p6961_p4 }
 0x40d   : > { %p6964_p8 = pnand %p6963_p6, %p6957_p1 }
 0x40f   : > { %6967 = shalt.err (!%p6964_p8)
}
 0x410   : > { %s7055_s30 = smov 128   ;;  %s7056_s12 = smov 8  }
 0x411   : > { %6328 = dma.vmem_to_hbm [thread:$0]  (%p7169_p7), %s8294_s15, 512, %s8292_s13, %s8299_s22, %s7055_s30, %s7055_s30, %s7056_s12  }
 0x412 PF: > { %p6334_p9 = scmp.ge.s32.totalorder %s7050_s10, 2  ;;  %s5383_s21 = sand.u32 1, %s7014_s24  }
 0x413   : > { %s5384_s14 = scalar_lea.sflag [#allocation4], %s5383_s21 }
 0x414   : > { %p6331_p10 = pnand %p6334_p9, %p7177_p12 }
 0x416   : > { %7009 = dma.done.wait (!%p6331_p10), %s5384_s14, 512  }
 0x417   : > { %7011 = vsyncadd (!%p6331_p10), %s5384_s14, 4294966784  ;;  %s20_s10 = sadd.s32 1, %s7050_s10   ;;  %s8375_s19 = sld [smem:[#allocation6_spill]] }
 0x418   : > { %p17_p11 = scmp.ge.s32.totalorder %s20_s10, 6   ;;  %s8376_s15 = sld [smem:[#allocation7_spill]] }
 0x419   : > { %s8377_s24 = smov %s7018_s25  ;;  %s8378_s25 = smov %s7022_s26 }
 0x41a   : > { %s8379_s26 = smov %s7182_s23  ;;  %s8380_s27 = smov %s7030_s28 }
 0x41b   : > { %s8381_s28 = smov %s7185_s11  ;;  %s8382_s29 = smov %s7042_s8 }
 0x41c   : > { %s8383_s30 = smov %s7046_s9  ;;  %19 = sbr.rel (!%p17_p11) target bundleno = 6 (0x6), region = 133 }
 0x41d   : > { %s8384_s8 = smov %s8375_s19 }
 0x41e   : > { %s8385_s9 = smov %s8376_s15 }
 0x423   :  { %5389 = vsyncpa [#allocation4], 1 }
 0x424   :  { %5391 = vsyncpa [#allocation4 + $0x1], 1 }

</bundles_post_ra>
